<compile_context>
chip_gen: v5e
topology: v5e:2x2
jax: 0.10.0
libtpu: 0.0.40
codegen_flags: <defaults>
</compile_context>

<pallas_src>
import jax
import jax.numpy as jnp
from jax import lax
from jax.experimental import pallas as pl
from jax.experimental.pallas import tpu as pltpu

# ---------------- model config (small, consistent with __init__) ----------------
CATEGORIES = (7, 5, 11, 3, 6, 9)          # categories list
N_CAT = len(CATEGORIES)                   # num_categories
NUM_SPECIAL = 2                           # num_special_tokens
TOTAL_TOKENS = sum(CATEGORIES) + NUM_SPECIAL
NUM_CONT = 8                              # num_continuous
DIM = 32                                  # dim
DEPTH = 2                                 # depth
HEADS = 2                                 # heads
DIM_HEAD = 16                             # dim_head
INNER = HEADS * DIM_HEAD
SCALE = DIM_HEAD ** -0.5
FF_MULT = 4
FF_HID = DIM * FF_MULT                    # 128
DIM_OUT = 3                               # dim_out (>1 -> softmax in MLP head)
MLP_MULTS = (4, 2)
INPUT_SIZE = DIM * N_CAT + NUM_CONT       # 200
LOGIT = INPUT_SIZE // 8                   # 25
HIDDEN = [LOGIT * m for m in MLP_MULTS]   # [100, 50]
LN_EPS = 1e-5
BATCH = 8

# categories_offset = cumsum(pad(categories, (1,0), value=num_special))[:-1]
_offs = [NUM_SPECIAL]
for _c in CATEGORIES[:-1]:
    _offs.append(_offs[-1] + _c)
CATEGORIES_OFFSET = tuple(_offs)


# ---------------------------- in-kernel helpers ----------------------------
def _layernorm(x, g, b):
    # torch.nn.LayerNorm semantics: biased variance, eps inside sqrt
    mu = jnp.mean(x, axis=-1, keepdims=True)
    var = jnp.mean((x - mu) ** 2, axis=-1, keepdims=True)
    return (x - mu) * lax.rsqrt(var + LN_EPS) * g + b


def _gelu(x):
    # tanh-approximate GELU (== jax.nn.gelu(approximate=True)); tanh runs on the
    # EUP so the big GEGLU block stops saturating the vector-ALU slot.
    # TODO(synk): PyTorch F.gelu default is the exact erf form; difference <~1e-3.
    c = 0.7978845608028654  # sqrt(2/pi)
    return 0.5 * x * (1.0 + jnp.tanh(c * (x + 0.044715 * x * x * x)))


# -------------------- fully fused forward kernel --------------------
# Layout: x_ref is (N_CAT * B, DIM) token-major: row = n * B + b.
def fused_kernel(x_ref, cont_ref,
                 ln_ref, wq_ref, wk_ref, wv_ref, wo_ref,
                 wff1_ref, bff1_ref, wff2_ref,
                 lnc_ref, w1a_ref, w1b_ref, b1_ref, w2_ref, b2_ref, w3_ref, b3_ref,
                 o_ref):
    rows = x_ref.shape[0]
    B = rows // N_CAT

    x = x_ref[...]                                            # (rows, DIM)

    # Block-diagonal ("same batch row") additive attention mask, computed ONCE
    # and shared by all layers/heads (replaces per-head selects with one add).
    ri = lax.broadcasted_iota(jnp.int32, (rows, rows), 0)
    ci = lax.broadcasted_iota(jnp.int32, (rows, rows), 1)
    mask_bias = jnp.where((ri % B) == (ci % B),
                          jnp.float32(0.0), jnp.float32(-1e30))   # (rows, rows)

    for l in range(DEPTH):                                    # static unroll (DEPTH=2)
        lnp = ln_ref[l]                                       # (6, DIM) packed vectors
        ln1g, ln1b = lnp[0:1], lnp[1:2]
        ln2g, ln2b = lnp[2:3], lnp[3:4]
        b_out, b_ff2 = lnp[4:5], lnp[5:6]

        # --- Residual(PreNorm(Attention)) ---
        xn = _layernorm(x, ln1g, ln1b)
        acc = jnp.zeros_like(x)
        for h in range(HEADS):                                # static unroll (HEADS=2)
            q = jnp.dot(xn, wq_ref[l, h], preferred_element_type=jnp.float32)  # scale folded in
            k = jnp.dot(xn, wk_ref[l, h], preferred_element_type=jnp.float32)
            v = jnp.dot(xn, wv_ref[l, h], preferred_element_type=jnp.float32)
            # all-pairs scores, additively masked to the per-batch-row 6x6 blocks
            sim = lax.dot_general(q, k, (((1,), (1,)), ((), ())),
                                  preferred_element_type=jnp.float32)           # (rows, rows)
            sim = sim + mask_bias
            sim = sim - jnp.max(sim, axis=-1, keepdims=True)
            e = jnp.exp(sim)                                   # masked entries -> exactly 0
            attn = e / jnp.sum(e, axis=-1, keepdims=True)
            o_h = jnp.dot(attn, v, preferred_element_type=jnp.float32)          # (rows, DIM_HEAD)
            acc = acc + jnp.dot(o_h, wo_ref[l, h], preferred_element_type=jnp.float32)
        x = x + acc + b_out

        # --- Residual(PreNorm(FeedForward)) with GEGLU ---
        xn2 = _layernorm(x, ln2g, ln2b)
        ff = jnp.dot(xn2, wff1_ref[l], preferred_element_type=jnp.float32) + bff1_ref[l]
        a = ff[:, :FF_HID]                                     # lane-tile aligned split (128)
        g = ff[:, FF_HID:]
        hid = a * _gelu(g)
        x = x + jnp.dot(hid, wff2_ref[l], preferred_element_type=jnp.float32) + b_ff2

    # --- head: LayerNorm(continuous) + MLP + softmax ---
    lnc = lnc_ref[...]                                         # (2, NUM_CONT)
    cont = _layernorm(cont_ref[...], lnc[0:1], lnc[1:2])       # (B, NUM_CONT)

    # cat((flat_categ, normed_cont)) @ W1 as a split matmul; flat_categ part is
    # accumulated per token with sublane-aligned (B, DIM) row slabs of x.
    h1 = jnp.dot(cont, w1b_ref[...], preferred_element_type=jnp.float32) + b1_ref[...]
    for n in range(N_CAT):                                     # static unroll, slices at multiples of 8
        h1 = h1 + jnp.dot(x[n * B:(n + 1) * B, :], w1a_ref[n],
                          preferred_element_type=jnp.float32)
    h1 = jnp.maximum(h1, 0.0)                                  # ReLU (default MLP act)
    h2 = jnp.maximum(jnp.dot(h1, w2_ref[...], preferred_element_type=jnp.float32) + b2_ref[...],
                     0.0)
    logits = jnp.dot(h2, w3_ref[...], preferred_element_type=jnp.float32) + b3_ref[...]
    # MLP.forward: dim_out > 1 -> softmax over the feature axis (exact division:
    # keeps row-sum == 1 to fp32 precision, matching torch.softmax).
    m = jnp.max(logits, axis=-1, keepdims=True)
    e = jnp.exp(logits - m)
    o_ref[...] = e / jnp.sum(e, axis=-1, keepdims=True)


def run_fused(x_tok, x_cont, p):
    """x_tok: (N_CAT*B, DIM) token-major embeddings; x_cont: (B, NUM_CONT)."""
    B = x_cont.shape[0]
    args = [x_tok, x_cont,
            p['ln_pack'], p['wq'], p['wk'], p['wv'], p['wo'],
            p['w_ff1'], p['b_ff1'], p['w_ff2'],
            p['ln_cont'], p['w1a'], p['w1b'], p['b1'], p['w2'], p['b2'], p['w3'], p['b3']]

    def full_spec(arr):
        nd = arr.ndim
        return pl.BlockSpec(arr.shape, lambda i, _nd=nd: (0,) * _nd)

    return pl.pallas_call(
        fused_kernel,
        out_shape=jax.ShapeDtypeStruct((B, DIM_OUT), jnp.float32),
        grid=(1,),                                  # single step: latency-bound, keep on one TC
        in_specs=[full_spec(a) for a in args],
        out_specs=pl.BlockSpec((B, DIM_OUT), lambda i: (0, 0)),
        compiler_params=pltpu.CompilerParams(dimension_semantics=("arbitrary",)),
    )(*args)


# ---------------------------- parameters & forward ----------------------------
def init_params(key):
    keys = iter(jax.random.split(key, 64))

    def nrm(shape, scale=0.05):
        return scale * jax.random.normal(next(keys), shape, jnp.float32)

    p = {'emb': nrm((TOTAL_TOKENS, DIM), 0.1)}

    ln_pack, wq, wk, wv, wo, wff1, bff1, wff2 = [], [], [], [], [], [], [], []
    for _ in range(DEPTH):
        w_qkv = nrm((DIM, 3 * INNER))                  # to_qkv (no bias)
        # pre-split per head; fold the softmax scale (dim_head^-0.5) into Q.
        wq.append(jnp.stack([w_qkv[:, h * DIM_HEAD:(h + 1) * DIM_HEAD] * SCALE
                             for h in range(HEADS)]))
        wk.append(jnp.stack([w_qkv[:, INNER + h * DIM_HEAD:INNER + (h + 1) * DIM_HEAD]
                             for h in range(HEADS)]))
        wv.append(jnp.stack([w_qkv[:, 2 * INNER + h * DIM_HEAD:2 * INNER + (h + 1) * DIM_HEAD]
                             for h in range(HEADS)]))
        w_out = nrm((INNER, DIM))                      # to_out weight
        wo.append(jnp.stack([w_out[h * DIM_HEAD:(h + 1) * DIM_HEAD, :] for h in range(HEADS)]))
        # packed small per-layer vectors: [ln1_g, ln1_b, ln2_g, ln2_b, b_out, b_ff2]
        ln_pack.append(jnp.stack([
            jnp.ones((DIM,), jnp.float32), jnp.zeros((DIM,), jnp.float32),
            jnp.ones((DIM,), jnp.float32), jnp.zeros((DIM,), jnp.float32),
            jnp.zeros((DIM,), jnp.float32), jnp.zeros((DIM,), jnp.float32),
        ]))
        wff1.append(nrm((DIM, 2 * FF_HID)))            # Linear(dim, dim*mult*2)
        bff1.append(jnp.zeros((1, 2 * FF_HID), jnp.float32))
        wff2.append(nrm((FF_HID, DIM)))                # Linear(dim*mult, dim)

    p['ln_pack'] = jnp.stack(ln_pack)                  # (DEPTH, 6, DIM)
    p['wq'] = jnp.stack(wq)                            # (DEPTH, HEADS, DIM, DIM_HEAD)
    p['wk'] = jnp.stack(wk)
    p['wv'] = jnp.stack(wv)
    p['wo'] = jnp.stack(wo)                            # (DEPTH, HEADS, DIM_HEAD, DIM)
    p['w_ff1'] = jnp.stack(wff1)                       # (DEPTH, DIM, 2*FF_HID)
    p['b_ff1'] = jnp.stack(bff1)                       # (DEPTH, 1, 2*FF_HID)
    p['w_ff2'] = jnp.stack(wff2)                       # (DEPTH, FF_HID, DIM)

    p['ln_cont'] = jnp.stack([jnp.ones((NUM_CONT,), jnp.float32),
                              jnp.zeros((NUM_CONT,), jnp.float32)])   # (2, NUM_CONT)

    dims = [INPUT_SIZE] + HIDDEN + [DIM_OUT]
    w1 = nrm((dims[0], dims[1]))
    p['w1a'] = w1[:DIM * N_CAT].reshape(N_CAT, DIM, dims[1])   # flat_categ part, per token
    p['w1b'] = w1[DIM * N_CAT:]                                # normed_cont part
    p['b1'] = jnp.zeros((1, dims[1]), jnp.float32)
    p['w2'] = nrm((dims[1], dims[2]))
    p['b2'] = jnp.zeros((1, dims[2]), jnp.float32)
    p['w3'] = nrm((dims[2], dims[3]))
    p['b3'] = jnp.zeros((1, dims[3]), jnp.float32)
    return p


def tab_transformer_forward(params, x_categ, x_cont):
    # glue: token offsets + clamp + embedding gather (stays in JAX/XLA)
    offsets = jnp.asarray(CATEGORIES_OFFSET, jnp.int32)
    tokens = jnp.clip(x_categ + offsets, 0, TOTAL_TOKENS - 1)   # matches reference clamp path
    x = jnp.take(params['emb'], tokens, axis=0)                 # (B, N_CAT, DIM)
    # token-major slab (N_CAT*B, DIM): row = n*B + b -> sublane-aligned per-token
    # slices, no reshapes needed inside the kernel.
    B = x.shape[0]
    x_tok = jnp.transpose(x, (1, 0, 2)).reshape(N_CAT * B, DIM)
    # continuous_mean_std is None in this config -> no standardization.
    return run_fused(x_tok, x_cont, params)                     # single fused Pallas kernel


if __name__ == "__main__":
    key = jax.random.PRNGKey(0)
    kp, kc, kx = jax.random.split(key, 3)
    params = init_params(kp)

    cat_keys = jax.random.split(kc, N_CAT)
    cat_cols = [jax.random.randint(cat_keys[j], (BATCH,), 0, CATEGORIES[j], dtype=jnp.int32)
                for j in range(N_CAT)]
    x_categ = jnp.stack(cat_cols, axis=1)              # (BATCH, N_CAT) int32
    x_cont = jax.random.normal(kx, (BATCH, NUM_CONT), jnp.float32)

    fwd = jax.jit(tab_transformer_forward)             # fuse gather/transpose glue around kernel
    out = fwd(params, x_categ, x_cont)
    out = jax.block_until_ready(out)
    assert out.shape == (BATCH, DIM_OUT)
    assert bool(jnp.all(jnp.isfinite(out)))
    # rows of the softmax output should sum to ~1
    assert bool(jnp.all(jnp.abs(jnp.sum(out, axis=-1) - 1.0) < 1e-4))
    print("KERNEL_OK")
</pallas_src>

<mosaic_0001>
module attributes {stable_mosaic.version = 11 : i64} {
  func.func @fused_kernel(%arg0: i32, %arg1: memref<48x32xf32, #tpu.memory_space<vmem>>, %arg2: memref<8x8xf32, #tpu.memory_space<vmem>>, %arg3: memref<2x6x32xf32, #tpu.memory_space<vmem>>, %arg4: memref<2x2x32x16xf32, #tpu.memory_space<vmem>>, %arg5: memref<2x2x32x16xf32, #tpu.memory_space<vmem>>, %arg6: memref<2x2x32x16xf32, #tpu.memory_space<vmem>>, %arg7: memref<2x2x16x32xf32, #tpu.memory_space<vmem>>, %arg8: memref<2x32x256xf32, #tpu.memory_space<vmem>>, %arg9: memref<2x1x256xf32, #tpu.memory_space<vmem>>, %arg10: memref<2x128x32xf32, #tpu.memory_space<vmem>>, %arg11: memref<2x8xf32, #tpu.memory_space<vmem>>, %arg12: memref<6x32x100xf32, #tpu.memory_space<vmem>>, %arg13: memref<8x100xf32, #tpu.memory_space<vmem>>, %arg14: memref<1x100xf32, #tpu.memory_space<vmem>>, %arg15: memref<100x50xf32, #tpu.memory_space<vmem>>, %arg16: memref<1x50xf32, #tpu.memory_space<vmem>>, %arg17: memref<50x3xf32, #tpu.memory_space<vmem>>, %arg18: memref<1x3xf32, #tpu.memory_space<vmem>>, %arg19: memref<8x3xf32, #tpu.memory_space<vmem>>) attributes {dimension_semantics = [#tpu.dimension_semantics<arbitrary>], iteration_bounds = array<i64: 1>, scalar_prefetch = 0 : i64, scratch_operands = 0 : i64, tpu.core_type = #tpu.core_type<tc>, window_params = [{pipeline_mode = #tpu.pipeline_mode<synchronous>, transform_indices = @transform_0, window_bounds = array<i64: 48, 32>}, {pipeline_mode = #tpu.pipeline_mode<synchronous>, transform_indices = @transform_1, window_bounds = array<i64: 8, 8>}, {pipeline_mode = #tpu.pipeline_mode<synchronous>, transform_indices = @transform_2, window_bounds = array<i64: 2, 6, 32>}, {pipeline_mode = #tpu.pipeline_mode<synchronous>, transform_indices = @transform_3, window_bounds = array<i64: 2, 2, 32, 16>}, {pipeline_mode = #tpu.pipeline_mode<synchronous>, transform_indices = @transform_4, window_bounds = array<i64: 2, 2, 32, 16>}, {pipeline_mode = #tpu.pipeline_mode<synchronous>, transform_indices = @transform_5, window_bounds = array<i64: 2, 2, 32, 16>}, {pipeline_mode = #tpu.pipeline_mode<synchronous>, transform_indices = @transform_6, window_bounds = array<i64: 2, 2, 16, 32>}, {pipeline_mode = #tpu.pipeline_mode<synchronous>, transform_indices = @transform_7, window_bounds = array<i64: 2, 32, 256>}, {pipeline_mode = #tpu.pipeline_mode<synchronous>, transform_indices = @transform_8, window_bounds = array<i64: 2, 1, 256>}, {pipeline_mode = #tpu.pipeline_mode<synchronous>, transform_indices = @transform_9, window_bounds = array<i64: 2, 128, 32>}, {pipeline_mode = #tpu.pipeline_mode<synchronous>, transform_indices = @transform_10, window_bounds = array<i64: 2, 8>}, {pipeline_mode = #tpu.pipeline_mode<synchronous>, transform_indices = @transform_11, window_bounds = array<i64: 6, 32, 100>}, {pipeline_mode = #tpu.pipeline_mode<synchronous>, transform_indices = @transform_12, window_bounds = array<i64: 8, 100>}, {pipeline_mode = #tpu.pipeline_mode<synchronous>, transform_indices = @transform_13, window_bounds = array<i64: 1, 100>}, {pipeline_mode = #tpu.pipeline_mode<synchronous>, transform_indices = @transform_14, window_bounds = array<i64: 100, 50>}, {pipeline_mode = #tpu.pipeline_mode<synchronous>, transform_indices = @transform_15, window_bounds = array<i64: 1, 50>}, {pipeline_mode = #tpu.pipeline_mode<synchronous>, transform_indices = @transform_16, window_bounds = array<i64: 50, 3>}, {pipeline_mode = #tpu.pipeline_mode<synchronous>, transform_indices = @transform_17, window_bounds = array<i64: 1, 3>}, {pipeline_mode = #tpu.pipeline_mode<synchronous>, transform_indices = @transform_18, window_bounds = array<i64: 8, 3>}]} {
    %c0 = arith.constant 0 : index
    %c0_0 = arith.constant 0 : index
    %0 = vector.load %arg1[%c0, %c0_0] : memref<48x32xf32, #tpu.memory_space<vmem>>, vector<48x32xf32>
    %1 = tpu.iota {dimensions = array<i32: 0>} : vector<48x48xi32>
    %2 = tpu.iota {dimensions = array<i32: 1>} : vector<48x48xi32>
    %c8_i32 = arith.constant 8 : i32
    %c0_i32 = arith.constant 0 : i32
    %3 = arith.cmpi eq, %c8_i32, %c0_i32 : i32
    %c1_i32 = arith.constant 1 : i32
    %4 = arith.select %3, %c1_i32, %c8_i32 : i32
    %5 = vector.broadcast %4 : i32 to vector<48x48xi32>
    %6 = arith.remsi %1, %5 : vector<48x48xi32>
    %c0_i32_1 = arith.constant 0 : i32
    %7 = vector.broadcast %c0_i32_1 : i32 to vector<48x48xi32>
    %8 = arith.cmpi ne, %6, %7 : vector<48x48xi32>
    %c0_i32_2 = arith.constant 0 : i32
    %9 = vector.broadcast %c0_i32_2 : i32 to vector<48x48xi32>
    %10 = arith.cmpi slt, %6, %9 : vector<48x48xi32>
    %c0_i32_3 = arith.constant 0 : i32
    %11 = arith.cmpi slt, %4, %c0_i32_3 : i32
    %12 = vector.broadcast %11 : i1 to vector<48x48xi1>
    %13 = vector.broadcast %12 : vector<48x48xi1> to vector<48x48xi1>
    %14 = arith.xori %10, %13 : vector<48x48xi1>
    %15 = arith.andi %14, %8 : vector<48x48xi1>
    %16 = vector.broadcast %4 : i32 to vector<48x48xi32>
    %17 = arith.addi %6, %16 : vector<48x48xi32>
    %18 = arith.select %15, %17, %6 : vector<48x48xi1>, vector<48x48xi32>
    %c8_i32_4 = arith.constant 8 : i32
    %c0_i32_5 = arith.constant 0 : i32
    %19 = arith.cmpi eq, %c8_i32_4, %c0_i32_5 : i32
    %c1_i32_6 = arith.constant 1 : i32
    %20 = arith.select %19, %c1_i32_6, %c8_i32_4 : i32
    %21 = vector.broadcast %20 : i32 to vector<48x48xi32>
    %22 = arith.remsi %2, %21 : vector<48x48xi32>
    %c0_i32_7 = arith.constant 0 : i32
    %23 = vector.broadcast %c0_i32_7 : i32 to vector<48x48xi32>
    %24 = arith.cmpi ne, %22, %23 : vector<48x48xi32>
    %c0_i32_8 = arith.constant 0 : i32
    %25 = vector.broadcast %c0_i32_8 : i32 to vector<48x48xi32>
    %26 = arith.cmpi slt, %22, %25 : vector<48x48xi32>
    %c0_i32_9 = arith.constant 0 : i32
    %27 = arith.cmpi slt, %20, %c0_i32_9 : i32
    %28 = vector.broadcast %27 : i1 to vector<48x48xi1>
    %29 = vector.broadcast %28 : vector<48x48xi1> to vector<48x48xi1>
    %30 = arith.xori %26, %29 : vector<48x48xi1>
    %31 = arith.andi %30, %24 : vector<48x48xi1>
    %32 = vector.broadcast %20 : i32 to vector<48x48xi32>
    %33 = arith.addi %22, %32 : vector<48x48xi32>
    %34 = arith.select %31, %33, %22 : vector<48x48xi1>, vector<48x48xi32>
    %35 = arith.cmpi eq, %18, %34 : vector<48x48xi32>
    %cst = arith.constant 0.000000e+00 : f32
    %cst_10 = arith.constant -1.000000e+30 : f32
    %36 = vector.broadcast %cst : f32 to vector<48x48xf32>
    %37 = vector.broadcast %cst_10 : f32 to vector<48x48xf32>
    %38 = arith.select %35, %36, %37 : vector<48x48xi1>, vector<48x48xf32>
    %c0_11 = arith.constant 0 : index
    %c0_12 = arith.constant 0 : index
    %c0_13 = arith.constant 0 : index
    %39 = vector.load %arg3[%c0_11, %c0_12, %c0_13] : memref<2x6x32xf32, #tpu.memory_space<vmem>>, vector<1x6x32xf32>
    %40 = vector.shape_cast %39 : vector<1x6x32xf32> to vector<6x32xf32>
    %41 = vector.extract_strided_slice %40 {offsets = [0, 0], sizes = [1, 32], strides = [1, 1]} : vector<6x32xf32> to vector<1x32xf32>
    %42 = vector.extract_strided_slice %40 {offsets = [1, 0], sizes = [1, 32], strides = [1, 1]} : vector<6x32xf32> to vector<1x32xf32>
    %43 = vector.extract_strided_slice %40 {offsets = [2, 0], sizes = [1, 32], strides = [1, 1]} : vector<6x32xf32> to vector<1x32xf32>
    %44 = vector.extract_strided_slice %40 {offsets = [3, 0], sizes = [1, 32], strides = [1, 1]} : vector<6x32xf32> to vector<1x32xf32>
    %45 = vector.extract_strided_slice %40 {offsets = [4, 0], sizes = [1, 32], strides = [1, 1]} : vector<6x32xf32> to vector<1x32xf32>
    %46 = vector.extract_strided_slice %40 {offsets = [5, 0], sizes = [1, 32], strides = [1, 1]} : vector<6x32xf32> to vector<1x32xf32>
    %cst_14 = arith.constant dense<0.000000e+00> : vector<48xf32>
    %47 = vector.multi_reduction <add>, %0, %cst_14 [1] : vector<48x32xf32> to vector<48xf32>
    %48 = vector.shape_cast %47 : vector<48xf32> to vector<48x1xf32>
    %cst_15 = arith.constant 3.200000e+01 : f32
    %49 = vector.broadcast %cst_15 : f32 to vector<48x1xf32>
    %50 = arith.divf %48, %49 : vector<48x1xf32>
    %51 = vector.broadcast %50 : vector<48x1xf32> to vector<48x32xf32>
    %52 = arith.subf %0, %51 : vector<48x32xf32>
    %53 = arith.mulf %52, %52 : vector<48x32xf32>
    %cst_16 = arith.constant dense<0.000000e+00> : vector<48xf32>
    %54 = vector.multi_reduction <add>, %53, %cst_16 [1] : vector<48x32xf32> to vector<48xf32>
    %55 = vector.shape_cast %54 : vector<48xf32> to vector<48x1xf32>
    %cst_17 = arith.constant 3.200000e+01 : f32
    %56 = vector.broadcast %cst_17 : f32 to vector<48x1xf32>
    %57 = arith.divf %55, %56 : vector<48x1xf32>
    %58 = vector.broadcast %50 : vector<48x1xf32> to vector<48x32xf32>
    %59 = arith.subf %0, %58 : vector<48x32xf32>
    %cst_18 = arith.constant 9.99999974E-6 : f32
    %60 = vector.broadcast %cst_18 : f32 to vector<48x1xf32>
    %61 = arith.addf %57, %60 : vector<48x1xf32>
    %62 = math.rsqrt %61 : vector<48x1xf32>
    %63 = vector.broadcast %62 : vector<48x1xf32> to vector<48x32xf32>
    %64 = arith.mulf %59, %63 : vector<48x32xf32>
    %65 = vector.broadcast %41 : vector<1x32xf32> to vector<48x32xf32>
    %66 = arith.mulf %64, %65 : vector<48x32xf32>
    %67 = vector.broadcast %42 : vector<1x32xf32> to vector<48x32xf32>
    %68 = arith.addf %66, %67 : vector<48x32xf32>
    %cst_19 = arith.constant 0.000000e+00 : f32
    %69 = vector.broadcast %cst_19 : f32 to vector<48x32xf32>
    %c0_20 = arith.constant 0 : index
    %c0_21 = arith.constant 0 : index
    %c0_22 = arith.constant 0 : index
    %c0_23 = arith.constant 0 : index
    %70 = vector.load %arg4[%c0_20, %c0_21, %c0_22, %c0_23] : memref<2x2x32x16xf32, #tpu.memory_space<vmem>>, vector<1x1x32x16xf32>
    %71 = vector.shape_cast %70 : vector<1x1x32x16xf32> to vector<32x16xf32>
    %cst_24 = arith.constant dense<0.000000e+00> : vector<48x16xf32>
    %72 = tpu.matmul %68, %71, %cst_24 {dimension_numbers = #tpu.dot_dimension_numbers<[1], [0], [0], [1], [0, 0, 1, 1], [], []>} : vector<48x32xf32>, vector<32x16xf32>, vector<48x16xf32> -> vector<48x16xf32>
    %c0_25 = arith.constant 0 : index
    %c0_26 = arith.constant 0 : index
    %c0_27 = arith.constant 0 : index
    %c0_28 = arith.constant 0 : index
    %73 = vector.load %arg5[%c0_25, %c0_26, %c0_27, %c0_28] : memref<2x2x32x16xf32, #tpu.memory_space<vmem>>, vector<1x1x32x16xf32>
    %74 = vector.shape_cast %73 : vector<1x1x32x16xf32> to vector<32x16xf32>
    %cst_29 = arith.constant dense<0.000000e+00> : vector<48x16xf32>
    %75 = tpu.matmul %68, %74, %cst_29 {dimension_numbers = #tpu.dot_dimension_numbers<[1], [0], [0], [1], [0, 0, 1, 1], [], []>} : vector<48x32xf32>, vector<32x16xf32>, vector<48x16xf32> -> vector<48x16xf32>
    %c0_30 = arith.constant 0 : index
    %c0_31 = arith.constant 0 : index
    %c0_32 = arith.constant 0 : index
    %c0_33 = arith.constant 0 : index
    %76 = vector.load %arg6[%c0_30, %c0_31, %c0_32, %c0_33] : memref<2x2x32x16xf32, #tpu.memory_space<vmem>>, vector<1x1x32x16xf32>
    %77 = vector.shape_cast %76 : vector<1x1x32x16xf32> to vector<32x16xf32>
    %cst_34 = arith.constant dense<0.000000e+00> : vector<48x16xf32>
    %78 = tpu.matmul %68, %77, %cst_34 {dimension_numbers = #tpu.dot_dimension_numbers<[1], [0], [0], [1], [0, 0, 1, 1], [], []>} : vector<48x32xf32>, vector<32x16xf32>, vector<48x16xf32> -> vector<48x16xf32>
    %cst_35 = arith.constant dense<0.000000e+00> : vector<48x48xf32>
    %79 = tpu.matmul %72, %75, %cst_35 {dimension_numbers = #tpu.dot_dimension_numbers<[1], [1], [0], [0], [0, 0, 1, 0], [], []>} : vector<48x16xf32>, vector<48x16xf32>, vector<48x48xf32> -> vector<48x48xf32>
    %80 = arith.addf %79, %38 : vector<48x48xf32>
    %cst_36 = arith.constant dense<0xFF800000> : vector<48xf32>
    %81 = vector.multi_reduction <maximumf>, %80, %cst_36 [1] : vector<48x48xf32> to vector<48xf32>
    %82 = vector.shape_cast %81 : vector<48xf32> to vector<48x1xf32>
    %83 = vector.broadcast %82 : vector<48x1xf32> to vector<48x48xf32>
    %84 = arith.subf %80, %83 : vector<48x48xf32>
    %85 = math.exp %84 : vector<48x48xf32>
    %cst_37 = arith.constant dense<0.000000e+00> : vector<48xf32>
    %86 = vector.multi_reduction <add>, %85, %cst_37 [1] : vector<48x48xf32> to vector<48xf32>
    %87 = vector.shape_cast %86 : vector<48xf32> to vector<48x1xf32>
    %88 = vector.broadcast %87 : vector<48x1xf32> to vector<48x48xf32>
    %89 = arith.divf %85, %88 : vector<48x48xf32>
    %cst_38 = arith.constant dense<0.000000e+00> : vector<48x16xf32>
    %90 = tpu.matmul %89, %78, %cst_38 {dimension_numbers = #tpu.dot_dimension_numbers<[1], [0], [0], [1], [0, 0, 1, 1], [], []>} : vector<48x48xf32>, vector<48x16xf32>, vector<48x16xf32> -> vector<48x16xf32>
    %c0_39 = arith.constant 0 : index
    %c0_40 = arith.constant 0 : index
    %c0_41 = arith.constant 0 : index
    %c0_42 = arith.constant 0 : index
    %91 = vector.load %arg7[%c0_39, %c0_40, %c0_41, %c0_42] : memref<2x2x16x32xf32, #tpu.memory_space<vmem>>, vector<1x1x16x32xf32>
    %92 = vector.shape_cast %91 : vector<1x1x16x32xf32> to vector<16x32xf32>
    %cst_43 = arith.constant dense<0.000000e+00> : vector<48x32xf32>
    %93 = tpu.matmul %90, %92, %cst_43 {dimension_numbers = #tpu.dot_dimension_numbers<[1], [0], [0], [1], [0, 0, 1, 1], [], []>} : vector<48x16xf32>, vector<16x32xf32>, vector<48x32xf32> -> vector<48x32xf32>
    %94 = arith.addf %69, %93 : vector<48x32xf32>
    %c0_44 = arith.constant 0 : index
    %c1 = arith.constant 1 : index
    %c0_45 = arith.constant 0 : index
    %c0_46 = arith.constant 0 : index
    %95 = vector.load %arg4[%c0_44, %c1, %c0_45, %c0_46] : memref<2x2x32x16xf32, #tpu.memory_space<vmem>>, vector<1x1x32x16xf32>
    %96 = vector.shape_cast %95 : vector<1x1x32x16xf32> to vector<32x16xf32>
    %cst_47 = arith.constant dense<0.000000e+00> : vector<48x16xf32>
    %97 = tpu.matmul %68, %96, %cst_47 {dimension_numbers = #tpu.dot_dimension_numbers<[1], [0], [0], [1], [0, 0, 1, 1], [], []>} : vector<48x32xf32>, vector<32x16xf32>, vector<48x16xf32> -> vector<48x16xf32>
    %c0_48 = arith.constant 0 : index
    %c1_49 = arith.constant 1 : index
    %c0_50 = arith.constant 0 : index
    %c0_51 = arith.constant 0 : index
    %98 = vector.load %arg5[%c0_48, %c1_49, %c0_50, %c0_51] : memref<2x2x32x16xf32, #tpu.memory_space<vmem>>, vector<1x1x32x16xf32>
    %99 = vector.shape_cast %98 : vector<1x1x32x16xf32> to vector<32x16xf32>
    %cst_52 = arith.constant dense<0.000000e+00> : vector<48x16xf32>
    %100 = tpu.matmul %68, %99, %cst_52 {dimension_numbers = #tpu.dot_dimension_numbers<[1], [0], [0], [1], [0, 0, 1, 1], [], []>} : vector<48x32xf32>, vector<32x16xf32>, vector<48x16xf32> -> vector<48x16xf32>
    %c0_53 = arith.constant 0 : index
    %c1_54 = arith.constant 1 : index
    %c0_55 = arith.constant 0 : index
    %c0_56 = arith.constant 0 : index
    %101 = vector.load %arg6[%c0_53, %c1_54, %c0_55, %c0_56] : memref<2x2x32x16xf32, #tpu.memory_space<vmem>>, vector<1x1x32x16xf32>
    %102 = vector.shape_cast %101 : vector<1x1x32x16xf32> to vector<32x16xf32>
    %cst_57 = arith.constant dense<0.000000e+00> : vector<48x16xf32>
    %103 = tpu.matmul %68, %102, %cst_57 {dimension_numbers = #tpu.dot_dimension_numbers<[1], [0], [0], [1], [0, 0, 1, 1], [], []>} : vector<48x32xf32>, vector<32x16xf32>, vector<48x16xf32> -> vector<48x16xf32>
    %cst_58 = arith.constant dense<0.000000e+00> : vector<48x48xf32>
    %104 = tpu.matmul %97, %100, %cst_58 {dimension_numbers = #tpu.dot_dimension_numbers<[1], [1], [0], [0], [0, 0, 1, 0], [], []>} : vector<48x16xf32>, vector<48x16xf32>, vector<48x48xf32> -> vector<48x48xf32>
    %105 = arith.addf %104, %38 : vector<48x48xf32>
    %cst_59 = arith.constant dense<0xFF800000> : vector<48xf32>
    %106 = vector.multi_reduction <maximumf>, %105, %cst_59 [1] : vector<48x48xf32> to vector<48xf32>
    %107 = vector.shape_cast %106 : vector<48xf32> to vector<48x1xf32>
    %108 = vector.broadcast %107 : vector<48x1xf32> to vector<48x48xf32>
    %109 = arith.subf %105, %108 : vector<48x48xf32>
    %110 = math.exp %109 : vector<48x48xf32>
    %cst_60 = arith.constant dense<0.000000e+00> : vector<48xf32>
    %111 = vector.multi_reduction <add>, %110, %cst_60 [1] : vector<48x48xf32> to vector<48xf32>
    %112 = vector.shape_cast %111 : vector<48xf32> to vector<48x1xf32>
    %113 = vector.broadcast %112 : vector<48x1xf32> to vector<48x48xf32>
    %114 = arith.divf %110, %113 : vector<48x48xf32>
    %cst_61 = arith.constant dense<0.000000e+00> : vector<48x16xf32>
    %115 = tpu.matmul %114, %103, %cst_61 {dimension_numbers = #tpu.dot_dimension_numbers<[1], [0], [0], [1], [0, 0, 1, 1], [], []>} : vector<48x48xf32>, vector<48x16xf32>, vector<48x16xf32> -> vector<48x16xf32>
    %c0_62 = arith.constant 0 : index
    %c1_63 = arith.constant 1 : index
    %c0_64 = arith.constant 0 : index
    %c0_65 = arith.constant 0 : index
    %116 = vector.load %arg7[%c0_62, %c1_63, %c0_64, %c0_65] : memref<2x2x16x32xf32, #tpu.memory_space<vmem>>, vector<1x1x16x32xf32>
    %117 = vector.shape_cast %116 : vector<1x1x16x32xf32> to vector<16x32xf32>
    %cst_66 = arith.constant dense<0.000000e+00> : vector<48x32xf32>
    %118 = tpu.matmul %115, %117, %cst_66 {dimension_numbers = #tpu.dot_dimension_numbers<[1], [0], [0], [1], [0, 0, 1, 1], [], []>} : vector<48x16xf32>, vector<16x32xf32>, vector<48x32xf32> -> vector<48x32xf32>
    %119 = arith.addf %94, %118 : vector<48x32xf32>
    %120 = arith.addf %0, %119 : vector<48x32xf32>
    %121 = vector.broadcast %45 : vector<1x32xf32> to vector<48x32xf32>
    %122 = arith.addf %120, %121 : vector<48x32xf32>
    %cst_67 = arith.constant dense<0.000000e+00> : vector<48xf32>
    %123 = vector.multi_reduction <add>, %122, %cst_67 [1] : vector<48x32xf32> to vector<48xf32>
    %124 = vector.shape_cast %123 : vector<48xf32> to vector<48x1xf32>
    %cst_68 = arith.constant 3.200000e+01 : f32
    %125 = vector.broadcast %cst_68 : f32 to vector<48x1xf32>
    %126 = arith.divf %124, %125 : vector<48x1xf32>
    %127 = vector.broadcast %126 : vector<48x1xf32> to vector<48x32xf32>
    %128 = arith.subf %122, %127 : vector<48x32xf32>
    %129 = arith.mulf %128, %128 : vector<48x32xf32>
    %cst_69 = arith.constant dense<0.000000e+00> : vector<48xf32>
    %130 = vector.multi_reduction <add>, %129, %cst_69 [1] : vector<48x32xf32> to vector<48xf32>
    %131 = vector.shape_cast %130 : vector<48xf32> to vector<48x1xf32>
    %cst_70 = arith.constant 3.200000e+01 : f32
    %132 = vector.broadcast %cst_70 : f32 to vector<48x1xf32>
    %133 = arith.divf %131, %132 : vector<48x1xf32>
    %134 = vector.broadcast %126 : vector<48x1xf32> to vector<48x32xf32>
    %135 = arith.subf %122, %134 : vector<48x32xf32>
    %cst_71 = arith.constant 9.99999974E-6 : f32
    %136 = vector.broadcast %cst_71 : f32 to vector<48x1xf32>
    %137 = arith.addf %133, %136 : vector<48x1xf32>
    %138 = math.rsqrt %137 : vector<48x1xf32>
    %139 = vector.broadcast %138 : vector<48x1xf32> to vector<48x32xf32>
    %140 = arith.mulf %135, %139 : vector<48x32xf32>
    %141 = vector.broadcast %43 : vector<1x32xf32> to vector<48x32xf32>
    %142 = arith.mulf %140, %141 : vector<48x32xf32>
    %143 = vector.broadcast %44 : vector<1x32xf32> to vector<48x32xf32>
    %144 = arith.addf %142, %143 : vector<48x32xf32>
    %c0_72 = arith.constant 0 : index
    %c0_73 = arith.constant 0 : index
    %c0_74 = arith.constant 0 : index
    %145 = vector.load %arg8[%c0_72, %c0_73, %c0_74] : memref<2x32x256xf32, #tpu.memory_space<vmem>>, vector<1x32x256xf32>
    %146 = vector.shape_cast %145 : vector<1x32x256xf32> to vector<32x256xf32>
    %cst_75 = arith.constant dense<0.000000e+00> : vector<48x256xf32>
    %147 = tpu.matmul %144, %146, %cst_75 {dimension_numbers = #tpu.dot_dimension_numbers<[1], [0], [0], [1], [0, 0, 1, 1], [], []>} : vector<48x32xf32>, vector<32x256xf32>, vector<48x256xf32> -> vector<48x256xf32>
    %c0_76 = arith.constant 0 : index
    %c0_77 = arith.constant 0 : index
    %c0_78 = arith.constant 0 : index
    %148 = vector.load %arg9[%c0_76, %c0_77, %c0_78] : memref<2x1x256xf32, #tpu.memory_space<vmem>>, vector<1x1x256xf32>
    %149 = vector.shape_cast %148 : vector<1x1x256xf32> to vector<1x256xf32>
    %150 = vector.broadcast %149 : vector<1x256xf32> to vector<48x256xf32>
    %151 = arith.addf %147, %150 : vector<48x256xf32>
    %152 = vector.extract_strided_slice %151 {offsets = [0, 0], sizes = [48, 128], strides = [1, 1]} : vector<48x256xf32> to vector<48x128xf32>
    %153 = vector.extract_strided_slice %151 {offsets = [0, 128], sizes = [48, 128], strides = [1, 1]} : vector<48x256xf32> to vector<48x128xf32>
    %cst_79 = arith.constant 5.000000e-01 : f32
    %154 = vector.broadcast %cst_79 : f32 to vector<48x128xf32>
    %155 = arith.mulf %154, %153 : vector<48x128xf32>
    %cst_80 = arith.constant 4.471500e-02 : f32
    %156 = vector.broadcast %cst_80 : f32 to vector<48x128xf32>
    %157 = arith.mulf %156, %153 : vector<48x128xf32>
    %158 = arith.mulf %157, %153 : vector<48x128xf32>
    %159 = arith.mulf %158, %153 : vector<48x128xf32>
    %160 = arith.addf %153, %159 : vector<48x128xf32>
    %cst_81 = arith.constant 0.797884583 : f32
    %161 = vector.broadcast %cst_81 : f32 to vector<48x128xf32>
    %162 = arith.mulf %161, %160 : vector<48x128xf32>
    %163 = math.tanh %162 : vector<48x128xf32>
    %cst_82 = arith.constant 1.000000e+00 : f32
    %164 = vector.broadcast %cst_82 : f32 to vector<48x128xf32>
    %165 = arith.addf %164, %163 : vector<48x128xf32>
    %166 = arith.mulf %155, %165 : vector<48x128xf32>
    %167 = arith.mulf %152, %166 : vector<48x128xf32>
    %c0_83 = arith.constant 0 : index
    %c0_84 = arith.constant 0 : index
    %c0_85 = arith.constant 0 : index
    %168 = vector.load %arg10[%c0_83, %c0_84, %c0_85] : memref<2x128x32xf32, #tpu.memory_space<vmem>>, vector<1x128x32xf32>
    %169 = vector.shape_cast %168 : vector<1x128x32xf32> to vector<128x32xf32>
    %cst_86 = arith.constant dense<0.000000e+00> : vector<48x32xf32>
    %170 = tpu.matmul %167, %169, %cst_86 {dimension_numbers = #tpu.dot_dimension_numbers<[1], [0], [0], [1], [0, 0, 1, 1], [], []>} : vector<48x128xf32>, vector<128x32xf32>, vector<48x32xf32> -> vector<48x32xf32>
    %171 = arith.addf %122, %170 : vector<48x32xf32>
    %172 = vector.broadcast %46 : vector<1x32xf32> to vector<48x32xf32>
    %173 = arith.addf %171, %172 : vector<48x32xf32>
    %c1_87 = arith.constant 1 : index
    %c0_88 = arith.constant 0 : index
    %c0_89 = arith.constant 0 : index
    %174 = vector.load %arg3[%c1_87, %c0_88, %c0_89] : memref<2x6x32xf32, #tpu.memory_space<vmem>>, vector<1x6x32xf32>
    %175 = vector.shape_cast %174 : vector<1x6x32xf32> to vector<6x32xf32>
    %176 = vector.extract_strided_slice %175 {offsets = [0, 0], sizes = [1, 32], strides = [1, 1]} : vector<6x32xf32> to vector<1x32xf32>
    %177 = vector.extract_strided_slice %175 {offsets = [1, 0], sizes = [1, 32], strides = [1, 1]} : vector<6x32xf32> to vector<1x32xf32>
    %178 = vector.extract_strided_slice %175 {offsets = [2, 0], sizes = [1, 32], strides = [1, 1]} : vector<6x32xf32> to vector<1x32xf32>
    %179 = vector.extract_strided_slice %175 {offsets = [3, 0], sizes = [1, 32], strides = [1, 1]} : vector<6x32xf32> to vector<1x32xf32>
    %180 = vector.extract_strided_slice %175 {offsets = [4, 0], sizes = [1, 32], strides = [1, 1]} : vector<6x32xf32> to vector<1x32xf32>
    %181 = vector.extract_strided_slice %175 {offsets = [5, 0], sizes = [1, 32], strides = [1, 1]} : vector<6x32xf32> to vector<1x32xf32>
    %cst_90 = arith.constant dense<0.000000e+00> : vector<48xf32>
    %182 = vector.multi_reduction <add>, %173, %cst_90 [1] : vector<48x32xf32> to vector<48xf32>
    %183 = vector.shape_cast %182 : vector<48xf32> to vector<48x1xf32>
    %cst_91 = arith.constant 3.200000e+01 : f32
    %184 = vector.broadcast %cst_91 : f32 to vector<48x1xf32>
    %185 = arith.divf %183, %184 : vector<48x1xf32>
    %186 = vector.broadcast %185 : vector<48x1xf32> to vector<48x32xf32>
    %187 = arith.subf %173, %186 : vector<48x32xf32>
    %188 = arith.mulf %187, %187 : vector<48x32xf32>
    %cst_92 = arith.constant dense<0.000000e+00> : vector<48xf32>
    %189 = vector.multi_reduction <add>, %188, %cst_92 [1] : vector<48x32xf32> to vector<48xf32>
    %190 = vector.shape_cast %189 : vector<48xf32> to vector<48x1xf32>
    %cst_93 = arith.constant 3.200000e+01 : f32
    %191 = vector.broadcast %cst_93 : f32 to vector<48x1xf32>
    %192 = arith.divf %190, %191 : vector<48x1xf32>
    %193 = vector.broadcast %185 : vector<48x1xf32> to vector<48x32xf32>
    %194 = arith.subf %173, %193 : vector<48x32xf32>
    %cst_94 = arith.constant 9.99999974E-6 : f32
    %195 = vector.broadcast %cst_94 : f32 to vector<48x1xf32>
    %196 = arith.addf %192, %195 : vector<48x1xf32>
    %197 = math.rsqrt %196 : vector<48x1xf32>
    %198 = vector.broadcast %197 : vector<48x1xf32> to vector<48x32xf32>
    %199 = arith.mulf %194, %198 : vector<48x32xf32>
    %200 = vector.broadcast %176 : vector<1x32xf32> to vector<48x32xf32>
    %201 = arith.mulf %199, %200 : vector<48x32xf32>
    %202 = vector.broadcast %177 : vector<1x32xf32> to vector<48x32xf32>
    %203 = arith.addf %201, %202 : vector<48x32xf32>
    %cst_95 = arith.constant 0.000000e+00 : f32
    %204 = vector.broadcast %cst_95 : f32 to vector<48x32xf32>
    %c1_96 = arith.constant 1 : index
    %c0_97 = arith.constant 0 : index
    %c0_98 = arith.constant 0 : index
    %c0_99 = arith.constant 0 : index
    %205 = vector.load %arg4[%c1_96, %c0_97, %c0_98, %c0_99] : memref<2x2x32x16xf32, #tpu.memory_space<vmem>>, vector<1x1x32x16xf32>
    %206 = vector.shape_cast %205 : vector<1x1x32x16xf32> to vector<32x16xf32>
    %cst_100 = arith.constant dense<0.000000e+00> : vector<48x16xf32>
    %207 = tpu.matmul %203, %206, %cst_100 {dimension_numbers = #tpu.dot_dimension_numbers<[1], [0], [0], [1], [0, 0, 1, 1], [], []>} : vector<48x32xf32>, vector<32x16xf32>, vector<48x16xf32> -> vector<48x16xf32>
    %c1_101 = arith.constant 1 : index
    %c0_102 = arith.constant 0 : index
    %c0_103 = arith.constant 0 : index
    %c0_104 = arith.constant 0 : index
    %208 = vector.load %arg5[%c1_101, %c0_102, %c0_103, %c0_104] : memref<2x2x32x16xf32, #tpu.memory_space<vmem>>, vector<1x1x32x16xf32>
    %209 = vector.shape_cast %208 : vector<1x1x32x16xf32> to vector<32x16xf32>
    %cst_105 = arith.constant dense<0.000000e+00> : vector<48x16xf32>
    %210 = tpu.matmul %203, %209, %cst_105 {dimension_numbers = #tpu.dot_dimension_numbers<[1], [0], [0], [1], [0, 0, 1, 1], [], []>} : vector<48x32xf32>, vector<32x16xf32>, vector<48x16xf32> -> vector<48x16xf32>
    %c1_106 = arith.constant 1 : index
    %c0_107 = arith.constant 0 : index
    %c0_108 = arith.constant 0 : index
    %c0_109 = arith.constant 0 : index
    %211 = vector.load %arg6[%c1_106, %c0_107, %c0_108, %c0_109] : memref<2x2x32x16xf32, #tpu.memory_space<vmem>>, vector<1x1x32x16xf32>
    %212 = vector.shape_cast %211 : vector<1x1x32x16xf32> to vector<32x16xf32>
    %cst_110 = arith.constant dense<0.000000e+00> : vector<48x16xf32>
    %213 = tpu.matmul %203, %212, %cst_110 {dimension_numbers = #tpu.dot_dimension_numbers<[1], [0], [0], [1], [0, 0, 1, 1], [], []>} : vector<48x32xf32>, vector<32x16xf32>, vector<48x16xf32> -> vector<48x16xf32>
    %cst_111 = arith.constant dense<0.000000e+00> : vector<48x48xf32>
    %214 = tpu.matmul %207, %210, %cst_111 {dimension_numbers = #tpu.dot_dimension_numbers<[1], [1], [0], [0], [0, 0, 1, 0], [], []>} : vector<48x16xf32>, vector<48x16xf32>, vector<48x48xf32> -> vector<48x48xf32>
    %215 = arith.addf %214, %38 : vector<48x48xf32>
    %cst_112 = arith.constant dense<0xFF800000> : vector<48xf32>
    %216 = vector.multi_reduction <maximumf>, %215, %cst_112 [1] : vector<48x48xf32> to vector<48xf32>
    %217 = vector.shape_cast %216 : vector<48xf32> to vector<48x1xf32>
    %218 = vector.broadcast %217 : vector<48x1xf32> to vector<48x48xf32>
    %219 = arith.subf %215, %218 : vector<48x48xf32>
    %220 = math.exp %219 : vector<48x48xf32>
    %cst_113 = arith.constant dense<0.000000e+00> : vector<48xf32>
    %221 = vector.multi_reduction <add>, %220, %cst_113 [1] : vector<48x48xf32> to vector<48xf32>
    %222 = vector.shape_cast %221 : vector<48xf32> to vector<48x1xf32>
    %223 = vector.broadcast %222 : vector<48x1xf32> to vector<48x48xf32>
    %224 = arith.divf %220, %223 : vector<48x48xf32>
    %cst_114 = arith.constant dense<0.000000e+00> : vector<48x16xf32>
    %225 = tpu.matmul %224, %213, %cst_114 {dimension_numbers = #tpu.dot_dimension_numbers<[1], [0], [0], [1], [0, 0, 1, 1], [], []>} : vector<48x48xf32>, vector<48x16xf32>, vector<48x16xf32> -> vector<48x16xf32>
    %c1_115 = arith.constant 1 : index
    %c0_116 = arith.constant 0 : index
    %c0_117 = arith.constant 0 : index
    %c0_118 = arith.constant 0 : index
    %226 = vector.load %arg7[%c1_115, %c0_116, %c0_117, %c0_118] : memref<2x2x16x32xf32, #tpu.memory_space<vmem>>, vector<1x1x16x32xf32>
    %227 = vector.shape_cast %226 : vector<1x1x16x32xf32> to vector<16x32xf32>
    %cst_119 = arith.constant dense<0.000000e+00> : vector<48x32xf32>
    %228 = tpu.matmul %225, %227, %cst_119 {dimension_numbers = #tpu.dot_dimension_numbers<[1], [0], [0], [1], [0, 0, 1, 1], [], []>} : vector<48x16xf32>, vector<16x32xf32>, vector<48x32xf32> -> vector<48x32xf32>
    %229 = arith.addf %204, %228 : vector<48x32xf32>
    %c1_120 = arith.constant 1 : index
    %c1_121 = arith.constant 1 : index
    %c0_122 = arith.constant 0 : index
    %c0_123 = arith.constant 0 : index
    %230 = vector.load %arg4[%c1_120, %c1_121, %c0_122, %c0_123] : memref<2x2x32x16xf32, #tpu.memory_space<vmem>>, vector<1x1x32x16xf32>
    %231 = vector.shape_cast %230 : vector<1x1x32x16xf32> to vector<32x16xf32>
    %cst_124 = arith.constant dense<0.000000e+00> : vector<48x16xf32>
    %232 = tpu.matmul %203, %231, %cst_124 {dimension_numbers = #tpu.dot_dimension_numbers<[1], [0], [0], [1], [0, 0, 1, 1], [], []>} : vector<48x32xf32>, vector<32x16xf32>, vector<48x16xf32> -> vector<48x16xf32>
    %c1_125 = arith.constant 1 : index
    %c1_126 = arith.constant 1 : index
    %c0_127 = arith.constant 0 : index
    %c0_128 = arith.constant 0 : index
    %233 = vector.load %arg5[%c1_125, %c1_126, %c0_127, %c0_128] : memref<2x2x32x16xf32, #tpu.memory_space<vmem>>, vector<1x1x32x16xf32>
    %234 = vector.shape_cast %233 : vector<1x1x32x16xf32> to vector<32x16xf32>
    %cst_129 = arith.constant dense<0.000000e+00> : vector<48x16xf32>
    %235 = tpu.matmul %203, %234, %cst_129 {dimension_numbers = #tpu.dot_dimension_numbers<[1], [0], [0], [1], [0, 0, 1, 1], [], []>} : vector<48x32xf32>, vector<32x16xf32>, vector<48x16xf32> -> vector<48x16xf32>
    %c1_130 = arith.constant 1 : index
    %c1_131 = arith.constant 1 : index
    %c0_132 = arith.constant 0 : index
    %c0_133 = arith.constant 0 : index
    %236 = vector.load %arg6[%c1_130, %c1_131, %c0_132, %c0_133] : memref<2x2x32x16xf32, #tpu.memory_space<vmem>>, vector<1x1x32x16xf32>
    %237 = vector.shape_cast %236 : vector<1x1x32x16xf32> to vector<32x16xf32>
    %cst_134 = arith.constant dense<0.000000e+00> : vector<48x16xf32>
    %238 = tpu.matmul %203, %237, %cst_134 {dimension_numbers = #tpu.dot_dimension_numbers<[1], [0], [0], [1], [0, 0, 1, 1], [], []>} : vector<48x32xf32>, vector<32x16xf32>, vector<48x16xf32> -> vector<48x16xf32>
    %cst_135 = arith.constant dense<0.000000e+00> : vector<48x48xf32>
    %239 = tpu.matmul %232, %235, %cst_135 {dimension_numbers = #tpu.dot_dimension_numbers<[1], [1], [0], [0], [0, 0, 1, 0], [], []>} : vector<48x16xf32>, vector<48x16xf32>, vector<48x48xf32> -> vector<48x48xf32>
    %240 = arith.addf %239, %38 : vector<48x48xf32>
    %cst_136 = arith.constant dense<0xFF800000> : vector<48xf32>
    %241 = vector.multi_reduction <maximumf>, %240, %cst_136 [1] : vector<48x48xf32> to vector<48xf32>
    %242 = vector.shape_cast %241 : vector<48xf32> to vector<48x1xf32>
    %243 = vector.broadcast %242 : vector<48x1xf32> to vector<48x48xf32>
    %244 = arith.subf %240, %243 : vector<48x48xf32>
    %245 = math.exp %244 : vector<48x48xf32>
    %cst_137 = arith.constant dense<0.000000e+00> : vector<48xf32>
    %246 = vector.multi_reduction <add>, %245, %cst_137 [1] : vector<48x48xf32> to vector<48xf32>
    %247 = vector.shape_cast %246 : vector<48xf32> to vector<48x1xf32>
    %248 = vector.broadcast %247 : vector<48x1xf32> to vector<48x48xf32>
    %249 = arith.divf %245, %248 : vector<48x48xf32>
    %cst_138 = arith.constant dense<0.000000e+00> : vector<48x16xf32>
    %250 = tpu.matmul %249, %238, %cst_138 {dimension_numbers = #tpu.dot_dimension_numbers<[1], [0], [0], [1], [0, 0, 1, 1], [], []>} : vector<48x48xf32>, vector<48x16xf32>, vector<48x16xf32> -> vector<48x16xf32>
    %c1_139 = arith.constant 1 : index
    %c1_140 = arith.constant 1 : index
    %c0_141 = arith.constant 0 : index
    %c0_142 = arith.constant 0 : index
    %251 = vector.load %arg7[%c1_139, %c1_140, %c0_141, %c0_142] : memref<2x2x16x32xf32, #tpu.memory_space<vmem>>, vector<1x1x16x32xf32>
    %252 = vector.shape_cast %251 : vector<1x1x16x32xf32> to vector<16x32xf32>
    %cst_143 = arith.constant dense<0.000000e+00> : vector<48x32xf32>
    %253 = tpu.matmul %250, %252, %cst_143 {dimension_numbers = #tpu.dot_dimension_numbers<[1], [0], [0], [1], [0, 0, 1, 1], [], []>} : vector<48x16xf32>, vector<16x32xf32>, vector<48x32xf32> -> vector<48x32xf32>
    %254 = arith.addf %229, %253 : vector<48x32xf32>
    %255 = arith.addf %173, %254 : vector<48x32xf32>
    %256 = vector.broadcast %180 : vector<1x32xf32> to vector<48x32xf32>
    %257 = arith.addf %255, %256 : vector<48x32xf32>
    %cst_144 = arith.constant dense<0.000000e+00> : vector<48xf32>
    %258 = vector.multi_reduction <add>, %257, %cst_144 [1] : vector<48x32xf32> to vector<48xf32>
    %259 = vector.shape_cast %258 : vector<48xf32> to vector<48x1xf32>
    %cst_145 = arith.constant 3.200000e+01 : f32
    %260 = vector.broadcast %cst_145 : f32 to vector<48x1xf32>
    %261 = arith.divf %259, %260 : vector<48x1xf32>
    %262 = vector.broadcast %261 : vector<48x1xf32> to vector<48x32xf32>
    %263 = arith.subf %257, %262 : vector<48x32xf32>
    %264 = arith.mulf %263, %263 : vector<48x32xf32>
    %cst_146 = arith.constant dense<0.000000e+00> : vector<48xf32>
    %265 = vector.multi_reduction <add>, %264, %cst_146 [1] : vector<48x32xf32> to vector<48xf32>
    %266 = vector.shape_cast %265 : vector<48xf32> to vector<48x1xf32>
    %cst_147 = arith.constant 3.200000e+01 : f32
    %267 = vector.broadcast %cst_147 : f32 to vector<48x1xf32>
    %268 = arith.divf %266, %267 : vector<48x1xf32>
    %269 = vector.broadcast %261 : vector<48x1xf32> to vector<48x32xf32>
    %270 = arith.subf %257, %269 : vector<48x32xf32>
    %cst_148 = arith.constant 9.99999974E-6 : f32
    %271 = vector.broadcast %cst_148 : f32 to vector<48x1xf32>
    %272 = arith.addf %268, %271 : vector<48x1xf32>
    %273 = math.rsqrt %272 : vector<48x1xf32>
    %274 = vector.broadcast %273 : vector<48x1xf32> to vector<48x32xf32>
    %275 = arith.mulf %270, %274 : vector<48x32xf32>
    %276 = vector.broadcast %178 : vector<1x32xf32> to vector<48x32xf32>
    %277 = arith.mulf %275, %276 : vector<48x32xf32>
    %278 = vector.broadcast %179 : vector<1x32xf32> to vector<48x32xf32>
    %279 = arith.addf %277, %278 : vector<48x32xf32>
    %c1_149 = arith.constant 1 : index
    %c0_150 = arith.constant 0 : index
    %c0_151 = arith.constant 0 : index
    %280 = vector.load %arg8[%c1_149, %c0_150, %c0_151] : memref<2x32x256xf32, #tpu.memory_space<vmem>>, vector<1x32x256xf32>
    %281 = vector.shape_cast %280 : vector<1x32x256xf32> to vector<32x256xf32>
    %cst_152 = arith.constant dense<0.000000e+00> : vector<48x256xf32>
    %282 = tpu.matmul %279, %281, %cst_152 {dimension_numbers = #tpu.dot_dimension_numbers<[1], [0], [0], [1], [0, 0, 1, 1], [], []>} : vector<48x32xf32>, vector<32x256xf32>, vector<48x256xf32> -> vector<48x256xf32>
    %c1_153 = arith.constant 1 : index
    %c0_154 = arith.constant 0 : index
    %c0_155 = arith.constant 0 : index
    %283 = vector.load %arg9[%c1_153, %c0_154, %c0_155] : memref<2x1x256xf32, #tpu.memory_space<vmem>>, vector<1x1x256xf32>
    %284 = vector.shape_cast %283 : vector<1x1x256xf32> to vector<1x256xf32>
    %285 = vector.broadcast %284 : vector<1x256xf32> to vector<48x256xf32>
    %286 = arith.addf %282, %285 : vector<48x256xf32>
    %287 = vector.extract_strided_slice %286 {offsets = [0, 0], sizes = [48, 128], strides = [1, 1]} : vector<48x256xf32> to vector<48x128xf32>
    %288 = vector.extract_strided_slice %286 {offsets = [0, 128], sizes = [48, 128], strides = [1, 1]} : vector<48x256xf32> to vector<48x128xf32>
    %cst_156 = arith.constant 5.000000e-01 : f32
    %289 = vector.broadcast %cst_156 : f32 to vector<48x128xf32>
    %290 = arith.mulf %289, %288 : vector<48x128xf32>
    %cst_157 = arith.constant 4.471500e-02 : f32
    %291 = vector.broadcast %cst_157 : f32 to vector<48x128xf32>
    %292 = arith.mulf %291, %288 : vector<48x128xf32>
    %293 = arith.mulf %292, %288 : vector<48x128xf32>
    %294 = arith.mulf %293, %288 : vector<48x128xf32>
    %295 = arith.addf %288, %294 : vector<48x128xf32>
    %cst_158 = arith.constant 0.797884583 : f32
    %296 = vector.broadcast %cst_158 : f32 to vector<48x128xf32>
    %297 = arith.mulf %296, %295 : vector<48x128xf32>
    %298 = math.tanh %297 : vector<48x128xf32>
    %cst_159 = arith.constant 1.000000e+00 : f32
    %299 = vector.broadcast %cst_159 : f32 to vector<48x128xf32>
    %300 = arith.addf %299, %298 : vector<48x128xf32>
    %301 = arith.mulf %290, %300 : vector<48x128xf32>
    %302 = arith.mulf %287, %301 : vector<48x128xf32>
    %c1_160 = arith.constant 1 : index
    %c0_161 = arith.constant 0 : index
    %c0_162 = arith.constant 0 : index
    %303 = vector.load %arg10[%c1_160, %c0_161, %c0_162] : memref<2x128x32xf32, #tpu.memory_space<vmem>>, vector<1x128x32xf32>
    %304 = vector.shape_cast %303 : vector<1x128x32xf32> to vector<128x32xf32>
    %cst_163 = arith.constant dense<0.000000e+00> : vector<48x32xf32>
    %305 = tpu.matmul %302, %304, %cst_163 {dimension_numbers = #tpu.dot_dimension_numbers<[1], [0], [0], [1], [0, 0, 1, 1], [], []>} : vector<48x128xf32>, vector<128x32xf32>, vector<48x32xf32> -> vector<48x32xf32>
    %306 = arith.addf %257, %305 : vector<48x32xf32>
    %307 = vector.broadcast %181 : vector<1x32xf32> to vector<48x32xf32>
    %308 = arith.addf %306, %307 : vector<48x32xf32>
    %c0_164 = arith.constant 0 : index
    %c0_165 = arith.constant 0 : index
    %309 = vector.load %arg11[%c0_164, %c0_165] : memref<2x8xf32, #tpu.memory_space<vmem>>, vector<2x8xf32>
    %c0_166 = arith.constant 0 : index
    %c0_167 = arith.constant 0 : index
    %310 = vector.load %arg2[%c0_166, %c0_167] : memref<8x8xf32, #tpu.memory_space<vmem>>, vector<8x8xf32>
    %311 = vector.extract_strided_slice %309 {offsets = [0, 0], sizes = [1, 8], strides = [1, 1]} : vector<2x8xf32> to vector<1x8xf32>
    %312 = vector.extract_strided_slice %309 {offsets = [1, 0], sizes = [1, 8], strides = [1, 1]} : vector<2x8xf32> to vector<1x8xf32>
    %cst_168 = arith.constant dense<0.000000e+00> : vector<8xf32>
    %313 = vector.multi_reduction <add>, %310, %cst_168 [1] : vector<8x8xf32> to vector<8xf32>
    %314 = vector.shape_cast %313 : vector<8xf32> to vector<8x1xf32>
    %cst_169 = arith.constant 8.000000e+00 : f32
    %315 = vector.broadcast %cst_169 : f32 to vector<8x1xf32>
    %316 = arith.divf %314, %315 : vector<8x1xf32>
    %317 = vector.broadcast %316 : vector<8x1xf32> to vector<8x8xf32>
    %318 = arith.subf %310, %317 : vector<8x8xf32>
    %319 = arith.mulf %318, %318 : vector<8x8xf32>
    %cst_170 = arith.constant dense<0.000000e+00> : vector<8xf32>
    %320 = vector.multi_reduction <add>, %319, %cst_170 [1] : vector<8x8xf32> to vector<8xf32>
    %321 = vector.shape_cast %320 : vector<8xf32> to vector<8x1xf32>
    %cst_171 = arith.constant 8.000000e+00 : f32
    %322 = vector.broadcast %cst_171 : f32 to vector<8x1xf32>
    %323 = arith.divf %321, %322 : vector<8x1xf32>
    %324 = vector.broadcast %316 : vector<8x1xf32> to vector<8x8xf32>
    %325 = arith.subf %310, %324 : vector<8x8xf32>
    %cst_172 = arith.constant 9.99999974E-6 : f32
    %326 = vector.broadcast %cst_172 : f32 to vector<8x1xf32>
    %327 = arith.addf %323, %326 : vector<8x1xf32>
    %328 = math.rsqrt %327 : vector<8x1xf32>
    %329 = vector.broadcast %328 : vector<8x1xf32> to vector<8x8xf32>
    %330 = arith.mulf %325, %329 : vector<8x8xf32>
    %331 = vector.broadcast %311 : vector<1x8xf32> to vector<8x8xf32>
    %332 = arith.mulf %330, %331 : vector<8x8xf32>
    %333 = vector.broadcast %312 : vector<1x8xf32> to vector<8x8xf32>
    %334 = arith.addf %332, %333 : vector<8x8xf32>
    %c0_173 = arith.constant 0 : index
    %c0_174 = arith.constant 0 : index
    %335 = vector.load %arg13[%c0_173, %c0_174] : memref<8x100xf32, #tpu.memory_space<vmem>>, vector<8x100xf32>
    %cst_175 = arith.constant dense<0.000000e+00> : vector<8x100xf32>
    %336 = tpu.matmul %334, %335, %cst_175 {dimension_numbers = #tpu.dot_dimension_numbers<[1], [0], [0], [1], [0, 0, 1, 1], [], []>} : vector<8x8xf32>, vector<8x100xf32>, vector<8x100xf32> -> vector<8x100xf32>
    %c0_176 = arith.constant 0 : index
    %c0_177 = arith.constant 0 : index
    %337 = vector.load %arg14[%c0_176, %c0_177] : memref<1x100xf32, #tpu.memory_space<vmem>>, vector<1x100xf32>
    %338 = vector.broadcast %337 : vector<1x100xf32> to vector<8x100xf32>
    %339 = arith.addf %336, %338 : vector<8x100xf32>
    %340 = vector.extract_strided_slice %308 {offsets = [0, 0], sizes = [8, 32], strides = [1, 1]} : vector<48x32xf32> to vector<8x32xf32>
    %c0_178 = arith.constant 0 : index
    %c0_179 = arith.constant 0 : index
    %c0_180 = arith.constant 0 : index
    %341 = vector.load %arg12[%c0_178, %c0_179, %c0_180] : memref<6x32x100xf32, #tpu.memory_space<vmem>>, vector<1x32x100xf32>
    %342 = vector.shape_cast %341 : vector<1x32x100xf32> to vector<32x100xf32>
    %cst_181 = arith.constant dense<0.000000e+00> : vector<8x100xf32>
    %343 = tpu.matmul %340, %342, %cst_181 {dimension_numbers = #tpu.dot_dimension_numbers<[1], [0], [0], [1], [0, 0, 1, 1], [], []>} : vector<8x32xf32>, vector<32x100xf32>, vector<8x100xf32> -> vector<8x100xf32>
    %344 = arith.addf %339, %343 : vector<8x100xf32>
    %345 = vector.extract_strided_slice %308 {offsets = [8, 0], sizes = [8, 32], strides = [1, 1]} : vector<48x32xf32> to vector<8x32xf32>
    %c1_182 = arith.constant 1 : index
    %c0_183 = arith.constant 0 : index
    %c0_184 = arith.constant 0 : index
    %346 = vector.load %arg12[%c1_182, %c0_183, %c0_184] : memref<6x32x100xf32, #tpu.memory_space<vmem>>, vector<1x32x100xf32>
    %347 = vector.shape_cast %346 : vector<1x32x100xf32> to vector<32x100xf32>
    %cst_185 = arith.constant dense<0.000000e+00> : vector<8x100xf32>
    %348 = tpu.matmul %345, %347, %cst_185 {dimension_numbers = #tpu.dot_dimension_numbers<[1], [0], [0], [1], [0, 0, 1, 1], [], []>} : vector<8x32xf32>, vector<32x100xf32>, vector<8x100xf32> -> vector<8x100xf32>
    %349 = arith.addf %344, %348 : vector<8x100xf32>
    %350 = vector.extract_strided_slice %308 {offsets = [16, 0], sizes = [8, 32], strides = [1, 1]} : vector<48x32xf32> to vector<8x32xf32>
    %c2 = arith.constant 2 : index
    %c0_186 = arith.constant 0 : index
    %c0_187 = arith.constant 0 : index
    %351 = vector.load %arg12[%c2, %c0_186, %c0_187] : memref<6x32x100xf32, #tpu.memory_space<vmem>>, vector<1x32x100xf32>
    %352 = vector.shape_cast %351 : vector<1x32x100xf32> to vector<32x100xf32>
    %cst_188 = arith.constant dense<0.000000e+00> : vector<8x100xf32>
    %353 = tpu.matmul %350, %352, %cst_188 {dimension_numbers = #tpu.dot_dimension_numbers<[1], [0], [0], [1], [0, 0, 1, 1], [], []>} : vector<8x32xf32>, vector<32x100xf32>, vector<8x100xf32> -> vector<8x100xf32>
    %354 = arith.addf %349, %353 : vector<8x100xf32>
    %355 = vector.extract_strided_slice %308 {offsets = [24, 0], sizes = [8, 32], strides = [1, 1]} : vector<48x32xf32> to vector<8x32xf32>
    %c3 = arith.constant 3 : index
    %c0_189 = arith.constant 0 : index
    %c0_190 = arith.constant 0 : index
    %356 = vector.load %arg12[%c3, %c0_189, %c0_190] : memref<6x32x100xf32, #tpu.memory_space<vmem>>, vector<1x32x100xf32>
    %357 = vector.shape_cast %356 : vector<1x32x100xf32> to vector<32x100xf32>
    %cst_191 = arith.constant dense<0.000000e+00> : vector<8x100xf32>
    %358 = tpu.matmul %355, %357, %cst_191 {dimension_numbers = #tpu.dot_dimension_numbers<[1], [0], [0], [1], [0, 0, 1, 1], [], []>} : vector<8x32xf32>, vector<32x100xf32>, vector<8x100xf32> -> vector<8x100xf32>
    %359 = arith.addf %354, %358 : vector<8x100xf32>
    %360 = vector.extract_strided_slice %308 {offsets = [32, 0], sizes = [8, 32], strides = [1, 1]} : vector<48x32xf32> to vector<8x32xf32>
    %c4 = arith.constant 4 : index
    %c0_192 = arith.constant 0 : index
    %c0_193 = arith.constant 0 : index
    %361 = vector.load %arg12[%c4, %c0_192, %c0_193] : memref<6x32x100xf32, #tpu.memory_space<vmem>>, vector<1x32x100xf32>
    %362 = vector.shape_cast %361 : vector<1x32x100xf32> to vector<32x100xf32>
    %cst_194 = arith.constant dense<0.000000e+00> : vector<8x100xf32>
    %363 = tpu.matmul %360, %362, %cst_194 {dimension_numbers = #tpu.dot_dimension_numbers<[1], [0], [0], [1], [0, 0, 1, 1], [], []>} : vector<8x32xf32>, vector<32x100xf32>, vector<8x100xf32> -> vector<8x100xf32>
    %364 = arith.addf %359, %363 : vector<8x100xf32>
    %365 = vector.extract_strided_slice %308 {offsets = [40, 0], sizes = [8, 32], strides = [1, 1]} : vector<48x32xf32> to vector<8x32xf32>
    %c5 = arith.constant 5 : index
    %c0_195 = arith.constant 0 : index
    %c0_196 = arith.constant 0 : index
    %366 = vector.load %arg12[%c5, %c0_195, %c0_196] : memref<6x32x100xf32, #tpu.memory_space<vmem>>, vector<1x32x100xf32>
    %367 = vector.shape_cast %366 : vector<1x32x100xf32> to vector<32x100xf32>
    %cst_197 = arith.constant dense<0.000000e+00> : vector<8x100xf32>
    %368 = tpu.matmul %365, %367, %cst_197 {dimension_numbers = #tpu.dot_dimension_numbers<[1], [0], [0], [1], [0, 0, 1, 1], [], []>} : vector<8x32xf32>, vector<32x100xf32>, vector<8x100xf32> -> vector<8x100xf32>
    %369 = arith.addf %364, %368 : vector<8x100xf32>
    %cst_198 = arith.constant 0.000000e+00 : f32
    %370 = vector.broadcast %cst_198 : f32 to vector<8x100xf32>
    %371 = arith.maximumf %369, %370 : vector<8x100xf32>
    %c0_199 = arith.constant 0 : index
    %c0_200 = arith.constant 0 : index
    %372 = vector.load %arg15[%c0_199, %c0_200] : memref<100x50xf32, #tpu.memory_space<vmem>>, vector<100x50xf32>
    %cst_201 = arith.constant dense<0.000000e+00> : vector<8x50xf32>
    %373 = tpu.matmul %371, %372, %cst_201 {dimension_numbers = #tpu.dot_dimension_numbers<[1], [0], [0], [1], [0, 0, 1, 1], [], []>} : vector<8x100xf32>, vector<100x50xf32>, vector<8x50xf32> -> vector<8x50xf32>
    %c0_202 = arith.constant 0 : index
    %c0_203 = arith.constant 0 : index
    %374 = vector.load %arg16[%c0_202, %c0_203] : memref<1x50xf32, #tpu.memory_space<vmem>>, vector<1x50xf32>
    %375 = vector.broadcast %374 : vector<1x50xf32> to vector<8x50xf32>
    %376 = arith.addf %373, %375 : vector<8x50xf32>
    %cst_204 = arith.constant 0.000000e+00 : f32
    %377 = vector.broadcast %cst_204 : f32 to vector<8x50xf32>
    %378 = arith.maximumf %376, %377 : vector<8x50xf32>
    %c0_205 = arith.constant 0 : index
    %c0_206 = arith.constant 0 : index
    %379 = vector.load %arg17[%c0_205, %c0_206] : memref<50x3xf32, #tpu.memory_space<vmem>>, vector<50x3xf32>
    %cst_207 = arith.constant dense<0.000000e+00> : vector<8x3xf32>
    %380 = tpu.matmul %378, %379, %cst_207 {dimension_numbers = #tpu.dot_dimension_numbers<[1], [0], [0], [1], [0, 0, 1, 1], [], []>} : vector<8x50xf32>, vector<50x3xf32>, vector<8x3xf32> -> vector<8x3xf32>
    %c0_208 = arith.constant 0 : index
    %c0_209 = arith.constant 0 : index
    %381 = vector.load %arg18[%c0_208, %c0_209] : memref<1x3xf32, #tpu.memory_space<vmem>>, vector<1x3xf32>
    %382 = vector.broadcast %381 : vector<1x3xf32> to vector<8x3xf32>
    %383 = arith.addf %380, %382 : vector<8x3xf32>
    %cst_210 = arith.constant dense<0xFF800000> : vector<8xf32>
    %384 = vector.multi_reduction <maximumf>, %383, %cst_210 [1] : vector<8x3xf32> to vector<8xf32>
    %385 = vector.shape_cast %384 : vector<8xf32> to vector<8x1xf32>
    %386 = vector.broadcast %385 : vector<8x1xf32> to vector<8x3xf32>
    %387 = arith.subf %383, %386 : vector<8x3xf32>
    %388 = math.exp %387 : vector<8x3xf32>
    %cst_211 = arith.constant dense<0.000000e+00> : vector<8xf32>
    %389 = vector.multi_reduction <add>, %388, %cst_211 [1] : vector<8x3xf32> to vector<8xf32>
    %390 = vector.shape_cast %389 : vector<8xf32> to vector<8x1xf32>
    %391 = vector.broadcast %390 : vector<8x1xf32> to vector<8x3xf32>
    %392 = arith.divf %388, %391 : vector<8x3xf32>
    %c0_212 = arith.constant 0 : index
    %c0_213 = arith.constant 0 : index
    %393 = vector.load %arg19[%c0_212, %c0_213] : memref<8x3xf32, #tpu.memory_space<vmem>>, vector<8x3xf32>
    tpu.vector_store %arg19[%c0_212, %c0_213], %392 {strides = array<i32>} : memref<8x3xf32, #tpu.memory_space<vmem>>, vector<8x3xf32>,
    return
  }
  func.func @transform_0(%arg0: i32) -> (i32, i32) {
    %c0_i32 = arith.constant 0 : i32
    %c0_i32_0 = arith.constant 0 : i32
    %c0_i32_1 = arith.constant 0 : i32
    return %c0_i32, %c0_i32_0 : i32, i32
  }
  func.func @transform_1(%arg0: i32) -> (i32, i32) {
    %c0_i32 = arith.constant 0 : i32
    %c0_i32_0 = arith.constant 0 : i32
    %c0_i32_1 = arith.constant 0 : i32
    return %c0_i32, %c0_i32_0 : i32, i32
  }
  func.func @transform_2(%arg0: i32) -> (i32, i32, i32) {
    %c0_i32 = arith.constant 0 : i32
    %c0_i32_0 = arith.constant 0 : i32
    %c0_i32_1 = arith.constant 0 : i32
    %c0_i32_2 = arith.constant 0 : i32
    return %c0_i32, %c0_i32_0, %c0_i32_1 : i32, i32, i32
  }
  func.func @transform_3(%arg0: i32) -> (i32, i32, i32, i32) {
    %c0_i32 = arith.constant 0 : i32
    %c0_i32_0 = arith.constant 0 : i32
    %c0_i32_1 = arith.constant 0 : i32
    %c0_i32_2 = arith.constant 0 : i32
    %c0_i32_3 = arith.constant 0 : i32
    return %c0_i32, %c0_i32_0, %c0_i32_1, %c0_i32_2 : i32, i32, i32, i32
  }
  func.func @transform_4(%arg0: i32) -> (i32, i32, i32, i32) {
    %c0_i32 = arith.constant 0 : i32
    %c0_i32_0 = arith.constant 0 : i32
    %c0_i32_1 = arith.constant 0 : i32
    %c0_i32_2 = arith.constant 0 : i32
    %c0_i32_3 = arith.constant 0 : i32
    return %c0_i32, %c0_i32_0, %c0_i32_1, %c0_i32_2 : i32, i32, i32, i32
  }
  func.func @transform_5(%arg0: i32) -> (i32, i32, i32, i32) {
    %c0_i32 = arith.constant 0 : i32
    %c0_i32_0 = arith.constant 0 : i32
    %c0_i32_1 = arith.constant 0 : i32
    %c0_i32_2 = arith.constant 0 : i32
    %c0_i32_3 = arith.constant 0 : i32
    return %c0_i32, %c0_i32_0, %c0_i32_1, %c0_i32_2 : i32, i32, i32, i32
  }
  func.func @transform_6(%arg0: i32) -> (i32, i32, i32, i32) {
    %c0_i32 = arith.constant 0 : i32
    %c0_i32_0 = arith.constant 0 : i32
    %c0_i32_1 = arith.constant 0 : i32
    %c0_i32_2 = arith.constant 0 : i32
    %c0_i32_3 = arith.constant 0 : i32
    return %c0_i32, %c0_i32_0, %c0_i32_1, %c0_i32_2 : i32, i32, i32, i32
  }
  func.func @transform_7(%arg0: i32) -> (i32, i32, i32) {
    %c0_i32 = arith.constant 0 : i32
    %c0_i32_0 = arith.constant 0 : i32
    %c0_i32_1 = arith.constant 0 : i32
    %c0_i32_2 = arith.constant 0 : i32
    return %c0_i32, %c0_i32_0, %c0_i32_1 : i32, i32, i32
  }
  func.func @transform_8(%arg0: i32) -> (i32, i32, i32) {
    %c0_i32 = arith.constant 0 : i32
    %c0_i32_0 = arith.constant 0 : i32
    %c0_i32_1 = arith.constant 0 : i32
    %c0_i32_2 = arith.constant 0 : i32
    return %c0_i32, %c0_i32_0, %c0_i32_1 : i32, i32, i32
  }
  func.func @transform_9(%arg0: i32) -> (i32, i32, i32) {
    %c0_i32 = arith.constant 0 : i32
    %c0_i32_0 = arith.constant 0 : i32
    %c0_i32_1 = arith.constant 0 : i32
    %c0_i32_2 = arith.constant 0 : i32
    return %c0_i32, %c0_i32_0, %c0_i32_1 : i32, i32, i32
  }
  func.func @transform_10(%arg0: i32) -> (i32, i32) {
    %c0_i32 = arith.constant 0 : i32
    %c0_i32_0 = arith.constant 0 : i32
    %c0_i32_1 = arith.constant 0 : i32
    return %c0_i32, %c0_i32_0 : i32, i32
  }
  func.func @transform_11(%arg0: i32) -> (i32, i32, i32) {
    %c0_i32 = arith.constant 0 : i32
    %c0_i32_0 = arith.constant 0 : i32
    %c0_i32_1 = arith.constant 0 : i32
    %c0_i32_2 = arith.constant 0 : i32
    return %c0_i32, %c0_i32_0, %c0_i32_1 : i32, i32, i32
  }
  func.func @transform_12(%arg0: i32) -> (i32, i32) {
    %c0_i32 = arith.constant 0 : i32
    %c0_i32_0 = arith.constant 0 : i32
    %c0_i32_1 = arith.constant 0 : i32
    return %c0_i32, %c0_i32_0 : i32, i32
  }
  func.func @transform_13(%arg0: i32) -> (i32, i32) {
    %c0_i32 = arith.constant 0 : i32
    %c0_i32_0 = arith.constant 0 : i32
    %c0_i32_1 = arith.constant 0 : i32
    return %c0_i32, %c0_i32_0 : i32, i32
  }
  func.func @transform_14(%arg0: i32) -> (i32, i32) {
    %c0_i32 = arith.constant 0 : i32
    %c0_i32_0 = arith.constant 0 : i32
    %c0_i32_1 = arith.constant 0 : i32
    return %c0_i32, %c0_i32_0 : i32, i32
  }
  func.func @transform_15(%arg0: i32) -> (i32, i32) {
    %c0_i32 = arith.constant 0 : i32
    %c0_i32_0 = arith.constant 0 : i32
    %c0_i32_1 = arith.constant 0 : i32
    return %c0_i32, %c0_i32_0 : i32, i32
  }
  func.func @transform_16(%arg0: i32) -> (i32, i32) {
    %c0_i32 = arith.constant 0 : i32
    %c0_i32_0 = arith.constant 0 : i32
    %c0_i32_1 = arith.constant 0 : i32
    return %c0_i32, %c0_i32_0 : i32, i32
  }
  func.func @transform_17(%arg0: i32) -> (i32, i32) {
    %c0_i32 = arith.constant 0 : i32
    %c0_i32_0 = arith.constant 0 : i32
    %c0_i32_1 = arith.constant 0 : i32
    return %c0_i32, %c0_i32_0 : i32, i32
  }
  func.func @transform_18(%arg0: i32) -> (i32, i32) {
    %c0_i32 = arith.constant 0 : i32
    %c0_i32_0 = arith.constant 0 : i32
    %c0_i32_1 = arith.constant 0 : i32
    return %c0_i32, %c0_i32_0 : i32, i32
  }
}

</mosaic_0001>

<bundles_post_ra>
// kernel: tab_transformer_forward.1
= control target key start
LH: loop header
LB: loop body
LE: loop exit
PB: predicated region body
PF: predicated region fallthrough
CT: control target
= control target key end

     0   :  { %vm171_vm0 = vcmask 261120   ;;  %v3896_v12 = vmov 32.0   ;;  %s5453_s0 = inlined_call_operand.vmem [shape: f32[48,32], index: 0, kind: input, shape index: {}]   ;;  %s5454_s3 = inlined_call_operand.vmem [shape: f32[2,2,32,16], index: 3, kind: input, shape index: {}]   ;;  %s5455_s4 = inlined_call_operand.vmem [shape: f32[2,2,32,16], index: 4, kind: input, shape index: {}]   ;;  %s5456_s5 = inlined_call_operand.vmem [shape: f32[2,2,32,16], index: 5, kind: input, shape index: {}]   ;;  %s5457_s2 = inlined_call_operand.vmem [shape: f32[2,6,32], index: 2, kind: input, shape index: {}]   ;;  %s5458_s6 = inlined_call_operand.vmem [shape: f32[2,2,16,32], index: 6, kind: input, shape index: {}]   ;;  %s5459_s7 = inlined_call_operand.vmem [shape: f32[2,32,256], index: 7, kind: input, shape index: {}]   ;;  %s5460_s9 = inlined_call_operand.vmem [shape: f32[2,128,32], index: 9, kind: input, shape index: {}]   ;;  %s5461_s8 = inlined_call_operand.vmem [shape: f32[2,1,256], index: 8, kind: input, shape index: {}]   ;;  %s5462_s1 = inlined_call_operand.vmem [shape: f32[8,8], index: 1, kind: input, shape index: {}]   ;;  %s5463_s12 = inlined_call_operand.vmem [shape: f32[8,100], index: 12, kind: input, shape index: {}]   ;;  %s5464_s10 = inlined_call_operand.vmem [shape: f32[2,8], index: 10, kind: input, shape index: {}]   ;;  %s5465_s11 = inlined_call_operand.vmem [shape: f32[6,32,100], index: 11, kind: input, shape index: {}]   ;;  %s5466_s13 = inlined_call_operand.vmem [shape: f32[1,100], index: 13, kind: input, shape index: {}]   ;;  %s5467_s15 = inlined_call_operand.vmem [shape: f32[1,50], index: 15, kind: input, shape index: {}]   ;;  %s5468_s14 = inlined_call_operand.vmem [shape: f32[100,50], index: 14, kind: input, shape index: {}]   ;;  %s5469_s16 = inlined_call_operand.vmem [shape: f32[50,3], index: 16, kind: input, shape index: {}]   ;;  %s5470_s17 = inlined_call_operand.vmem [shape: f32[1,3], index: 17, kind: input, shape index: {}]   ;;  %s5471_s18 = inlined_call_operand.vmem [shape: f32[8,3], index: 18, kind: output, shape index: {}]  }
   0x1   :  { %5475 = sst [smem:[#allocation2_spill]] %s5453_s0  ;;  %3710 = vrcp.f32 %v3896_v12  ;;  %v424_v63 = vld [vmem:[%s5456_s5 + $0x18] sm:$0xff] }
   0x2   :  { %5476 = sst [smem:[#allocation3_spill]] %s5454_s3 }
   0x3   :  { %5477 = sst [smem:[#allocation4_spill]] %s5455_s4 }
   0x4   :  { %s5478_s29 = sld [smem:[#allocation2_spill]] }
   0x5   :  { %s5479_s27 = sld [smem:[#allocation3_spill]] }
   0x6   :  { %s5480_s0 = sld [smem:[#allocation4_spill]] }
   0x7   :  { %v3711_v13 = vpop.eup %3710 }
   0x8   :  { %v191_v14 = vmul.f32 32.0, %v3711_v13  ;;  %vm195_vm1 = vweird.f32 %v3711_v13 }
   0xa   :  { %v63_v0 = vld [vmem:[%s5478_s29 + $0x20] sm:$0xff]  ;;  %v61_v1 = vld [vmem:[%s5478_s29 + $0x10] sm:$0xff]  ;;  %v64_v6 = vld [vmem:[%s5478_s29 + $0x28] sm:$0xff]  ;;  %v192_v15 = vsub.f32 1.0, %v191_v14 }
   0xb   :  { %v59_v2 = vld [vmem:[%s5478_s29] sm:$0xff]  ;;  %v184_v3 = vsel %vm171_vm0, %v63_v0, 0.0  ;;  %v178_v4 = vsel %vm171_vm0, %v61_v1, 0.0  ;;  %v62_v7 = vld [vmem:[%s5478_s29 + $0x18] sm:$0xff]  ;;  %v60_v8 = vld [vmem:[%s5478_s29 + $0x8] sm:$0xff]  ;;  %v187_v9 = vsel %vm171_vm0, %v64_v6, 0.0 }
   0xc   :  { %v172_v5 = vsel %vm171_vm0, %v59_v2, 0.0  ;;  %185 = vadd.xlane.f32.xlu2 %v184_v3  ;;  %179 = vadd.xlane.f32.xlu1 %v178_v4  ;;  %v181_v10 = vsel %vm171_vm0, %v62_v7, 0.0  ;;  %v175_v11 = vsel %vm171_vm0, %v60_v8, 0.0  ;;  %v193_v16 = vmul.f32 %v3711_v13, %v192_v15  ;;  %v328_v49 = vld [vmem:[%s5479_s27 + $0x18] sm:$0xff]  ;;  %v327_v51 = vld [vmem:[%s5479_s27 + $0x10] sm:$0xff]  ;;  %v326_v53 = vld [vmem:[%s5479_s27 + $0x8] sm:$0xff] }
   0xd   :  { %173 = vadd.xlane.f32.xlu0 %v172_v5  ;;  %v385_v50 = vld [vmem:[%s5480_s0 + $0x18] sm:$0xff]  ;;  %359 = vmatpush.msra.mxu0 %v328_v49  ;;  %v384_v52 = vld [vmem:[%s5480_s0 + $0x10] sm:$0xff]  ;;  %v383_v54 = vld [vmem:[%s5480_s0 + $0x8] sm:$0xff] }
   0xe   :  { %v194_v17 = vadd.f32 %v3711_v13, %v193_v16  ;;  %398 = vmatpush.msra.mxu1 %v385_v50  ;;  %3700 = vmatpush.msra.mxu2 %v328_v49  ;;  %v325_v55 = vld [vmem:[%s5479_s27] sm:$0xff]  ;;  %v423_v4 = vld [vmem:[%s5456_s5 + $0x10] sm:$0xff] }
   0xf   :  { %360 = vmatpush.msra.mxu0 %v327_v51  ;;  %v382_v56 = vld [vmem:[%s5480_s0] sm:$0xff] }
  0x10   :  { %v4018_v18 = vsel %vm195_vm1, %v3711_v13, %v194_v17  ;;  %399 = vmatpush.msra.mxu1 %v384_v52  ;;  %3701 = vmatpush.msra.mxu2 %v327_v51  ;;  %v421_v15 = vld [vmem:[%s5456_s5] sm:$0xff]  ;;  %v3466_v51 = vld [vmem:[%s5456_s5 + $0x28] sm:$0xff] }
  0x11   :  { %361 = vmatpush.msra.mxu0 %v326_v53 }
  0x12   :  { %400 = vmatpush.msra.mxu1 %v383_v54  ;;  %3702 = vmatpush.msra.mxu2 %v326_v53 }
  0x13   :  { %362 = vmatpush.msra.mxu0 %v325_v55 }
  0x14   :  { %188 = vadd.xlane.f32.xlu2 %v187_v9  ;;  %182 = vadd.xlane.f32.xlu1 %v181_v10  ;;  %v422_v9 = vld [vmem:[%s5456_s5 + $0x8] sm:$0xff] }
  0x15   :  { %176 = vadd.xlane.f32.xlu0 %v175_v11  ;;  %401 = vmatpush.msra.mxu1 %v382_v56 }
  0x16   :  { %3703 = vmatpush.msra.mxu2 %v325_v55 }
  0x18   :  { %437 = vmatpush.msrb.mxu2 %v424_v63 }
  0x1a   :  { %438 = vmatpush.msrb.mxu2 %v423_v4 }
  0x1c   :  { %439 = vmatpush.msrb.mxu2 %v422_v9  ;;  %v3447_v9 = vld [vmem:[%s5479_s27 + $0x30] sm:$0xff] }
  0x1e   :  { %440 = vmatpush.msrb.mxu2 %v421_v15 }
  0x7f   :  { %v186_v19 = vpop.xlane.xlu2 %185  ;;  %v180_v20 = vpop.xlane.xlu1 %179 }
  0x80   :  { %v199_v21 = vmul.f32 %v4018_v18, %v180_v20  ;;  %v174_v22 = vpop.xlane.xlu0 %173  ;;  %v201_v35 = vmul.f32 %v4018_v18, %v186_v19 }
  0x81   :  { %v197_v23 = vmul.f32 %v4018_v18, %v174_v22 }
  0x82   :  { %v4022_v24 = vsub.f32 %v61_v1, %v199_v21  ;;  %v4046_v42 = vsub.f32 %v63_v0, %v201_v35 }
  0x83   :  { %v4024_v25 = vsub.f32 %v59_v2, %v197_v23  ;;  %v170_v23 = vld [vmem:[%s5457_s2] sm:$0x3f] }
  0x84   :  { %v211_v26 = vmul.f32 %v4022_v24, %v4022_v24  ;;  %v213_v47 = vmul.f32 %v4046_v42, %v4046_v42 }
  0x85   :  { %v209_v27 = vmul.f32 %v4024_v25, %v4024_v25 }
  0x86   :  { %v221_v28 = vsel %vm171_vm0, %v211_v26, 0.0  ;;  %v227_v48 = vsel %vm171_vm0, %v213_v47, 0.0 }
  0x87   :  { %v189_v29 = vpop.xlane.xlu2 %188  ;;  %222 = vadd.xlane.f32.xlu2 %v221_v28  ;;  %v183_v30 = vpop.xlane.xlu1 %182  ;;  %v215_v31 = vsel %vm171_vm0, %v209_v27, 0.0 }
  0x88   :  { %v202_v32 = vmul.f32 %v4018_v18, %v189_v29  ;;  %v200_v33 = vmul.f32 %v4018_v18, %v183_v30  ;;  %216 = vadd.xlane.f32.xlu0 %v215_v31  ;;  %v177_v34 = vpop.xlane.xlu0 %176 }
  0x89   :  { %v198_v36 = vmul.f32 %v4018_v18, %v177_v34  ;;  %v4116_v34 = vperm.slane %v170_v23, 0 }
  0x8a   :  { %v4036_v37 = vsub.f32 %v64_v6, %v202_v32  ;;  %v4038_v38 = vsub.f32 %v62_v7, %v200_v33 }
  0x8b   :  { %v4040_v39 = vsub.f32 %v60_v8, %v198_v36 }
  0x8c   :  { %v214_v40 = vmul.f32 %v4036_v37, %v4036_v37  ;;  %v212_v41 = vmul.f32 %v4038_v38, %v4038_v38 }
  0x8d   :  { %v210_v43 = vmul.f32 %v4040_v39, %v4040_v39 }
  0x8e   :  { %v230_v44 = vsel %vm171_vm0, %v214_v40, 0.0  ;;  %v224_v45 = vsel %vm171_vm0, %v212_v41, 0.0  ;;  %v4120_v40 = vperm.slane %v170_v23, 1  ;;  %v3457_v23 = vld [vmem:[%s5480_s0 + $0x30] sm:$0xff] }
  0x8f   :  { %231 = vadd.xlane.f32.xlu2 %v230_v44  ;;  %v218_v46 = vsel %vm171_vm0, %v210_v43, 0.0 }
  0x90   :  { %225 = vadd.xlane.f32.xlu0 %v224_v45  ;;  %219 = vadd.xlane.f32.xlu1 %v218_v46 }
  0x98   :  { %228 = vadd.xlane.f32.xlu1 %v227_v48 }
  0xfa   :  { %v223_v57 = vpop.xlane.xlu2 %222 }
  0xfb   :  { %v235_v58 = vmul.f32 %v223_v57, %v4018_v18  ;;  %v217_v59 = vpop.xlane.xlu0 %216 }
  0xfc   :  { %v233_v60 = vmul.f32 %v217_v59, %v4018_v18 }
  0xfd   :  { %v4082_v61 = vadd.f32 1e-05, %v235_v58 }
  0xfe   :  { %v239_v62 = vadd.f32 1e-05, %v233_v60 }
  0xff   :  { %3712 = vrsqrt.f32 %v4082_v61  ;;  %vm271_vm7 = vweird.f32 %v4082_v61 }
 0x100   :  { %3714 = vrsqrt.f32 %v239_v62  ;;  %vm251_vm3 = vweird.f32 %v239_v62 }
 0x102   :  { %v232_v0 = vpop.xlane.xlu2 %231 }
 0x103   :  { %v238_v1 = vmul.f32 %v232_v0, %v4018_v18  ;;  %v220_v2 = vpop.xlane.xlu1 %219  ;;  %v226_v3 = vpop.xlane.xlu0 %225 }
 0x104   :  { %v234_v5 = vmul.f32 %v220_v2, %v4018_v18  ;;  %v236_v6 = vmul.f32 %v226_v3, %v4018_v18 }
 0x105   :  { %v4094_v7 = vpop.eup %3712  ;;  %v244_v8 = vadd.f32 1e-05, %v238_v1 }
 0x106   :  { %v3715_v10 = vpop.eup %3714  ;;  %v240_v11 = vadd.f32 1e-05, %v234_v5  ;;  %v4099_v12 = vadd.f32 1e-05, %v236_v6  ;;  %v266_v13 = vmul.f32 %v4094_v7, %v4082_v61  ;;  %vm272_vm8 = vweird.f32 %v4094_v7 }
 0x107   :  { %v246_v14 = vmul.f32 %v3715_v10, %v239_v62  ;;  %3716 = vrsqrt.f32 %v244_v8  ;;  %vm252_vm2 = vweird.f32 %v3715_v10  ;;  %vm301_vm5 = vweird.f32 %v244_v8  ;;  %vm4136_vm11 = vmor %vm271_vm7, %vm272_vm8 }
 0x108   :  { %3718 = vrsqrt.f32 %v240_v11  ;;  %v267_v17 = vmul.f32 %v4094_v7, %v266_v13  ;;  %vm253_vm4 = vmor %vm251_vm3, %vm252_vm2  ;;  %vm261_vm12 = vweird.f32 %v240_v11  ;;  %vm281_vm14 = vweird.f32 %v4099_v12 }
 0x109   :  { %v247_v16 = vmul.f32 %v3715_v10, %v246_v14  ;;  %3720 = vrsqrt.f32 %v4099_v12  ;;  %v3445_v14 = vld [vmem:[%s5479_s27 + $0x20] sm:$0xff]  ;;  %vm532_vm7 = vcmask 392192  }
 0x10a   :  { %v268_v31 = vmul.f32 0.5, %v267_v17 }
 0x10b   :  { %v248_v19 = vmul.f32 0.5, %v247_v16  ;;  %v229_v20 = vpop.xlane.xlu1 %228 }
 0x10c   :  { %v237_v21 = vmul.f32 %v229_v20, %v4018_v18  ;;  %v269_v46 = vsub.f32 1.5, %v268_v31 }
 0x10d   :  { %v3717_v22 = vpop.eup %3716  ;;  %v249_v26 = vsub.f32 1.5, %v248_v19 }
 0x10e   :  { %v3719_v27 = vpop.eup %3718  ;;  %v296_v28 = vmul.f32 %v3717_v22, %v244_v8  ;;  %v4112_v29 = vadd.f32 1e-05, %v237_v21  ;;  %vm302_vm6 = vweird.f32 %v3717_v22  ;;  %v270_v55 = vmul.f32 %v4094_v7, %v269_v46 }
 0x10f   :  { %v4114_v30 = vpop.eup %3720  ;;  %v250_v32 = vmul.f32 %v3715_v10, %v249_v26  ;;  %v256_v33 = vmul.f32 %v3719_v27, %v240_v11  ;;  %vm4128_vm9 = vmor %vm301_vm5, %vm302_vm6  ;;  %vm262_vm10 = vweird.f32 %v3719_v27  ;;  %v3446_v11 = vld [vmem:[%s5479_s27 + $0x28] sm:$0xff]  ;;  %vm460_vm5 = vcmask 130048  }
 0x110   :  { %v297_v35 = vmul.f32 %v3717_v22, %v296_v28  ;;  %v276_v36 = vmul.f32 %v4114_v30, %v4099_v12  ;;  %3722 = vrsqrt.f32 %v4112_v29  ;;  %vm263_vm13 = vmor %vm261_vm12, %vm262_vm10  ;;  %v274_v0 = vsel %vm4136_vm11, %v4094_v7, %v270_v55  ;;  %v3456_v26 = vld [vmem:[%s5480_s0 + $0x28] sm:$0xff]  ;;  %v3455_v28 = vld [vmem:[%s5480_s0 + $0x20] sm:$0xff] }
 0x111   :  { %v254_v41 = vsel %vm253_vm4, %v3715_v10, %v250_v32  ;;  %v257_v43 = vmul.f32 %v3719_v27, %v256_v33  ;;  %vm282_vm15 = vweird.f32 %v4114_v30  ;;  %vm291_vm2 = vweird.f32 %v4112_v29 }
 0x112   :  { %v305_v44 = vmul.f32 %v254_v41, %v4024_v25  ;;  %v298_v45 = vmul.f32 0.5, %v297_v35  ;;  %v277_v48 = vmul.f32 %v4114_v30, %v276_v36  ;;  %vm4166_vm1 = vmor %vm281_vm14, %vm282_vm15 }
 0x113   :  { %v258_v47 = vmul.f32 0.5, %v257_v43 }
 0x114   :  { %v312_v49 = vmul.f32 %v4116_v34, %v305_v44  ;;  %v299_v50 = vsub.f32 1.5, %v298_v45  ;;  %v278_v58 = vmul.f32 0.5, %v277_v48 }
 0x115   :  { %v259_v52 = vsub.f32 1.5, %v258_v47 }
 0x116   :  { %v4133_v25 = vadd.f32 %v4120_v40, %v312_v49  ;;  %v300_v53 = vmul.f32 %v3717_v22, %v299_v50  ;;  %v3723_v54 = vpop.eup %3722  ;;  %v279_v2 = vsub.f32 1.5, %v278_v58  ;;  %v3468_v49 = vld [vmem:[%s5456_s5 + $0x38] sm:$0xff]  ;;  %v3467_v50 = vld [vmem:[%s5456_s5 + $0x30] sm:$0xff] }
 0x117   :  { %v260_v57 = vmul.f32 %v3719_v27, %v259_v52  ;;  %v286_v60 = vmul.f32 %v3723_v54, %v4112_v29  ;;  %vm292_vm3 = vweird.f32 %v3723_v54 }
 0x118   :  { %v304_v59 = vsel %vm4128_vm9, %v3717_v22, %v300_v53  ;;  %3409 = vmatmul.msk.f32.vlgmr.msra.gmra.mxu0 %vm171_vm0, %v4133_v25  ;;  %3415 = vmatmul.msk.f32.vlgmr.msra.gmra.mxu1 %vm171_vm0, %v4133_v25  ;;  %v280_v6 = vmul.f32 %v4114_v30, %v279_v2  ;;  %vm293_vm4 = vmor %vm291_vm2, %vm292_vm3  ;;  %v3458_v22 = vld [vmem:[%s5480_s0 + $0x38] sm:$0xff]  ;;  %v3897_v2 = vmov -1e+30  }
 0x119   :  { %v310_v61 = vmul.f32 %v304_v59, %v4036_v37  ;;  %v264_v62 = vsel %vm263_vm13, %v3719_v27, %v260_v57  ;;  %v287_v3 = vmul.f32 %v3723_v54, %v286_v60  ;;  %v307_v37 = vmul.f32 %v274_v0, %v4022_v24  ;;  %v3448_v24 = vld [vmem:[%s5479_s27 + $0x38] sm:$0xff] }
 0x11a   :  { %v306_v63 = vmul.f32 %v264_v62, %v4040_v39  ;;  %749 = vmatpush.msrb.mxu1 %v3448_v24  ;;  %v284_v12 = vsel %vm4166_vm1, %v4114_v30, %v280_v6 }
 0x11b   :  { %v317_v1 = vmul.f32 %v4116_v34, %v310_v61  ;;  %v288_v7 = vmul.f32 0.5, %v287_v3  ;;  %v314_v10 = vmul.f32 %v4116_v34, %v307_v37  ;;  %v308_v16 = vmul.f32 %v284_v12, %v4038_v38 }
 0x11c   :  { %v313_v4 = vmul.f32 %v4116_v34, %v306_v63  ;;  %750 = vmatpush.msrb.mxu1 %v3447_v9 }
 0x11d   :  { %v4155_v5 = vadd.f32 %v4120_v40, %v317_v1  ;;  %v289_v13 = vsub.f32 1.5, %v288_v7  ;;  %v4192_v15 = vadd.f32 %v4120_v40, %v314_v10  ;;  %v315_v19 = vmul.f32 %v4116_v34, %v308_v16 }
 0x11e   :  { %v4161_v39 = vadd.f32 %v4120_v40, %v313_v4  ;;  %751 = vmatpush.msrb.mxu1 %v3446_v11 }
 0x11f   :  { %3414 = vmatmul.msk.f32.vlgmr.msra.gmra.mxu2 %vm171_vm0, %v4155_v5  ;;  %v290_v17 = vmul.f32 %v3723_v54, %v289_v13  ;;  %v4203_v21 = vadd.f32 %v4120_v40, %v315_v19 }
 0x120   :  { %3410 = vmatmul.msk.f32.gmra.mxu0 %vm171_vm0, %v4161_v39  ;;  %3416 = vmatmul.msk.f32.gmra.mxu1 %vm171_vm0, %v4161_v39 }
 0x121   :  { %752 = vmatpush.msrb.mxu1 %v3445_v14  ;;  %v294_v20 = vsel %vm293_vm4, %v3723_v54, %v290_v17  ;;  %789 = vmatpush.msra.mxu2 %v3458_v22  ;;  %v3465_v54 = vld [vmem:[%s5456_s5 + $0x20] sm:$0xff] }
 0x122   :  { %v309_v38 = vmul.f32 %v294_v20, %v4046_v42 }
 0x123   :  { %790 = vmatpush.msra.mxu2 %v3457_v23 }
 0x124   :  { %v316_v42 = vmul.f32 %v4116_v34, %v309_v38 }
 0x125   :  { %791 = vmatpush.msra.mxu2 %v3456_v26 }
 0x126   :  { %v4223_v27 = vadd.f32 %v4120_v40, %v316_v42 }
 0x127   :  { %3421 = vmatmul.msk.f32.vlgmr.msrb.gmra.mxu2 %vm171_vm0, %v4133_v25 }
 0x128   :  { %3411 = vmatmul.msk.f32.gmra.mxu0 %vm171_vm0, %v4192_v15  ;;  %3417 = vmatmul.msk.f32.gmra.mxu1 %vm171_vm0, %v4192_v15 }
 0x129   :  { %792 = vmatpush.msra.mxu2 %v3455_v28 }
 0x12f   :  { %3422 = vmatmul.msk.f32.gmra.mxu2 %vm171_vm0, %v4161_v39 }
 0x130   :  { %3412 = vmatmul.msk.f32.gmra.mxu0 %vm171_vm0, %v4203_v21  ;;  %3418 = vmatmul.msk.f32.gmra.mxu1 %vm171_vm0, %v4203_v21 }
 0x137   :  { %3423 = vmatmul.msk.f32.gmra.mxu2 %vm171_vm0, %v4192_v15 }
 0x138   :  { %3413 = vmatmul.msk.f32.gmra.mxu0 %vm171_vm0, %v4223_v27  ;;  %3419 = vmatmul.msk.f32.gmra.mxu1 %vm171_vm0, %v4223_v27 }
 0x13f   :  { %3424 = vmatmul.msk.f32.gmra.mxu2 %vm171_vm0, %v4203_v21 }
 0x140   :  { %3420 = vmatmul.msk.f32.gmra.mxu1 %vm171_vm0, %v4155_v5 }
 0x147   :  { %3425 = vmatmul.msk.f32.gmra.mxu2 %vm171_vm0, %v4223_v27 }
 0x148   :  { %3449 = vmatmul.msk.f32.vlgmr.msrb.gmra.mxu1 %vm171_vm0, %v4133_v25 }
 0x14f   :  { %3426 = vmatmul.msk.f32.gmra.mxu2 %vm171_vm0, %v4155_v5 }
 0x150   :  { %3450 = vmatmul.msk.f32.gmra.mxu1 %vm171_vm0, %v4161_v39 }
 0x157   :  { %3459 = vmatmul.msk.f32.vlgmr.msra.gmra.mxu2 %vm171_vm0, %v4133_v25 }
 0x158   :  { %3451 = vmatmul.msk.f32.gmra.mxu1 %vm171_vm0, %v4192_v15 }
 0x15f   :  { %3460 = vmatmul.msk.f32.gmra.mxu2 %vm171_vm0, %v4161_v39 }
 0x160   :  { %3452 = vmatmul.msk.f32.gmra.mxu1 %vm171_vm0, %v4203_v21 }
 0x167   :  { %3461 = vmatmul.msk.f32.gmra.mxu2 %vm171_vm0, %v4192_v15 }
 0x168   :  { %3453 = vmatmul.msk.f32.gmra.mxu1 %vm171_vm0, %v4223_v27 }
 0x16f   :  { %3462 = vmatmul.msk.f32.gmra.mxu2 %vm171_vm0, %v4203_v21 }
 0x170   :  { %3454 = vmatmul.msk.f32.gmra.mxu1 %vm171_vm0, %v4155_v5 }
 0x177   :  { %3463 = vmatmul.msk.f32.gmra.mxu2 %vm171_vm0, %v4223_v27 }
 0x17f   :  { %3464 = vmatmul.msk.f32.gmra.mxu2 %vm171_vm0, %v4155_v5 }
 0x195   :  { %v403_v29 = vpop.f32.mrf.mxu1  ;;  %v364_v45 = vpop.f32.mrf.mxu0 }
 0x19d   :  { %v406_v30 = vpop.f32.mrf.mxu1  ;;  %v367_v47 = vpop.f32.mrf.mxu0 }
 0x1a2   :  { %v379_v31 = vpop.f32.mrf.mxu2 }
 0x1a5   :  { %v409_v32 = vpop.f32.mrf.mxu1  ;;  %v370_v52 = vpop.f32.mrf.mxu0 }
 0x1aa   :  { %v442_v33 = vpop.f32.mrf.mxu2 }
 0x1ad   :  { %v412_v34 = vpop.f32.mrf.mxu1  ;;  %v373_v55 = vpop.f32.mrf.mxu0 }
 0x1b2   :  { %v445_v35 = vpop.f32.mrf.mxu2 }
 0x1b5   :  { %v415_v36 = vpop.f32.mrf.mxu1  ;;  %v376_v58 = vpop.f32.mrf.mxu0 }
 0x1ba   :  { %v448_v40 = vpop.f32.mrf.mxu2 }
 0x1bd   :  { %v418_v41 = vpop.f32.mrf.mxu1 }
 0x1be   :  { %3427 = vmatpush.xpose.msk.msra.mxu3 %vm460_vm5, %v418_v41 }
 0x1c2   :  { %3428 = vmatpush.xpose.msk.msra.mxu3 %vm460_vm5, %v415_v36  ;;  %v451_v43 = vpop.f32.mrf.mxu2 }
 0x1c6   :  { %3429 = vmatpush.xpose.msk.msra.mxu3 %vm460_vm5, %v412_v34 }
 0x1ca   :  { %3430 = vmatpush.xpose.msk.msra.mxu3 %vm460_vm5, %v409_v32  ;;  %v454_v44 = vpop.f32.mrf.mxu2 }
 0x1ce   :  { %3431 = vmatpush.xpose.msk.msra.mxu3 %vm460_vm5, %v406_v30 }
 0x1d2   :  { %3432 = vmatpush.xpose.msk.msra.mxu3 %vm460_vm5, %v403_v29  ;;  %v457_v46 = vpop.f32.mrf.mxu2 }
 0x1d3   :  { %705 = vmatpush.msrb.mxu0 %v457_v46 }
 0x1d5   :  { %3433 = vmatmul.msk.f32.vlgmr.msra.gmra.mxu3 %vm460_vm5, %v364_v45  ;;  %706 = vmatpush.msrb.mxu0 %v454_v44 }
 0x1d6   :  { %829 = vmatpush.msrb.mxu3 %v3468_v49 }
 0x1d7   :  { %707 = vmatpush.msrb.mxu0 %v451_v43 }
 0x1d8   :  { %830 = vmatpush.msrb.mxu3 %v3467_v50 }
 0x1d9   :  { %708 = vmatpush.msrb.mxu0 %v448_v40 }
 0x1da   :  { %v794_v48 = vpop.f32.mrf.mxu2  ;;  %831 = vmatpush.msrb.mxu3 %v3466_v51 }
 0x1db   :  { %709 = vmatpush.msrb.mxu0 %v445_v35 }
 0x1dc   :  { %832 = vmatpush.msrb.mxu3 %v3465_v54 }
 0x1dd   :  { %3434 = vmatmul.msk.f32.gmra.mxu3 %vm460_vm5, %v367_v47  ;;  %710 = vmatpush.msrb.mxu0 %v442_v33 }
 0x1e2   :  { %v797_v53 = vpop.f32.mrf.mxu2 }
 0x1e5   :  { %3435 = vmatmul.msk.f32.gmra.mxu3 %vm460_vm5, %v370_v52 }
 0x1ea   :  { %v800_v56 = vpop.f32.mrf.mxu2 }
 0x1ed   :  { %3436 = vmatmul.msk.f32.gmra.mxu3 %vm460_vm5, %v373_v55 }
 0x1f2   :  { %v803_v57 = vpop.f32.mrf.mxu2 }
 0x1f5   :  { %3437 = vmatmul.msk.f32.gmra.mxu3 %vm460_vm5, %v376_v58 }
 0x1fa   :  { %v806_v59 = vpop.f32.mrf.mxu2 }
 0x1fd   :  { %3438 = vmatmul.msk.f32.gmra.mxu3 %vm460_vm5, %v379_v31 }
 0x202   :  { %v809_v60 = vpop.f32.mrf.mxu2 }
 0x203   :  { %3475 = vmatpush.xpose.msk.msra.mxu0 %vm460_vm5, %v809_v60 }
 0x205   :  { %3469 = vmatmul.msk.f32.vlgmr.msrb.gmra.mxu3 %vm171_vm0, %v4133_v25  ;;  %v65_v25 = vlaneseq }
 0x207   :  { %3476 = vmatpush.xpose.msk.msra.mxu0 %vm460_vm5, %v806_v59  ;;  %v66_v61 = vshrl.u32 %v65_v25, 7  ;;  %v73_v62 = vand.u32 127, %v65_v25 }
 0x209   :  { %v78_v63 = vand.u32 7, %v66_v61  ;;  %v150_v0 = vand.u32 7, %v73_v62  ;;  %v67_v1 = vadd.s32 8, %v66_v61  ;;  %v68_v7 = vadd.s32 16, %v66_v61 }
 0x20a   :  { %v69_v11 = vadd.s32 24, %v66_v61  ;;  %v70_v17 = vadd.s32 32, %v66_v61  ;;  %v71_v23 = vadd.s32 40, %v66_v61 }
 0x20b   :  { %3477 = vmatpush.xpose.msk.msra.mxu0 %vm460_vm5, %v803_v57  ;;  %vm158_vm6 = vcmp.eq.s32.totalorder %v78_v63, %v150_v0  ;;  %v85_v4 = vand.u32 7, %v67_v1  ;;  %v92_v8 = vand.u32 7, %v68_v7 }
 0x20c   :  { %v4308_v3 = vsel %vm158_vm6, 0.0, %v3897_v2  ;;  %v99_v13 = vand.u32 7, %v69_v11  ;;  %v106_v20 = vand.u32 7, %v70_v17  ;;  %v113_v26 = vand.u32 7, %v71_v23 }
 0x20d   :  { %3470 = vmatmul.msk.f32.gmra.mxu3 %vm171_vm0, %v4161_v39  ;;  %vm159_vm8 = vcmp.eq.s32.totalorder %v85_v4, %v150_v0  ;;  %vm160_vm9 = vcmp.eq.s32.totalorder %v92_v8, %v150_v0 }
 0x20e   :  { %v4316_v12 = vsel %vm160_vm9, 0.0, %v3897_v2  ;;  %vm161_vm10 = vcmp.eq.s32.totalorder %v99_v13, %v150_v0  ;;  %vm162_vm11 = vcmp.eq.s32.totalorder %v106_v20, %v150_v0  ;;  %vm163_vm12 = vcmp.eq.s32.totalorder %v113_v26, %v150_v0 }
 0x20f   :  { %3478 = vmatpush.xpose.msk.msra.mxu0 %vm460_vm5, %v800_v56  ;;  %v4320_v19 = vsel %vm161_vm10, 0.0, %v3897_v2  ;;  %v4324_v42 = vsel %vm162_vm11, 0.0, %v3897_v2  ;;  %v4328_v30 = vsel %vm163_vm12, 0.0, %v3897_v2 }
 0x213   :  { %3479 = vmatpush.xpose.msk.msra.mxu0 %vm460_vm5, %v797_v53 }
 0x215   :  { %3471 = vmatmul.msk.f32.gmra.mxu3 %vm171_vm0, %v4192_v15 }
 0x217   :  { %3480 = vmatpush.xpose.msk.msra.mxu0 %vm460_vm5, %v794_v48 }
 0x21d   :  { %3472 = vmatmul.msk.f32.gmra.mxu3 %vm171_vm0, %v4203_v21 }
 0x225   :  { %3473 = vmatmul.msk.f32.gmra.mxu3 %vm171_vm0, %v4223_v27 }
 0x22d   :  { %3474 = vmatmul.msk.f32.gmra.mxu3 %vm171_vm0, %v4155_v5  ;;  %v4312_v5 = vsel %vm159_vm8, 0.0, %v3897_v2 }
 0x258   :  { %v514_v37 = vpop.f32.mrf.mxu3 }
 0x259   :  { %v515_v39 = vadd.f32 %v514_v37, %v4308_v3 }
 0x25b   :  { %v533_v6 = vsel %vm532_vm7, %v515_v39, -inf }
 0x25c   :  { %534 = vmax.xlane.f32.xlu0 %v533_v6 }
 0x260   :  { %v517_v24 = vpop.f32.mrf.mxu3 }
 0x261   :  { %v518_v9 = vadd.f32 %v517_v24, %v4312_v5 }
 0x263   :  { %v536_v10 = vsel %vm532_vm7, %v518_v9, -inf }
 0x264   :  { %537 = vmax.xlane.f32.xlu1 %v536_v10 }
 0x268   :  { %v520_v14 = vpop.f32.mrf.mxu3 }
 0x269   :  { %v521_v15 = vadd.f32 %v520_v14, %v4316_v12 }
 0x26b   :  { %v539_v16 = vsel %vm532_vm7, %v521_v15, -inf }
 0x26c   :  { %540 = vmax.xlane.f32.xlu2 %v539_v16 }
 0x270   :  { %v523_v21 = vpop.f32.mrf.mxu3 }
 0x271   :  { %v524_v38 = vadd.f32 %v523_v21, %v4320_v19 }
 0x273   :  { %v542_v22 = vsel %vm532_vm7, %v524_v38, -inf }
 0x274   :  { %543 = vmax.xlane.f32.xlu0 %v542_v22 }
 0x278   :  { %v526_v27 = vpop.f32.mrf.mxu3 }
 0x279   :  { %v527_v28 = vadd.f32 %v526_v27, %v4324_v42 }
 0x27b   :  { %v545_v29 = vsel %vm532_vm7, %v527_v28, -inf }
 0x27c   :  { %546 = vmax.xlane.f32.xlu1 %v545_v29 }
 0x280   :  { %v529_v31 = vpop.f32.mrf.mxu3 }
 0x281   :  { %v530_v32 = vadd.f32 %v529_v31, %v4328_v30 }
 0x283   :  { %v548_v33 = vsel %vm532_vm7, %v530_v32, -inf }
 0x284   :  { %549 = vmax.xlane.f32.xlu2 %v548_v33 }
 0x288   :  { %v834_v34 = vpop.f32.mrf.mxu3 }
 0x290   :  { %v837_v35 = vpop.f32.mrf.mxu3 }
 0x298   :  { %v840_v36 = vpop.f32.mrf.mxu3 }
 0x2a0   :  { %v843_v40 = vpop.f32.mrf.mxu3 }
 0x2a8   :  { %v846_v41 = vpop.f32.mrf.mxu3 }
 0x2b0   :  { %v849_v43 = vpop.f32.mrf.mxu3 }
 0x2b1   :  { %1095 = vmatpush.msra.mxu1 %v849_v43 }
 0x2b3   :  { %1096 = vmatpush.msra.mxu1 %v846_v41 }
 0x2b5   :  { %1097 = vmatpush.msra.mxu1 %v843_v40 }
 0x2b7   :  { %1098 = vmatpush.msra.mxu1 %v840_v36 }
 0x2b9   :  { %1099 = vmatpush.msra.mxu1 %v837_v35 }
 0x2bb   :  { %1100 = vmatpush.msra.mxu1 %v834_v34 }
 0x2cf   :  { %v535_v44 = vpop.xlane.xlu0 %534 }
 0x2d0   :  { %v551_v45 = vsub.f32 %v515_v39, %v535_v44 }
 0x2d2   :  { %v557_v46 = vmul.f32 1.442695, %v551_v45 }
 0x2d4   :  { %3724 = vpow2.f32 %v557_v46 }
 0x2d7   :  { %v538_v47 = vpop.xlane.xlu1 %537 }
 0x2d8   :  { %v552_v48 = vsub.f32 %v518_v9, %v538_v47 }
 0x2da   :  { %v3725_v49 = vpop.eup %3724  ;;  %v559_v50 = vmul.f32 1.442695, %v552_v48 }
 0x2db   :  { %v569_v51 = vsel %vm532_vm7, %v3725_v49, 0.0 }
 0x2dc   :  { %3726 = vpow2.f32 %v559_v50  ;;  %570 = vadd.xlane.f32.xlu0 %v569_v51 }
 0x2df   :  { %v541_v52 = vpop.xlane.xlu2 %540 }
 0x2e0   :  { %v553_v53 = vsub.f32 %v521_v15, %v541_v52 }
 0x2e2   :  { %v4333_v54 = vpop.eup %3726  ;;  %v561_v55 = vmul.f32 1.442695, %v553_v53 }
 0x2e3   :  { %v572_v56 = vsel %vm532_vm7, %v4333_v54, 0.0 }
 0x2e4   :  { %3728 = vpow2.f32 %v561_v55  ;;  %573 = vadd.xlane.f32.xlu1 %v572_v56 }
 0x2e7   :  { %v544_v57 = vpop.xlane.xlu0 %543 }
 0x2e8   :  { %v554_v58 = vsub.f32 %v524_v38, %v544_v57 }
 0x2ea   :  { %v4337_v59 = vpop.eup %3728  ;;  %v563_v60 = vmul.f32 1.442695, %v554_v58 }
 0x2eb   :  { %v575_v25 = vsel %vm532_vm7, %v4337_v59, 0.0 }
 0x2ec   :  { %3730 = vpow2.f32 %v563_v60  ;;  %576 = vadd.xlane.f32.xlu2 %v575_v25 }
 0x2ef   :  { %v547_v61 = vpop.xlane.xlu1 %546 }
 0x2f0   :  { %v555_v62 = vsub.f32 %v527_v28, %v547_v61 }
 0x2f2   :  { %v4341_v63 = vpop.eup %3730  ;;  %v565_v0 = vmul.f32 1.442695, %v555_v62 }
 0x2f3   :  { %v578_v1 = vsel %vm532_vm7, %v4341_v63, 0.0 }
 0x2f4   :  { %3732 = vpow2.f32 %v565_v0  ;;  %579 = vadd.xlane.f32.xlu0 %v578_v1 }
 0x2f7   :  { %v550_v2 = vpop.xlane.xlu2 %549 }
 0x2f8   :  { %v556_v4 = vsub.f32 %v530_v32, %v550_v2 }
 0x2fa   :  { %v4345_v37 = vpop.eup %3732  ;;  %v567_v39 = vmul.f32 1.442695, %v556_v4 }
 0x2fb   :  { %v581_v6 = vsel %vm532_vm7, %v4345_v37, 0.0 }
 0x2fc   :  { %3734 = vpow2.f32 %v567_v39  ;;  %582 = vadd.xlane.f32.xlu1 %v581_v6 }
 0x302   :  { %v4349_v7 = vpop.eup %3734 }
 0x303   :  { %v584_v8 = vsel %vm532_vm7, %v4349_v7, 0.0 }
 0x304   :  { %585 = vadd.xlane.f32.xlu2 %v584_v8 }
 0x34f   :  { %v571_v24 = vpop.xlane.xlu0 %570 }
 0x350   :  { %3736 = vrcp.f32 %v571_v24  ;;  %v598_v14 = vand.u32 2147483648, %v571_v24  ;;  %v596_v16 = vand.u32 2147483647, %v571_v24  ;;  %vm592_vm14 = vweird.f32 %v571_v24 }
 0x352   :  { %v599_v21 = vor.u32 1.1754944e-38, %v598_v14  ;;  %vm597_vm1 = vcmp.eq.f32.partialorder %v596_v16, 8.507059e+37 }
 0x356   :  { %v3737_v9 = vpop.eup %3736 }
 0x357   :  { %v588_v10 = vmul.f32 %v3737_v9, %v571_v24  ;;  %v574_v11 = vpop.xlane.xlu1 %573  ;;  %vm593_vm13 = vweird.f32 %v3737_v9 }
 0x358   :  { %3738 = vrcp.f32 %v574_v11  ;;  %vm594_vm15 = vmor %vm592_vm14, %vm593_vm13  ;;  %v613_v29 = vand.u32 2147483648, %v574_v11  ;;  %v611_v32 = vand.u32 2147483647, %v574_v11  ;;  %vm607_vm3 = vweird.f32 %v574_v11 }
 0x359   :  { %v589_v13 = vsub.f32 1.0, %v588_v10 }
 0x35a   :  { %v614_v35 = vor.u32 1.1754944e-38, %v613_v29  ;;  %vm612_vm6 = vcmp.eq.f32.partialorder %v611_v32, 8.507059e+37 }
 0x35b   :  { %v590_v15 = vmul.f32 %v3737_v9, %v589_v13 }
 0x35d   :  { %v591_v17 = vadd.f32 %v3737_v9, %v590_v15 }
 0x35e   :  { %v3739_v20 = vpop.eup %3738 }
 0x35f   :  { %v603_v38 = vmul.f32 %v3739_v20, %v574_v11  ;;  %v577_v22 = vpop.xlane.xlu2 %576  ;;  %v595_v23 = vsel %vm594_vm15, %v3737_v9, %v591_v17  ;;  %vm608_vm2 = vweird.f32 %v3739_v20 }
 0x360   :  { %3740 = vrcp.f32 %v577_v22  ;;  %v600_v26 = vsel %vm597_vm1, %v599_v21, %v595_v23  ;;  %vm609_vm4 = vmor %vm607_vm3, %vm608_vm2  ;;  %v628_v46 = vand.u32 2147483648, %v577_v22  ;;  %v626_v48 = vand.u32 2147483647, %v577_v22 }
 0x361   :  { %v604_v27 = vsub.f32 1.0, %v603_v38  ;;  %v601_v28 = vmul.f32 %v3725_v49, %v600_v26  ;;  %vm622_vm9 = vweird.f32 %v577_v22 }
 0x362   :  { %v629_v51 = vor.u32 1.1754944e-38, %v628_v46  ;;  %vm627_vm11 = vcmp.eq.f32.partialorder %v626_v48, 8.507059e+37 }
 0x363   :  { %v605_v31 = vmul.f32 %v3739_v20, %v604_v27  ;;  %3439 = vmatmul.msk.f32.vlgmr.msrb.gmra.mxu0 %vm532_vm7, %v601_v28  ;;  %v754_v27 = vpop.f32.mrf.mxu1 }
 0x365   :  { %v606_v33 = vadd.f32 %v3739_v20, %v605_v31 }
 0x366   :  { %v3741_v34 = vpop.eup %3740 }
 0x367   :  { %v618_v36 = vmul.f32 %v3741_v34, %v577_v22  ;;  %v580_v40 = vpop.xlane.xlu0 %579  ;;  %v610_v41 = vsel %vm609_vm4, %v3739_v20, %v606_v33  ;;  %vm623_vm8 = vweird.f32 %v3741_v34 }
 0x368   :  { %3742 = vrcp.f32 %v580_v40  ;;  %v615_v43 = vsel %vm612_vm6, %v614_v35, %v610_v41  ;;  %vm624_vm10 = vmor %vm622_vm9, %vm623_vm8  ;;  %v643_v58 = vand.u32 2147483648, %v580_v40  ;;  %v641_v25 = vand.u32 2147483647, %v580_v40  ;;  %v730_v35 = vld [vmem:[%s5458_s6] sm:$0xff] }
 0x369   :  { %v619_v44 = vsub.f32 1.0, %v618_v36  ;;  %v616_v45 = vmul.f32 %v4333_v54, %v615_v43  ;;  %vm637_vm13 = vweird.f32 %v580_v40 }
 0x36a   :  { %v644_v0 = vor.u32 1.1754944e-38, %v643_v58  ;;  %vm642_vm15 = vcmp.eq.f32.partialorder %v641_v25, 8.507059e+37 }
 0x36b   :  { %v620_v47 = vmul.f32 %v3741_v34, %v619_v44  ;;  %3440 = vmatmul.msk.f32.gmra.mxu0 %vm532_vm7, %v616_v45  ;;  %v757_v31 = vpop.f32.mrf.mxu1 }
 0x36d   :  { %v621_v49 = vadd.f32 %v3741_v34, %v620_v47 }
 0x36e   :  { %v3743_v50 = vpop.eup %3742 }
 0x36f   :  { %v633_v52 = vmul.f32 %v3743_v50, %v580_v40  ;;  %v583_v53 = vpop.xlane.xlu1 %582  ;;  %v625_v55 = vsel %vm624_vm10, %v3741_v34, %v621_v49  ;;  %vm638_vm12 = vweird.f32 %v3743_v50 }
 0x370   :  { %3744 = vrcp.f32 %v583_v53  ;;  %v630_v56 = vsel %vm627_vm11, %v629_v51, %v625_v55  ;;  %vm639_vm14 = vmor %vm637_vm13, %vm638_vm12  ;;  %v658_v8 = vand.u32 2147483648, %v583_v53  ;;  %v656_v9 = vand.u32 2147483647, %v583_v53 }
 0x371   :  { %v634_v57 = vsub.f32 1.0, %v633_v52  ;;  %v631_v54 = vmul.f32 %v4337_v59, %v630_v56  ;;  %vm652_vm2 = vweird.f32 %v583_v53 }
 0x372   :  { %v659_v13 = vor.u32 1.1754944e-38, %v658_v8  ;;  %vm657_vm4 = vcmp.eq.f32.partialorder %v656_v9, 8.507059e+37 }
 0x373   :  { %v635_v60 = vmul.f32 %v3743_v50, %v634_v57  ;;  %3441 = vmatmul.msk.f32.gmra.mxu0 %vm532_vm7, %v631_v54  ;;  %v760_v32 = vpop.f32.mrf.mxu1 }
 0x375   :  { %v636_v61 = vadd.f32 %v3743_v50, %v635_v60 }
 0x376   :  { %v3745_v62 = vpop.eup %3744 }
 0x377   :  { %v648_v1 = vmul.f32 %v3745_v62, %v583_v53  ;;  %v586_v2 = vpop.xlane.xlu2 %585  ;;  %v640_v4 = vsel %vm639_vm14, %v3743_v50, %v636_v61  ;;  %vm653_vm1 = vweird.f32 %v3745_v62 }
 0x378   :  { %3746 = vrcp.f32 %v586_v2  ;;  %v645_v39 = vsel %vm642_vm15, %v644_v0, %v640_v4  ;;  %vm654_vm3 = vmor %vm652_vm2, %vm653_vm1  ;;  %v673_v21 = vand.u32 2147483648, %v586_v2  ;;  %v671_v38 = vand.u32 2147483647, %v586_v2 }
 0x379   :  { %v649_v6 = vsub.f32 1.0, %v648_v1  ;;  %v646_v59 = vmul.f32 %v4341_v63, %v645_v39  ;;  %vm667_vm8 = vweird.f32 %v586_v2 }
 0x37a   :  { %v674_v23 = vor.u32 1.1754944e-38, %v673_v21  ;;  %vm672_vm10 = vcmp.eq.f32.partialorder %v671_v38, 8.507059e+37 }
 0x37b   :  { %v650_v24 = vmul.f32 %v3745_v62, %v649_v6  ;;  %3442 = vmatmul.msk.f32.gmra.mxu0 %vm532_vm7, %v646_v59  ;;  %v763_v33 = vpop.f32.mrf.mxu1 }
 0x37d   :  { %v651_v10 = vadd.f32 %v3745_v62, %v650_v24 }
 0x37e   :  { %v3747_v11 = vpop.eup %3746 }
 0x37f   :  { %v663_v14 = vmul.f32 %v3747_v11, %v586_v2  ;;  %v655_v15 = vsel %vm654_vm3, %v3745_v62, %v651_v10  ;;  %vm668_vm6 = vweird.f32 %v3747_v11 }
 0x380   :  { %v660_v16 = vsel %vm657_vm4, %v659_v13, %v655_v15  ;;  %vm669_vm9 = vmor %vm667_vm8, %vm668_vm6 }
 0x381   :  { %v664_v17 = vsub.f32 1.0, %v663_v14  ;;  %v661_v20 = vmul.f32 %v4345_v37, %v660_v16  ;;  %v731_v37 = vld [vmem:[%s5458_s6 + $0x8] sm:$0xff] }
 0x382   :  { %1208 = vmatpush.msra.mxu3 %v731_v37 }
 0x383   :  { %v665_v63 = vmul.f32 %v3747_v11, %v664_v17  ;;  %3443 = vmatmul.msk.f32.gmra.mxu0 %vm532_vm7, %v661_v20  ;;  %v766_v34 = vpop.f32.mrf.mxu1 }
 0x384   :  { %1209 = vmatpush.msra.mxu3 %v730_v35 }
 0x385   :  { %v666_v22 = vadd.f32 %v3747_v11, %v665_v63 }
 0x387   :  { %v670_v26 = vsel %vm669_vm9, %v3747_v11, %v666_v22 }
 0x388   :  { %v675_v28 = vsel %vm672_vm10, %v674_v23, %v670_v26 }
 0x389   :  { %v676_v29 = vmul.f32 %v4349_v7, %v675_v28 }
 0x38b   :  { %3444 = vmatmul.msk.f32.gmra.mxu0 %vm532_vm7, %v676_v29  ;;  %v769_v7 = vpop.f32.mrf.mxu1 }
 0x393   :  { %3481 = vmatmul.msk.f32.vlgmr.msra.gmra.mxu0 %vm460_vm5, %v754_v27 }
 0x39b   :  { %3482 = vmatmul.msk.f32.gmra.mxu0 %vm460_vm5, %v757_v31 }
 0x3a3   :  { %3483 = vmatmul.msk.f32.gmra.mxu0 %vm460_vm5, %v760_v32 }
 0x3ab   :  { %3484 = vmatmul.msk.f32.gmra.mxu0 %vm460_vm5, %v763_v33 }
 0x3b3   :  { %3485 = vmatmul.msk.f32.gmra.mxu0 %vm460_vm5, %v766_v34 }
 0x3bb   :  { %3486 = vmatmul.msk.f32.gmra.mxu0 %vm460_vm5, %v769_v7 }
 0x3e0   :  { %v712_v36 = vpop.f32.mrf.mxu0 }
 0x3e1   :  { %3501 = vmatmul.msk.f32.vlgmr.msra.gmra.mxu3 %vm460_vm5, %v712_v36 }
 0x3e8   :  { %v715_v40 = vpop.f32.mrf.mxu0 }
 0x3e9   :  { %3502 = vmatmul.msk.f32.gmra.mxu3 %vm460_vm5, %v715_v40 }
 0x3f0   :  { %v718_v41 = vpop.f32.mrf.mxu0 }
 0x3f1   :  { %3503 = vmatmul.msk.f32.gmra.mxu3 %vm460_vm5, %v718_v41 }
 0x3f8   :  { %v721_v43 = vpop.f32.mrf.mxu0 }
 0x3f9   :  { %3504 = vmatmul.msk.f32.gmra.mxu3 %vm460_vm5, %v721_v43 }
 0x400   :  { %v724_v44 = vpop.f32.mrf.mxu0 }
 0x401   :  { %3505 = vmatmul.msk.f32.gmra.mxu3 %vm460_vm5, %v724_v44 }
 0x408   :  { %v727_v45 = vpop.f32.mrf.mxu0 }
 0x409   :  { %3506 = vmatmul.msk.f32.gmra.mxu3 %vm460_vm5, %v727_v45 }
 0x410   :  { %v905_v46 = vpop.f32.mrf.mxu0 }
 0x411   :  { %v906_v47 = vadd.f32 %v905_v46, %v4308_v3 }
 0x413   :  { %v923_v48 = vsel %vm532_vm7, %v906_v47, -inf }
 0x414   :  { %924 = vmax.xlane.f32.xlu0 %v923_v48 }
 0x418   :  { %v908_v49 = vpop.f32.mrf.mxu0 }
 0x419   :  { %v909_v50 = vadd.f32 %v908_v49, %v4312_v5 }
 0x41b   :  { %v926_v51 = vsel %vm532_vm7, %v909_v50, -inf }
 0x41c   :  { %927 = vmax.xlane.f32.xlu1 %v926_v51 }
 0x420   :  { %v911_v52 = vpop.f32.mrf.mxu0 }
 0x421   :  { %v912_v53 = vadd.f32 %v911_v52, %v4316_v12 }
 0x423   :  { %v929_v55 = vsel %vm532_vm7, %v912_v53, -inf }
 0x424   :  { %930 = vmax.xlane.f32.xlu2 %v929_v55 }
 0x428   :  { %v914_v56 = vpop.f32.mrf.mxu0 }
 0x429   :  { %v915_v57 = vadd.f32 %v914_v56, %v4320_v19 }
 0x42b   :  { %v932_v54 = vsel %vm532_vm7, %v915_v57, -inf }
 0x42c   :  { %933 = vmax.xlane.f32.xlu0 %v932_v54 }
 0x430   :  { %v917_v58 = vpop.f32.mrf.mxu0 }
 0x431   :  { %v918_v60 = vadd.f32 %v917_v58, %v4324_v42 }
 0x433   :  { %v935_v25 = vsel %vm532_vm7, %v918_v60, -inf }
 0x434   :  { %936 = vmax.xlane.f32.xlu1 %v935_v25 }
 0x438   :  { %v920_v61 = vpop.f32.mrf.mxu0 }
 0x439   :  { %v921_v62 = vadd.f32 %v920_v61, %v4328_v30 }
 0x43b   :  { %v938_v0 = vsel %vm532_vm7, %v921_v62, -inf }
 0x43c   :  { %939 = vmax.xlane.f32.xlu2 %v938_v0 }
 0x487   :  { %v925_v1 = vpop.xlane.xlu0 %924 }
 0x488   :  { %v941_v2 = vsub.f32 %v906_v47, %v925_v1 }
 0x48a   :  { %v947_v4 = vmul.f32 1.442695, %v941_v2 }
 0x48c   :  { %3748 = vpow2.f32 %v947_v4 }
 0x48f   :  { %v928_v39 = vpop.xlane.xlu1 %927 }
 0x490   :  { %v942_v6 = vsub.f32 %v909_v50, %v928_v39 }
 0x492   :  { %v3749_v59 = vpop.eup %3748  ;;  %v949_v8 = vmul.f32 1.442695, %v942_v6 }
 0x493   :  { %v959_v24 = vsel %vm532_vm7, %v3749_v59, 0.0 }
 0x494   :  { %3750 = vpow2.f32 %v949_v8  ;;  %960 = vadd.xlane.f32.xlu0 %v959_v24 }
 0x497   :  { %v931_v9 = vpop.xlane.xlu2 %930 }
 0x498   :  { %v943_v10 = vsub.f32 %v912_v53, %v931_v9 }
 0x49a   :  { %v4395_v11 = vpop.eup %3750  ;;  %v951_v13 = vmul.f32 1.442695, %v943_v10 }
 0x49b   :  { %v962_v14 = vsel %vm532_vm7, %v4395_v11, 0.0 }
 0x49c   :  { %3752 = vpow2.f32 %v951_v13  ;;  %963 = vadd.xlane.f32.xlu1 %v962_v14 }
 0x49f   :  { %v934_v15 = vpop.xlane.xlu0 %933 }
 0x4a0   :  { %v944_v16 = vsub.f32 %v915_v57, %v934_v15 }
 0x4a2   :  { %v4399_v17 = vpop.eup %3752  ;;  %v953_v20 = vmul.f32 1.442695, %v944_v16 }
 0x4a3   :  { %v965_v21 = vsel %vm532_vm7, %v4399_v17, 0.0 }
 0x4a4   :  { %3754 = vpow2.f32 %v953_v20  ;;  %966 = vadd.xlane.f32.xlu2 %v965_v21 }
 0x4a7   :  { %v937_v63 = vpop.xlane.xlu1 %936 }
 0x4a8   :  { %v945_v38 = vsub.f32 %v918_v60, %v937_v63 }
 0x4aa   :  { %v4403_v22 = vpop.eup %3754  ;;  %v955_v23 = vmul.f32 1.442695, %v945_v38 }
 0x4ab   :  { %v968_v26 = vsel %vm532_vm7, %v4403_v22, 0.0 }
 0x4ac   :  { %3756 = vpow2.f32 %v955_v23  ;;  %969 = vadd.xlane.f32.xlu0 %v968_v26 }
 0x4af   :  { %v940_v27 = vpop.xlane.xlu2 %939 }
 0x4b0   :  { %v946_v28 = vsub.f32 %v921_v62, %v940_v27 }
 0x4b2   :  { %v4407_v29 = vpop.eup %3756  ;;  %v957_v31 = vmul.f32 1.442695, %v946_v28 }
 0x4b3   :  { %v971_v37 = vsel %vm532_vm7, %v4407_v29, 0.0 }
 0x4b4   :  { %3758 = vpow2.f32 %v957_v31  ;;  %972 = vadd.xlane.f32.xlu1 %v971_v37 }
 0x4ba   :  { %v4411_v32 = vpop.eup %3758 }
 0x4bb   :  { %v974_v33 = vsel %vm532_vm7, %v4411_v32, 0.0 }
 0x4bc   :  { %975 = vadd.xlane.f32.xlu2 %v974_v33 }
 0x507   :  { %v961_v34 = vpop.xlane.xlu0 %960 }
 0x508   :  { %3760 = vrcp.f32 %v961_v34  ;;  %v988_v41 = vand.u32 2147483648, %v961_v34  ;;  %v986_v44 = vand.u32 2147483647, %v961_v34  ;;  %vm982_vm12 = vweird.f32 %v961_v34 }
 0x50a   :  { %v989_v47 = vor.u32 1.1754944e-38, %v988_v41  ;;  %vm987_vm14 = vcmp.eq.f32.partialorder %v986_v44, 8.507059e+37 }
 0x50e   :  { %v3761_v7 = vpop.eup %3760 }
 0x50f   :  { %v978_v35 = vmul.f32 %v3761_v7, %v961_v34  ;;  %v964_v36 = vpop.xlane.xlu1 %963  ;;  %vm983_vm11 = vweird.f32 %v3761_v7 }
 0x510   :  { %3762 = vrcp.f32 %v964_v36  ;;  %vm984_vm13 = vmor %vm982_vm12, %vm983_vm11  ;;  %v1003_v55 = vand.u32 2147483648, %v964_v36  ;;  %v1001_v57 = vand.u32 2147483647, %v964_v36  ;;  %vm997_vm1 = vweird.f32 %v964_v36 }
 0x511   :  { %v979_v40 = vsub.f32 1.0, %v978_v35 }
 0x512   :  { %v1004_v60 = vor.u32 1.1754944e-38, %v1003_v55  ;;  %vm1002_vm3 = vcmp.eq.f32.partialorder %v1001_v57, 8.507059e+37 }
 0x513   :  { %v980_v43 = vmul.f32 %v3761_v7, %v979_v40 }
 0x515   :  { %v981_v45 = vadd.f32 %v3761_v7, %v980_v43 }
 0x516   :  { %v3763_v46 = vpop.eup %3762 }
 0x517   :  { %v985_v48 = vsel %vm984_vm13, %v3761_v7, %v981_v45  ;;  %v993_v49 = vmul.f32 %v3763_v46, %v964_v36  ;;  %v967_v50 = vpop.xlane.xlu2 %966  ;;  %vm998_vm15 = vweird.f32 %v3763_v46 }
 0x518   :  { %v990_v51 = vsel %vm987_vm14, %v989_v47, %v985_v48  ;;  %3764 = vrcp.f32 %v967_v50  ;;  %vm999_vm2 = vmor %vm997_vm1, %vm998_vm15  ;;  %v1018_v4 = vand.u32 2147483648, %v967_v50  ;;  %v1016_v6 = vand.u32 2147483647, %v967_v50 }
 0x519   :  { %v994_v52 = vsub.f32 1.0, %v993_v49  ;;  %v991_v53 = vmul.f32 %v3749_v59, %v990_v51  ;;  %v3494_v59 = vld [vmem:[%s5458_s6 + $0x18] sm:$0xff]  ;;  %vm1012_vm6 = vweird.f32 %v967_v50 }
 0x51a   :  { %1155 = vmatpush.msrb.mxu2 %v3494_v59  ;;  %v1019_v9 = vor.u32 1.1754944e-38, %v1018_v4  ;;  %vm1017_vm9 = vcmp.eq.f32.partialorder %v1016_v6, 8.507059e+37  ;;  %v3889_v4 = vld [vmem:[%s5478_s29] sm:$0xff] }
 0x51b   :  { %v995_v56 = vmul.f32 %v3763_v46, %v994_v52  ;;  %3487 = vmatmul.msk.f32.vlgmr.msra.gmra.mxu1 %vm532_vm7, %v991_v53 }
 0x51d   :  { %v996_v54 = vadd.f32 %v3763_v46, %v995_v56 }
 0x51e   :  { %v3765_v58 = vpop.eup %3764 }
 0x51f   :  { %v1008_v25 = vmul.f32 %v3765_v58, %v967_v50  ;;  %v970_v61 = vpop.xlane.xlu0 %969  ;;  %v1000_v62 = vsel %vm999_vm2, %v3763_v46, %v996_v54  ;;  %vm1013_vm4 = vweird.f32 %v3765_v58 }
 0x520   :  { %3766 = vrcp.f32 %v970_v61  ;;  %v1005_v0 = vsel %vm1002_vm3, %v1004_v60, %v1000_v62  ;;  %vm1014_vm8 = vmor %vm1012_vm6, %vm1013_vm4  ;;  %v1033_v20 = vand.u32 2147483648, %v970_v61  ;;  %v1031_v63 = vand.u32 2147483647, %v970_v61 }
 0x521   :  { %v1009_v1 = vsub.f32 1.0, %v1008_v25  ;;  %v1006_v2 = vmul.f32 %v4395_v11, %v1005_v0  ;;  %vm1027_vm11 = vweird.f32 %v970_v61  ;;  %v1211_v25 = vpop.f32.mrf.mxu3 }
 0x522   :  { %v1034_v26 = vor.u32 1.1754944e-38, %v1033_v20  ;;  %vm1032_vm13 = vcmp.eq.f32.partialorder %v1031_v63, 8.507059e+37  ;;  %v3891_v20 = vld [vmem:[%s5478_s29 + $0x10] sm:$0xff] }
 0x523   :  { %v1010_v39 = vmul.f32 %v3765_v58, %v1009_v1  ;;  %3488 = vmatmul.msk.f32.gmra.mxu1 %vm532_vm7, %v1006_v2  ;;  %v4441_v1 = vld [vmem:[%s5457_s2] sm:$0x3f] }
 0x524   :  { %v1235_v2 = vperm.slane %v4441_v1, 4 }
 0x525   :  { %v1011_v8 = vadd.f32 %v3765_v58, %v1010_v39 }
 0x526   :  { %v3767_v24 = vpop.eup %3766 }
 0x527   :  { %v1023_v10 = vmul.f32 %v3767_v24, %v970_v61  ;;  %v973_v13 = vpop.xlane.xlu1 %972  ;;  %v1015_v14 = vsel %vm1014_vm8, %v3765_v58, %v1011_v8  ;;  %vm1028_vm10 = vweird.f32 %v3767_v24 }
 0x528   :  { %3768 = vrcp.f32 %v973_v13  ;;  %v1020_v11 = vsel %vm1017_vm9, %v1019_v9, %v1015_v14  ;;  %vm1029_vm12 = vmor %vm1027_vm11, %vm1028_vm10  ;;  %v1048_v34 = vand.u32 2147483648, %v973_v13  ;;  %v1046_v35 = vand.u32 2147483647, %v973_v13 }
 0x529   :  { %v1024_v15 = vsub.f32 1.0, %v1023_v10  ;;  %v1021_v16 = vmul.f32 %v4399_v17, %v1020_v11  ;;  %vm1042_vm15 = vweird.f32 %v973_v13  ;;  %v1214_v61 = vpop.f32.mrf.mxu3  ;;  %v3890_v10 = vld [vmem:[%s5478_s29 + $0x8] sm:$0xff] }
 0x52a   :  { %v1049_v41 = vor.u32 1.1754944e-38, %v1048_v34  ;;  %vm1047_vm2 = vcmp.eq.f32.partialorder %v1046_v35, 8.507059e+37  ;;  %v3893_v35 = vld [vmem:[%s5478_s29 + $0x20] sm:$0xff] }
 0x52b   :  { %v1025_v21 = vmul.f32 %v3767_v24, %v1024_v15  ;;  %3489 = vmatmul.msk.f32.gmra.mxu1 %vm532_vm7, %v1021_v16 }
 0x52d   :  { %v1026_v38 = vadd.f32 %v3767_v24, %v1025_v21 }
 0x52e   :  { %v3769_v23 = vpop.eup %3768 }
 0x52f   :  { %v1038_v27 = vmul.f32 %v3769_v23, %v973_v13  ;;  %v976_v28 = vpop.xlane.xlu2 %975  ;;  %v1030_v31 = vsel %vm1029_vm12, %v3767_v24, %v1026_v38  ;;  %vm1043_vm14 = vweird.f32 %v3769_v23 }
 0x530   :  { %3770 = vrcp.f32 %v976_v28  ;;  %v1035_v37 = vsel %vm1032_vm13, %v1034_v26, %v1030_v31  ;;  %vm1044_vm1 = vmor %vm1042_vm15, %vm1043_vm14  ;;  %v1063_v48 = vand.u32 2147483648, %v976_v28  ;;  %v1061_v49 = vand.u32 2147483647, %v976_v28 }
 0x531   :  { %v1039_v33 = vsub.f32 1.0, %v1038_v27  ;;  %v1036_v17 = vmul.f32 %v4403_v22, %v1035_v37  ;;  %vm1057_vm4 = vweird.f32 %v976_v28  ;;  %v1217_v9 = vpop.f32.mrf.mxu3 }
 0x532   :  { %v1064_v51 = vor.u32 1.1754944e-38, %v1063_v48  ;;  %vm1062_vm8 = vcmp.eq.f32.partialorder %v1061_v49, 8.507059e+37 }
 0x533   :  { %v1040_v7 = vmul.f32 %v3769_v23, %v1039_v33  ;;  %3490 = vmatmul.msk.f32.gmra.mxu1 %vm532_vm7, %v1036_v17 }
 0x535   :  { %v1041_v36 = vadd.f32 %v3769_v23, %v1040_v7 }
 0x536   :  { %v3771_v40 = vpop.eup %3770 }
 0x537   :  { %v1053_v43 = vmul.f32 %v3771_v40, %v976_v28  ;;  %v1045_v44 = vsel %vm1044_vm1, %v3769_v23, %v1041_v36  ;;  %vm1058_vm3 = vweird.f32 %v3771_v40  ;;  %v3892_v28 = vld [vmem:[%s5478_s29 + $0x18] sm:$0xff] }
 0x538   :  { %v1050_v45 = vsel %vm1047_vm2, %v1049_v41, %v1045_v44  ;;  %vm1059_vm6 = vmor %vm1057_vm4, %vm1058_vm3 }
 0x539   :  { %v1054_v46 = vsub.f32 1.0, %v1053_v43  ;;  %v1051_v47 = vmul.f32 %v4407_v29, %v1050_v45  ;;  %v3493_v29 = vld [vmem:[%s5458_s6 + $0x10] sm:$0xff]  ;;  %v1220_v63 = vpop.f32.mrf.mxu3 }
 0x53a   :  { %1156 = vmatpush.msrb.mxu2 %v3493_v29 }
 0x53b   :  { %v1055_v22 = vmul.f32 %v3771_v40, %v1054_v46  ;;  %3491 = vmatmul.msk.f32.gmra.mxu1 %vm532_vm7, %v1051_v47  ;;  %v3894_v46 = vld [vmem:[%s5478_s29 + $0x28] sm:$0xff] }
 0x53d   :  { %v1056_v50 = vadd.f32 %v3771_v40, %v1055_v22 }
 0x53f   :  { %v1060_v52 = vsel %vm1059_vm6, %v3771_v40, %v1056_v50 }
 0x540   :  { %v1065_v53 = vsel %vm1062_vm8, %v1064_v51, %v1060_v52 }
 0x541   :  { %v1066_v55 = vmul.f32 %v4411_v32, %v1065_v53  ;;  %v1223_v33 = vpop.f32.mrf.mxu3 }
 0x543   :  { %3492 = vmatmul.msk.f32.gmra.mxu1 %vm532_vm7, %v1066_v55 }
 0x549   :  { %v1226_v43 = vpop.f32.mrf.mxu3 }
 0x598   :  { %v1102_v56 = vpop.f32.mrf.mxu1 }
 0x599   :  { %3495 = vmatmul.msk.f32.vlgmr.msrb.gmra.mxu2 %vm460_vm5, %v1102_v56 }
 0x5a0   :  { %v1105_v57 = vpop.f32.mrf.mxu1 }
 0x5a1   :  { %3496 = vmatmul.msk.f32.gmra.mxu2 %vm460_vm5, %v1105_v57 }
 0x5a8   :  { %v1108_v54 = vpop.f32.mrf.mxu1 }
 0x5a9   :  { %3497 = vmatmul.msk.f32.gmra.mxu2 %vm460_vm5, %v1108_v54 }
 0x5b0   :  { %v1111_v58 = vpop.f32.mrf.mxu1 }
 0x5b1   :  { %3498 = vmatmul.msk.f32.gmra.mxu2 %vm460_vm5, %v1111_v58 }
 0x5b8   :  { %v1114_v32 = vpop.f32.mrf.mxu1 }
 0x5b9   :  { %3499 = vmatmul.msk.f32.gmra.mxu2 %vm460_vm5, %v1114_v32 }
 0x5c0   :  { %v1117_v60 = vpop.f32.mrf.mxu1 }
 0x5c1   :  { %3500 = vmatmul.msk.f32.gmra.mxu2 %vm460_vm5, %v1117_v60 }
 0x61c   :  { %v1158_v62 = vpop.f32.mrf.mxu2 }
 0x61d   :  { %v1212_v0 = vadd.f32 %v1211_v25, %v1158_v62 }
 0x61f   :  { %v1229_v39 = vadd.f32 %v3889_v4, %v1212_v0 }
 0x621   :  { %v4447_v6 = vadd.f32 %v1235_v2, %v1229_v39 }
 0x623   :  { %v1242_v59 = vsel %vm171_vm0, %v4447_v6, 0.0 }
 0x624   :  { %1243 = vadd.xlane.f32.xlu0 %v1242_v59  ;;  %v1161_v8 = vpop.f32.mrf.mxu2 }
 0x625   :  { %v1215_v24 = vadd.f32 %v1214_v61, %v1161_v8 }
 0x627   :  { %v1230_v13 = vadd.f32 %v3890_v10, %v1215_v24 }
 0x629   :  { %v4454_v14 = vadd.f32 %v1235_v2, %v1230_v13 }
 0x62b   :  { %v1245_v11 = vsel %vm171_vm0, %v4454_v14, 0.0 }
 0x62c   :  { %1246 = vadd.xlane.f32.xlu1 %v1245_v11  ;;  %v1164_v15 = vpop.f32.mrf.mxu2 }
 0x62d   :  { %v1218_v16 = vadd.f32 %v1217_v9, %v1164_v15 }
 0x62f   :  { %v1231_v21 = vadd.f32 %v3891_v20, %v1218_v16 }
 0x631   :  { %v4461_v38 = vadd.f32 %v1235_v2, %v1231_v21  ;;  %v1395_v21 = vld [vmem:[%s5459_s7 + $0x38] sm:$0xff] }
 0x632   :  { %1467 = vmatpush.msrb.mxu1 %v1395_v21 }
 0x633   :  { %v1248_v23 = vsel %vm171_vm0, %v4461_v38, 0.0 }
 0x634   :  { %1249 = vadd.xlane.f32.xlu2 %v1248_v23  ;;  %v1167_v26 = vpop.f32.mrf.mxu2  ;;  %v1393_v23 = vld [vmem:[%s5459_s7 + $0x28] sm:$0xff] }
 0x635   :  { %v1221_v27 = vadd.f32 %v1220_v63, %v1167_v26  ;;  %v1394_v63 = vld [vmem:[%s5459_s7 + $0x30] sm:$0xff]  ;;  %v1392_v26 = vld [vmem:[%s5459_s7 + $0x20] sm:$0xff]  ;;  %1468 = vmatpush.msrb.mxu1 %v1393_v23 }
 0x636   :  { %1432 = vmatpush.msrb.mxu0 %v1394_v63 }
 0x637   :  { %v1232_v31 = vadd.f32 %v3892_v28, %v1221_v27  ;;  %v1390_v27 = vld [vmem:[%s5459_s7 + $0x10] sm:$0xff]  ;;  %v1391_v28 = vld [vmem:[%s5459_s7 + $0x18] sm:$0xff] }
 0x638   :  { %1433 = vmatpush.msrb.mxu0 %v1392_v26  ;;  %1469 = vmatpush.msrb.mxu1 %v1391_v28 }
 0x639   :  { %v4468_v37 = vadd.f32 %v1235_v2, %v1232_v31  ;;  %v1388_v31 = vld [vmem:[%s5459_s7] sm:$0xff] }
 0x63a   :  { %1434 = vmatpush.msrb.mxu0 %v1390_v27 }
 0x63b   :  { %v1251_v17 = vsel %vm171_vm0, %v4468_v37, 0.0 }
 0x63c   :  { %1252 = vadd.xlane.f32.xlu0 %v1251_v17  ;;  %v1170_v34 = vpop.f32.mrf.mxu2  ;;  %1435 = vmatpush.msrb.mxu0 %v1388_v31 }
 0x63d   :  { %v1224_v7 = vadd.f32 %v1223_v33, %v1170_v34  ;;  %v1389_v33 = vld [vmem:[%s5459_s7 + $0x8] sm:$0xff] }
 0x63e   :  { %1470 = vmatpush.msrb.mxu1 %v1389_v33 }
 0x63f   :  { %v1233_v36 = vadd.f32 %v3893_v35, %v1224_v7 }
 0x641   :  { %v4475_v40 = vadd.f32 %v1235_v2, %v1233_v36 }
 0x643   :  { %v1254_v41 = vsel %vm171_vm0, %v4475_v40, 0.0 }
 0x644   :  { %1255 = vadd.xlane.f32.xlu1 %v1254_v41  ;;  %v1173_v44 = vpop.f32.mrf.mxu2 }
 0x645   :  { %v1227_v45 = vadd.f32 %v1226_v43, %v1173_v44 }
 0x647   :  { %v1234_v47 = vadd.f32 %v3894_v46, %v1227_v45 }
 0x649   :  { %v4482_v48 = vadd.f32 %v1235_v2, %v1234_v47 }
 0x64b   :  { %v1257_v22 = vsel %vm171_vm0, %v4482_v48, 0.0 }
 0x64c   :  { %1258 = vadd.xlane.f32.xlu2 %v1257_v22 }
 0x697   :  { %v1244_v49 = vpop.xlane.xlu0 %1243 }
 0x698   :  { %v1260_v50 = vmul.f32 %v1244_v49, %v4018_v18 }
 0x69a   :  { %v4488_v51 = vsub.f32 %v4447_v6, %v1260_v50 }
 0x69c   :  { %v1272_v52 = vmul.f32 %v4488_v51, %v4488_v51 }
 0x69e   :  { %v1278_v53 = vsel %vm171_vm0, %v1272_v52, 0.0 }
 0x69f   :  { %v1247_v55 = vpop.xlane.xlu1 %1246  ;;  %1279 = vadd.xlane.f32.xlu0 %v1278_v53 }
 0x6a0   :  { %v1261_v29 = vmul.f32 %v1247_v55, %v4018_v18 }
 0x6a2   :  { %v4495_v56 = vsub.f32 %v4454_v14, %v1261_v29  ;;  %v4556_v29 = vperm.slane %v4441_v1, 2 }
 0x6a4   :  { %v1273_v57 = vmul.f32 %v4495_v56, %v4495_v56 }
 0x6a6   :  { %v1281_v54 = vsel %vm171_vm0, %v1273_v57, 0.0 }
 0x6a7   :  { %v1250_v58 = vpop.xlane.xlu2 %1249  ;;  %1282 = vadd.xlane.f32.xlu1 %v1281_v54 }
 0x6a8   :  { %v1262_v32 = vmul.f32 %v1250_v58, %v4018_v18 }
 0x6aa   :  { %v4502_v60 = vsub.f32 %v4461_v38, %v1262_v32  ;;  %v4560_v32 = vperm.slane %v4441_v1, 3 }
 0x6ac   :  { %v1274_v25 = vmul.f32 %v4502_v60, %v4502_v60 }
 0x6ae   :  { %v1284_v61 = vsel %vm171_vm0, %v1274_v25, 0.0 }
 0x6af   :  { %1285 = vadd.xlane.f32.xlu2 %v1284_v61  ;;  %v1253_v62 = vpop.xlane.xlu0 %1252 }
 0x6b0   :  { %v1263_v0 = vmul.f32 %v1253_v62, %v4018_v18 }
 0x6b2   :  { %v4509_v2 = vsub.f32 %v4468_v37, %v1263_v0 }
 0x6b4   :  { %v1275_v4 = vmul.f32 %v4509_v2, %v4509_v2 }
 0x6b6   :  { %v1287_v39 = vsel %vm171_vm0, %v1275_v4, 0.0 }
 0x6b7   :  { %v1256_v59 = vpop.xlane.xlu1 %1255  ;;  %1288 = vadd.xlane.f32.xlu0 %v1287_v39 }
 0x6b8   :  { %v1264_v8 = vmul.f32 %v1256_v59, %v4018_v18 }
 0x6ba   :  { %v4516_v24 = vsub.f32 %v4475_v40, %v1264_v8 }
 0x6bc   :  { %v1276_v9 = vmul.f32 %v4516_v24, %v4516_v24 }
 0x6be   :  { %v1290_v10 = vsel %vm171_vm0, %v1276_v9, 0.0 }
 0x6bf   :  { %1291 = vadd.xlane.f32.xlu1 %v1290_v10  ;;  %v1259_v13 = vpop.xlane.xlu2 %1258 }
 0x6c0   :  { %v1265_v11 = vmul.f32 %v1259_v13, %v4018_v18 }
 0x6c2   :  { %v4523_v15 = vsub.f32 %v4482_v48, %v1265_v11 }
 0x6c4   :  { %v1277_v16 = vmul.f32 %v4523_v15, %v4523_v15 }
 0x6c6   :  { %v1293_v20 = vsel %vm171_vm0, %v1277_v16, 0.0 }
 0x6c7   :  { %1294 = vadd.xlane.f32.xlu2 %v1293_v20 }
 0x712   :  { %v1280_v17 = vpop.xlane.xlu0 %1279 }
 0x713   :  { %v1296_v34 = vmul.f32 %v1280_v17, %v4018_v18  ;;  %v1564_v17 = vld [vmem:[%s5460_s9 + $0x70] sm:$0xff] }
 0x715   :  { %v1302_v7 = vadd.f32 1e-05, %v1296_v34 }
 0x717   :  { %3772 = vrsqrt.f32 %v1302_v7  ;;  %vm1314_vm10 = vweird.f32 %v1302_v7 }
 0x71a   :  { %v1283_v35 = vpop.xlane.xlu1 %1282 }
 0x71b   :  { %v1297_v36 = vmul.f32 %v1283_v35, %v4018_v18 }
 0x71d   :  { %v3773_v41 = vpop.eup %3772  ;;  %v1303_v43 = vadd.f32 1e-05, %v1297_v36  ;;  %v1563_v36 = vld [vmem:[%s5460_s9 + $0x68] sm:$0xff] }
 0x71e   :  { %v1309_v44 = vmul.f32 %v3773_v41, %v1302_v7  ;;  %vm1315_vm9 = vweird.f32 %v3773_v41 }
 0x71f   :  { %3774 = vrsqrt.f32 %v1303_v43  ;;  %vm1316_vm11 = vmor %vm1314_vm10, %vm1315_vm9  ;;  %vm1324_vm13 = vweird.f32 %v1303_v43 }
 0x720   :  { %v1310_v45 = vmul.f32 %v3773_v41, %v1309_v44 }
 0x722   :  { %v1311_v46 = vmul.f32 0.5, %v1310_v45  ;;  %v1286_v47 = vpop.xlane.xlu2 %1285 }
 0x723   :  { %v1298_v22 = vmul.f32 %v1286_v47, %v4018_v18 }
 0x724   :  { %v1312_v49 = vsub.f32 1.5, %v1311_v46 }
 0x725   :  { %v3775_v50 = vpop.eup %3774  ;;  %v1304_v52 = vadd.f32 1e-05, %v1298_v22 }
 0x726   :  { %v1313_v53 = vmul.f32 %v3773_v41, %v1312_v49  ;;  %v1319_v55 = vmul.f32 %v3775_v50, %v1303_v43  ;;  %vm1325_vm12 = vweird.f32 %v3775_v50 }
 0x727   :  { %3776 = vrsqrt.f32 %v1304_v52  ;;  %vm1326_vm14 = vmor %vm1324_vm13, %vm1325_vm12  ;;  %vm1334_vm1 = vweird.f32 %v1304_v52 }
 0x728   :  { %v1317_v57 = vsel %vm1316_vm11, %v3773_v41, %v1313_v53  ;;  %v1320_v54 = vmul.f32 %v3775_v50, %v1319_v55 }
 0x729   :  { %v1368_v58 = vmul.f32 %v1317_v57, %v4488_v51 }
 0x72a   :  { %v1321_v25 = vmul.f32 0.5, %v1320_v54  ;;  %v1289_v61 = vpop.xlane.xlu0 %1288 }
 0x72b   :  { %v1375_v62 = vmul.f32 %v4556_v29, %v1368_v58  ;;  %v1299_v0 = vmul.f32 %v1289_v61, %v4018_v18 }
 0x72c   :  { %v1322_v4 = vsub.f32 1.5, %v1321_v25 }
 0x72d   :  { %v3777_v39 = vpop.eup %3776  ;;  %v1305_v59 = vadd.f32 1e-05, %v1299_v0  ;;  %v1382_v8 = vadd.f32 %v4560_v32, %v1375_v62 }
 0x72e   :  { %v1323_v9 = vmul.f32 %v3775_v50, %v1322_v4  ;;  %v1329_v10 = vmul.f32 %v3777_v39, %v1304_v52  ;;  %vm1335_vm15 = vweird.f32 %v3777_v39 }
 0x72f   :  { %3778 = vrsqrt.f32 %v1305_v59  ;;  %3507 = vmatmul.msk.f32.vlgmr.msrb.gmra.mxu0 %vm171_vm0, %v1382_v8  ;;  %3513 = vmatmul.msk.f32.vlgmr.msrb.gmra.mxu1 %vm171_vm0, %v1382_v8  ;;  %vm1336_vm2 = vmor %vm1334_vm1, %vm1335_vm15  ;;  %vm1344_vm4 = vweird.f32 %v1305_v59 }
 0x730   :  { %v1327_v51 = vsel %vm1326_vm14, %v3775_v50, %v1323_v9  ;;  %v1330_v13 = vmul.f32 %v3777_v39, %v1329_v10 }
 0x731   :  { %v1369_v11 = vmul.f32 %v1327_v51, %v4495_v56  ;;  %v1565_v56 = vld [vmem:[%s5460_s9 + $0x78] sm:$0xff] }
 0x732   :  { %v1331_v16 = vmul.f32 0.5, %v1330_v13  ;;  %v1292_v20 = vpop.xlane.xlu1 %1291  ;;  %1566 = vmatpush.msra.mxu2 %v1565_v56  ;;  %v1550_v56 = vld [vmem:[%s5460_s9] sm:$0xff] }
 0x733   :  { %v1300_v21 = vmul.f32 %v1292_v20, %v4018_v18  ;;  %v1376_v63 = vmul.f32 %v4556_v29, %v1369_v11  ;;  %v1562_v20 = vld [vmem:[%s5460_s9 + $0x60] sm:$0xff] }
 0x734   :  { %v1332_v23 = vsub.f32 1.5, %v1331_v16  ;;  %1567 = vmatpush.msra.mxu2 %v1564_v17  ;;  %v1396_v17 = vld [vmem:[%s5461_s8] sm:$0x3] }
 0x735   :  { %v3779_v26 = vpop.eup %3778  ;;  %v1306_v27 = vadd.f32 1e-05, %v1300_v21  ;;  %v1383_v28 = vadd.f32 %v4560_v32, %v1376_v63  ;;  %v1561_v21 = vld [vmem:[%s5460_s9 + $0x58] sm:$0xff] }
 0x736   :  { %v1333_v31 = vmul.f32 %v3777_v39, %v1332_v23  ;;  %v1339_v33 = vmul.f32 %v3779_v26, %v1305_v59  ;;  %vm1345_vm3 = vweird.f32 %v3779_v26  ;;  %1568 = vmatpush.msra.mxu2 %v1563_v36  ;;  %v1557_v63 = vld [vmem:[%s5460_s9 + $0x38] sm:$0xff]  ;;  %v1556_v23 = vld [vmem:[%s5460_s9 + $0x30] sm:$0xff] }
 0x737   :  { %3780 = vrsqrt.f32 %v1306_v27  ;;  %3508 = vmatmul.msk.f32.gmra.mxu0 %vm171_vm0, %v1383_v28  ;;  %3514 = vmatmul.msk.f32.gmra.mxu1 %vm171_vm0, %v1383_v28  ;;  %vm1346_vm6 = vmor %vm1344_vm4, %vm1345_vm3  ;;  %vm1354_vm9 = vweird.f32 %v1306_v27  ;;  %v1553_v28 = vld [vmem:[%s5460_s9 + $0x18] sm:$0xff] }
 0x738   :  { %v1337_v34 = vsel %vm1336_vm2, %v3777_v39, %v1333_v31  ;;  %v1340_v7 = vmul.f32 %v3779_v26, %v1339_v33  ;;  %1569 = vmatpush.msra.mxu2 %v1562_v20  ;;  %v1552_v31 = vld [vmem:[%s5460_s9 + $0x10] sm:$0xff]  ;;  %v1551_v33 = vld [vmem:[%s5460_s9 + $0x8] sm:$0xff] }
 0x739   :  { %v1370_v35 = vmul.f32 %v1337_v34, %v4502_v60  ;;  %v4645_v34 = vperm.slane %v1396_v17, 1 }
 0x73a   :  { %v1341_v41 = vmul.f32 0.5, %v1340_v7  ;;  %v1295_v43 = vpop.xlane.xlu2 %1294  ;;  %1570 = vmatpush.msra.mxu2 %v1561_v21 }
 0x73b   :  { %v1301_v44 = vmul.f32 %v1295_v43, %v4018_v18  ;;  %v1377_v45 = vmul.f32 %v4556_v29, %v1370_v35 }
 0x73c   :  { %v1342_v46 = vsub.f32 1.5, %v1341_v41 }
 0x73d   :  { %v3781_v47 = vpop.eup %3780  ;;  %v1307_v22 = vadd.f32 1e-05, %v1301_v44  ;;  %v1384_v49 = vadd.f32 %v4560_v32, %v1377_v45 }
 0x73e   :  { %v1343_v50 = vmul.f32 %v3779_v26, %v1342_v46  ;;  %v1349_v60 = vmul.f32 %v3781_v47, %v1306_v27  ;;  %vm1355_vm8 = vweird.f32 %v3781_v47  ;;  %v1554_v27 = vld [vmem:[%s5460_s9 + $0x20] sm:$0xff] }
 0x73f   :  { %3782 = vrsqrt.f32 %v1307_v22  ;;  %3509 = vmatmul.msk.f32.gmra.mxu0 %vm171_vm0, %v1384_v49  ;;  %3515 = vmatmul.msk.f32.gmra.mxu1 %vm171_vm0, %v1384_v49  ;;  %vm1356_vm10 = vmor %vm1354_vm9, %vm1355_vm8  ;;  %vm1364_vm12 = vweird.f32 %v1307_v22 }
 0x740   :  { %v1347_v52 = vsel %vm1346_vm6, %v3779_v26, %v1343_v50  ;;  %v1350_v53 = vmul.f32 %v3781_v47, %v1349_v60  ;;  %v1555_v26 = vld [vmem:[%s5460_s9 + $0x28] sm:$0xff] }
 0x741   :  { %v1371_v55 = vmul.f32 %v1347_v52, %v4509_v2 }
 0x742   :  { %v1351_v57 = vmul.f32 0.5, %v1350_v53 }
 0x743   :  { %v1378_v54 = vmul.f32 %v4556_v29, %v1371_v55 }
 0x744   :  { %v1352_v58 = vsub.f32 1.5, %v1351_v57  ;;  %v4650_v57 = vperm.slane %v1396_v17, 0 }
 0x745   :  { %v3783_v25 = vpop.eup %3782  ;;  %v1385_v61 = vadd.f32 %v4560_v32, %v1378_v54 }
 0x746   :  { %v1353_v62 = vmul.f32 %v3781_v47, %v1352_v58  ;;  %v1359_v0 = vmul.f32 %v3783_v25, %v1307_v22  ;;  %vm1365_vm11 = vweird.f32 %v3783_v25 }
 0x747   :  { %3510 = vmatmul.msk.f32.gmra.mxu0 %vm171_vm0, %v1385_v61  ;;  %3516 = vmatmul.msk.f32.gmra.mxu1 %vm171_vm0, %v1385_v61  ;;  %vm1366_vm13 = vmor %vm1364_vm12, %vm1365_vm11 }
 0x748   :  { %v1357_v4 = vsel %vm1356_vm10, %v3781_v47, %v1353_v62  ;;  %v1360_v39 = vmul.f32 %v3783_v25, %v1359_v0 }
 0x749   :  { %v1372_v2 = vmul.f32 %v1357_v4, %v4516_v24 }
 0x74a   :  { %v1361_v59 = vmul.f32 0.5, %v1360_v39 }
 0x74b   :  { %v1379_v8 = vmul.f32 %v4556_v29, %v1372_v2 }
 0x74c   :  { %v1362_v9 = vsub.f32 1.5, %v1361_v59 }
 0x74d   :  { %v1386_v10 = vadd.f32 %v4560_v32, %v1379_v8 }
 0x74e   :  { %v1363_v51 = vmul.f32 %v3783_v25, %v1362_v9 }
 0x74f   :  { %3511 = vmatmul.msk.f32.gmra.mxu0 %vm171_vm0, %v1386_v10  ;;  %3517 = vmatmul.msk.f32.gmra.mxu1 %vm171_vm0, %v1386_v10 }
 0x750   :  { %v1367_v13 = vsel %vm1366_vm13, %v3783_v25, %v1363_v51 }
 0x751   :  { %v1373_v11 = vmul.f32 %v1367_v13, %v4523_v15  ;;  %v1560_v15 = vld [vmem:[%s5460_s9 + $0x50] sm:$0xff] }
 0x752   :  { %1571 = vmatpush.msra.mxu2 %v1560_v15 }
 0x753   :  { %v1380_v16 = vmul.f32 %v4556_v29, %v1373_v11  ;;  %v1559_v29 = vld [vmem:[%s5460_s9 + $0x48] sm:$0xff] }
 0x754   :  { %1572 = vmatpush.msra.mxu2 %v1559_v29 }
 0x755   :  { %v1387_v24 = vadd.f32 %v4560_v32, %v1380_v16  ;;  %v1558_v32 = vld [vmem:[%s5460_s9 + $0x40] sm:$0xff] }
 0x756   :  { %1573 = vmatpush.msra.mxu2 %v1558_v32 }
 0x757   :  { %3512 = vmatmul.msk.f32.gmra.mxu0 %vm171_vm0, %v1387_v24  ;;  %3518 = vmatmul.msk.f32.gmra.mxu1 %vm171_vm0, %v1387_v24 }
 0x758   :  { %1574 = vmatpush.msra.mxu2 %v1557_v63 }
 0x75a   :  { %1575 = vmatpush.msra.mxu2 %v1556_v23 }
 0x75c   :  { %1576 = vmatpush.msra.mxu2 %v1555_v26 }
 0x75e   :  { %1577 = vmatpush.msra.mxu2 %v1554_v27 }
 0x760   :  { %1578 = vmatpush.msra.mxu2 %v1553_v28 }
 0x762   :  { %1579 = vmatpush.msra.mxu2 %v1552_v31 }
 0x764   :  { %1580 = vmatpush.msra.mxu2 %v1551_v33 }
 0x766   :  { %1581 = vmatpush.msra.mxu2 %v1550_v56 }
 0x7ac   :  { %v1472_v7 = vpop.f32.mrf.mxu1  ;;  %v1437_v45 = vpop.f32.mrf.mxu0 }
 0x7ad   :  { %v1473_v35 = vadd.f32 %v1472_v7, %v4645_v34  ;;  %v1438_v39 = vadd.f32 %v1437_v45, %v4650_v57 }
 0x7af   :  { %v1496_v36 = vmul.f32 0.044715, %v1473_v35  ;;  %v1490_v62 = vmul.f32 0.5, %v1473_v35 }
 0x7b1   :  { %v1502_v41 = vmul.f32 %v1496_v36, %v1473_v35 }
 0x7b3   :  { %v1508_v43 = vmul.f32 %v1502_v41, %v1473_v35 }
 0x7b4   :  { %v1475_v44 = vpop.f32.mrf.mxu1  ;;  %v1440_v58 = vpop.f32.mrf.mxu0 }
 0x7b5   :  { %v1476_v46 = vadd.f32 %v1475_v44, %v4645_v34  ;;  %v1514_v47 = vadd.f32 %v1508_v43, %v1473_v35  ;;  %v1441_v29 = vadd.f32 %v1440_v58, %v4650_v57 }
 0x7b7   :  { %v1520_v22 = vmul.f32 0.7978846, %v1514_v47  ;;  %v1497_v49 = vmul.f32 0.044715, %v1476_v46  ;;  %v1491_v24 = vmul.f32 0.5, %v1476_v46 }
 0x7b9   :  { %3784 = vtanh.f32 %v1520_v22  ;;  %v1503_v50 = vmul.f32 %v1497_v49, %v1476_v46 }
 0x7bb   :  { %v1509_v60 = vmul.f32 %v1503_v50, %v1476_v46 }
 0x7bc   :  { %v1478_v52 = vpop.f32.mrf.mxu1  ;;  %v1443_v21 = vpop.f32.mrf.mxu0 }
 0x7bd   :  { %v1479_v53 = vadd.f32 %v1478_v52, %v4645_v34  ;;  %v1515_v55 = vadd.f32 %v1509_v60, %v1476_v46  ;;  %v1444_v36 = vadd.f32 %v1443_v21, %v4650_v57  ;;  %v1607_v21 = vperm.slane %v4441_v1, 5 }
 0x7bf   :  { %v3785_v54 = vpop.eup %3784  ;;  %v1521_v25 = vmul.f32 0.7978846, %v1515_v55  ;;  %v1498_v61 = vmul.f32 0.044715, %v1479_v53  ;;  %v1492_v17 = vmul.f32 0.5, %v1479_v53 }
 0x7c0   :  { %v1532_v0 = vadd.f32 1.0, %v3785_v54 }
 0x7c1   :  { %3786 = vtanh.f32 %v1521_v25  ;;  %v1504_v4 = vmul.f32 %v1498_v61, %v1479_v53 }
 0x7c2   :  { %v1538_v2 = vmul.f32 %v1532_v0, %v1490_v62 }
 0x7c3   :  { %v1510_v59 = vmul.f32 %v1504_v4, %v1479_v53 }
 0x7c4   :  { %v1481_v8 = vpop.f32.mrf.mxu1  ;;  %v1544_v9 = vmul.f32 %v1538_v2, %v1438_v39  ;;  %v1446_v43 = vpop.f32.mrf.mxu0 }
 0x7c5   :  { %v1482_v10 = vadd.f32 %v1481_v8, %v4645_v34  ;;  %v1516_v51 = vadd.f32 %v1510_v59, %v1479_v53  ;;  %v1447_v54 = vadd.f32 %v1446_v43, %v4650_v57 }
 0x7c6   :  { %1582 = vmatmul.f32.vlgmr.msra.gmra.mxu2 %v1544_v9 }
 0x7c7   :  { %v3787_v13 = vpop.eup %3786  ;;  %v1522_v11 = vmul.f32 0.7978846, %v1516_v51  ;;  %v1499_v16 = vmul.f32 0.044715, %v1482_v10  ;;  %v1493_v52 = vmul.f32 0.5, %v1482_v10 }
 0x7c8   :  { %v1533_v20 = vadd.f32 1.0, %v3787_v13 }
 0x7c9   :  { %3788 = vtanh.f32 %v1522_v11  ;;  %v1505_v15 = vmul.f32 %v1499_v16, %v1482_v10 }
 0x7ca   :  { %v1539_v32 = vmul.f32 %v1533_v20, %v1491_v24 }
 0x7cb   :  { %v1511_v63 = vmul.f32 %v1505_v15, %v1482_v10 }
 0x7cc   :  { %v1484_v23 = vpop.f32.mrf.mxu1  ;;  %v1545_v26 = vmul.f32 %v1539_v32, %v1441_v29  ;;  %v1449_v62 = vpop.f32.mrf.mxu0 }
 0x7cd   :  { %v1485_v27 = vadd.f32 %v1484_v23, %v4645_v34  ;;  %v1517_v28 = vadd.f32 %v1511_v63, %v1482_v10  ;;  %v1450_v59 = vadd.f32 %v1449_v62, %v4650_v57 }
 0x7ce   :  { %1585 = vmatmul.f32.gmra.mxu2 %v1545_v26 }
 0x7cf   :  { %v3789_v31 = vpop.eup %3788  ;;  %v1523_v33 = vmul.f32 0.7978846, %v1517_v28  ;;  %v1500_v56 = vmul.f32 0.044715, %v1485_v27 }
 0x7d0   :  { %v1534_v7 = vadd.f32 1.0, %v3789_v31 }
 0x7d1   :  { %3790 = vtanh.f32 %v1523_v33  ;;  %v1506_v35 = vmul.f32 %v1500_v56, %v1485_v27 }
 0x7d2   :  { %v1540_v41 = vmul.f32 %v1534_v7, %v1492_v17 }
 0x7d3   :  { %v1512_v44 = vmul.f32 %v1506_v35, %v1485_v27 }
 0x7d4   :  { %v1487_v45 = vpop.f32.mrf.mxu1  ;;  %v1546_v46 = vmul.f32 %v1540_v41, %v1444_v36  ;;  %v1452_v51 = vpop.f32.mrf.mxu0 }
 0x7d5   :  { %v1488_v47 = vadd.f32 %v1487_v45, %v4645_v34  ;;  %v1518_v22 = vadd.f32 %v1512_v44, %v1485_v27  ;;  %v1494_v34 = vmul.f32 0.5, %v1485_v27  ;;  %v1453_v16 = vadd.f32 %v1452_v51, %v4650_v57 }
 0x7d6   :  { %1588 = vmatmul.f32.gmra.mxu2 %v1546_v46 }
 0x7d7   :  { %v3791_v49 = vpop.eup %3790  ;;  %v1501_v50 = vmul.f32 0.044715, %v1488_v47  ;;  %v1524_v60 = vmul.f32 0.7978846, %v1518_v22  ;;  %v1495_v13 = vmul.f32 0.5, %v1488_v47 }
 0x7d8   :  { %v1535_v55 = vadd.f32 1.0, %v3791_v49 }
 0x7d9   :  { %v1507_v53 = vmul.f32 %v1501_v50, %v1488_v47  ;;  %3792 = vtanh.f32 %v1524_v60 }
 0x7da   :  { %v1541_v58 = vmul.f32 %v1535_v55, %v1493_v52 }
 0x7db   :  { %v1513_v25 = vmul.f32 %v1507_v53, %v1488_v47 }
 0x7dc   :  { %v1547_v61 = vmul.f32 %v1541_v58, %v1447_v54 }
 0x7dd   :  { %v1519_v0 = vadd.f32 %v1513_v25, %v1488_v47 }
 0x7de   :  { %1591 = vmatmul.f32.gmra.mxu2 %v1547_v61 }
 0x7df   :  { %v3793_v4 = vpop.eup %3792  ;;  %v1525_v39 = vmul.f32 0.7978846, %v1519_v0 }
 0x7e0   :  { %v1536_v2 = vadd.f32 1.0, %v3793_v4 }
 0x7e1   :  { %3794 = vtanh.f32 %v1525_v39 }
 0x7e2   :  { %v1542_v8 = vmul.f32 %v1536_v2, %v1494_v34 }
 0x7e4   :  { %v1548_v9 = vmul.f32 %v1542_v8, %v1450_v59 }
 0x7e6   :  { %1594 = vmatmul.f32.gmra.mxu2 %v1548_v9 }
 0x7e7   :  { %v3795_v10 = vpop.eup %3794 }
 0x7e8   :  { %v1537_v11 = vadd.f32 1.0, %v3795_v10 }
 0x7ea   :  { %v1543_v24 = vmul.f32 %v1537_v11, %v1495_v13 }
 0x7ec   :  { %v1549_v20 = vmul.f32 %v1543_v24, %v1453_v16  ;;  %v3533_v24 = vld [vmem:[%s5480_s0 + $0x58] sm:$0xff] }
 0x7ed   :  { %1837 = vmatpush.msra.mxu0 %v3533_v24 }
 0x7ee   :  { %1597 = vmatmul.f32.gmra.mxu2 %v1549_v20  ;;  %v3523_v20 = vld [vmem:[%s5479_s27 + $0x58] sm:$0xff] }
 0x7ef   :  { %1797 = vmatpush.msrb.mxu3 %v3523_v20 }
 0x849   :  { %v1583_v15 = vpop.f32.mrf.mxu2 }
 0x84a   :  { %v1601_v29 = vadd.f32 %v1583_v15, %v4447_v6  ;;  %v3532_v15 = vld [vmem:[%s5480_s0 + $0x50] sm:$0xff] }
 0x84b   :  { %1838 = vmatpush.msra.mxu0 %v3532_v15 }
 0x84c   :  { %v4663_v32 = vadd.f32 %v1607_v21, %v1601_v29  ;;  %v3522_v29 = vld [vmem:[%s5479_s27 + $0x50] sm:$0xff] }
 0x84d   :  { %1798 = vmatpush.msrb.mxu3 %v3522_v29 }
 0x84e   :  { %v1616_v63 = vsel %vm171_vm0, %v4663_v32, 0.0 }
 0x84f   :  { %1617 = vadd.xlane.f32.xlu0 %v1616_v63  ;;  %v3542_v63 = vld [vmem:[%s5456_s5 + $0x50] sm:$0xff] }
 0x851   :  { %v1586_v23 = vpop.f32.mrf.mxu2 }
 0x852   :  { %v1602_v26 = vadd.f32 %v1586_v23, %v4454_v14  ;;  %v3521_v23 = vld [vmem:[%s5479_s27 + $0x48] sm:$0xff] }
 0x853   :  { %1799 = vmatpush.msrb.mxu3 %v3521_v23 }
 0x854   :  { %v4668_v27 = vadd.f32 %v1607_v21, %v1602_v26  ;;  %v3531_v26 = vld [vmem:[%s5480_s0 + $0x48] sm:$0xff] }
 0x855   :  { %1839 = vmatpush.msra.mxu0 %v3531_v26 }
 0x856   :  { %v1619_v57 = vsel %vm171_vm0, %v4668_v27, 0.0 }
 0x857   :  { %1620 = vadd.xlane.f32.xlu1 %v1619_v57  ;;  %v3541_v57 = vld [vmem:[%s5456_s5 + $0x48] sm:$0xff] }
 0x859   :  { %v1589_v28 = vpop.f32.mrf.mxu2 }
 0x85a   :  { %v1603_v1 = vadd.f32 %v1589_v28, %v4461_v38  ;;  %v3520_v28 = vld [vmem:[%s5479_s27 + $0x40] sm:$0xff] }
 0x85b   :  { %1800 = vmatpush.msrb.mxu3 %v3520_v28 }
 0x85c   :  { %v4673_v31 = vadd.f32 %v1607_v21, %v1603_v1  ;;  %v3530_v1 = vld [vmem:[%s5480_s0 + $0x40] sm:$0xff] }
 0x85d   :  { %1840 = vmatpush.msra.mxu0 %v3530_v1 }
 0x85e   :  { %v1622_v6 = vsel %vm171_vm0, %v4673_v31, 0.0 }
 0x85f   :  { %1623 = vadd.xlane.f32.xlu2 %v1622_v6  ;;  %v3540_v6 = vld [vmem:[%s5456_s5 + $0x40] sm:$0xff] }
 0x861   :  { %v1592_v33 = vpop.f32.mrf.mxu2 }
 0x862   :  { %v1604_v56 = vadd.f32 %v1592_v33, %v4468_v37 }
 0x864   :  { %v4678_v17 = vadd.f32 %v1607_v21, %v1604_v56 }
 0x866   :  { %v1625_v14 = vsel %vm171_vm0, %v4678_v17, 0.0 }
 0x867   :  { %1626 = vadd.xlane.f32.xlu0 %v1625_v14 }
 0x869   :  { %v1595_v7 = vpop.f32.mrf.mxu2 }
 0x86a   :  { %v1605_v35 = vadd.f32 %v1595_v7, %v4475_v40 }
 0x86c   :  { %v4683_v36 = vadd.f32 %v1607_v21, %v1605_v35 }
 0x86e   :  { %v1628_v38 = vsel %vm171_vm0, %v4683_v36, 0.0 }
 0x86f   :  { %1629 = vadd.xlane.f32.xlu1 %v1628_v38 }
 0x871   :  { %v1598_v41 = vpop.f32.mrf.mxu2 }
 0x872   :  { %v1606_v43 = vadd.f32 %v1598_v41, %v4482_v48 }
 0x874   :  { %v4688_v44 = vadd.f32 %v1607_v21, %v1606_v43  ;;  %v3543_v21 = vld [vmem:[%s5456_s5 + $0x58] sm:$0xff] }
 0x875   :  { %1877 = vmatpush.msra.mxu1 %v3543_v21 }
 0x876   :  { %v1631_v37 = vsel %vm171_vm0, %v4688_v44, 0.0 }
 0x877   :  { %1632 = vadd.xlane.f32.xlu2 %v1631_v37  ;;  %1878 = vmatpush.msra.mxu1 %v3542_v63 }
 0x879   :  { %1879 = vmatpush.msra.mxu1 %v3541_v57 }
 0x87b   :  { %1880 = vmatpush.msra.mxu1 %v3540_v6 }
 0x8c2   :  { %v1618_v45 = vpop.xlane.xlu0 %1617 }
 0x8c3   :  { %v1634_v46 = vmul.f32 %v1618_v45, %v4018_v18 }
 0x8c5   :  { %v4694_v40 = vsub.f32 %v4663_v32, %v1634_v46 }
 0x8c7   :  { %v1646_v47 = vmul.f32 %v4694_v40, %v4694_v40 }
 0x8c9   :  { %v1652_v22 = vsel %vm171_vm0, %v1646_v47, 0.0 }
 0x8ca   :  { %v1621_v49 = vpop.xlane.xlu1 %1620  ;;  %1653 = vadd.xlane.f32.xlu0 %v1652_v22  ;;  %v3519_v22 = vld [vmem:[%s5457_s2 + $0x8] sm:$0x3f] }
 0x8cb   :  { %v1635_v48 = vmul.f32 %v1621_v49, %v4018_v18 }
 0x8cd   :  { %v4701_v50 = vsub.f32 %v4668_v27, %v1635_v48 }
 0x8cf   :  { %v1647_v60 = vmul.f32 %v4701_v50, %v4701_v50 }
 0x8d1   :  { %v1655_v52 = vsel %vm171_vm0, %v1647_v60, 0.0 }
 0x8d2   :  { %v1624_v55 = vpop.xlane.xlu2 %1623  ;;  %1656 = vadd.xlane.f32.xlu1 %v1655_v52 }
 0x8d3   :  { %v1636_v53 = vmul.f32 %v1624_v55, %v4018_v18 }
 0x8d5   :  { %v4708_v54 = vsub.f32 %v4673_v31, %v1636_v53  ;;  %v4776_v53 = vperm.slane %v3519_v22, 0 }
 0x8d7   :  { %v1648_v58 = vmul.f32 %v4708_v54, %v4708_v54 }
 0x8d9   :  { %v1658_v25 = vsel %vm171_vm0, %v1648_v58, 0.0 }
 0x8da   :  { %1659 = vadd.xlane.f32.xlu2 %v1658_v25  ;;  %v1627_v61 = vpop.xlane.xlu0 %1626 }
 0x8db   :  { %v1637_v62 = vmul.f32 %v1627_v61, %v4018_v18  ;;  %v4778_v61 = vperm.slane %v3519_v22, 1 }
 0x8dd   :  { %v4715_v0 = vsub.f32 %v4678_v17, %v1637_v62 }
 0x8df   :  { %v1649_v4 = vmul.f32 %v4715_v0, %v4715_v0 }
 0x8e1   :  { %v1661_v39 = vsel %vm171_vm0, %v1649_v4, 0.0 }
 0x8e2   :  { %v1630_v34 = vpop.xlane.xlu1 %1629  ;;  %1662 = vadd.xlane.f32.xlu0 %v1661_v39 }
 0x8e3   :  { %v1638_v2 = vmul.f32 %v1630_v34, %v4018_v18 }
 0x8e5   :  { %v4722_v59 = vsub.f32 %v4683_v36, %v1638_v2 }
 0x8e7   :  { %v1650_v8 = vmul.f32 %v4722_v59, %v4722_v59 }
 0x8e9   :  { %v1664_v9 = vsel %vm171_vm0, %v1650_v8, 0.0 }
 0x8ea   :  { %1665 = vadd.xlane.f32.xlu1 %v1664_v9  ;;  %v1633_v10 = vpop.xlane.xlu2 %1632 }
 0x8eb   :  { %v1639_v51 = vmul.f32 %v1633_v10, %v4018_v18 }
 0x8ed   :  { %v4729_v13 = vsub.f32 %v4688_v44, %v1639_v51 }
 0x8ef   :  { %v1651_v11 = vmul.f32 %v4729_v13, %v4729_v13 }
 0x8f1   :  { %v1667_v16 = vsel %vm171_vm0, %v1651_v11, 0.0 }
 0x8f2   :  { %1668 = vadd.xlane.f32.xlu2 %v1667_v16 }
 0x93d   :  { %v1654_v33 = vpop.xlane.xlu0 %1653 }
 0x93e   :  { %v1670_v56 = vmul.f32 %v1654_v33, %v4018_v18 }
 0x940   :  { %v1676_v14 = vadd.f32 1e-05, %v1670_v56  ;;  %v3573_v56 = vld [vmem:[%s5479_s27 + $0x78] sm:$0xff] }
 0x941   :  { %2188 = vmatpush.msrb.mxu0 %v3573_v56 }
 0x942   :  { %3796 = vrsqrt.f32 %v1676_v14  ;;  %vm1688_vm15 = vweird.f32 %v1676_v14 }
 0x945   :  { %v1657_v7 = vpop.xlane.xlu1 %1656 }
 0x946   :  { %v1671_v35 = vmul.f32 %v1657_v7, %v4018_v18  ;;  %v3572_v7 = vld [vmem:[%s5479_s27 + $0x70] sm:$0xff] }
 0x947   :  { %2189 = vmatpush.msrb.mxu0 %v3572_v7 }
 0x948   :  { %v3797_v38 = vpop.eup %3796  ;;  %v1677_v41 = vadd.f32 1e-05, %v1671_v35 }
 0x949   :  { %v1683_v43 = vmul.f32 %v3797_v38, %v1676_v14  ;;  %vm1689_vm14 = vweird.f32 %v3797_v38  ;;  %v3583_v14 = vld [vmem:[%s5480_s0 + $0x78] sm:$0xff] }
 0x94a   :  { %3798 = vrsqrt.f32 %v1677_v41  ;;  %vm1690_vm1 = vmor %vm1688_vm15, %vm1689_vm14  ;;  %vm1698_vm3 = vweird.f32 %v1677_v41  ;;  %2228 = vmatpush.msrb.mxu1 %v3583_v14 }
 0x94b   :  { %v1684_v37 = vmul.f32 %v3797_v38, %v1683_v43 }
 0x94d   :  { %v1685_v45 = vmul.f32 0.5, %v1684_v37  ;;  %v1660_v46 = vpop.xlane.xlu2 %1659  ;;  %v3571_v37 = vld [vmem:[%s5479_s27 + $0x68] sm:$0xff] }
 0x94e   :  { %v1672_v47 = vmul.f32 %v1660_v46, %v4018_v18  ;;  %2190 = vmatpush.msrb.mxu0 %v3571_v37 }
 0x94f   :  { %v1686_v49 = vsub.f32 1.5, %v1685_v45  ;;  %v3581_v45 = vld [vmem:[%s5480_s0 + $0x68] sm:$0xff] }
 0x950   :  { %v3799_v48 = vpop.eup %3798  ;;  %v1678_v60 = vadd.f32 1e-05, %v1672_v47 }
 0x951   :  { %v1687_v52 = vmul.f32 %v3797_v38, %v1686_v49  ;;  %v1693_v55 = vmul.f32 %v3799_v48, %v1677_v41  ;;  %vm1699_vm2 = vweird.f32 %v3799_v48 }
 0x952   :  { %3800 = vrsqrt.f32 %v1678_v60  ;;  %vm1700_vm4 = vmor %vm1698_vm3, %vm1699_vm2  ;;  %vm1708_vm8 = vweird.f32 %v1678_v60 }
 0x953   :  { %v1691_v58 = vsel %vm1690_vm1, %v3797_v38, %v1687_v52  ;;  %v1694_v25 = vmul.f32 %v3799_v48, %v1693_v55  ;;  %v3582_v38 = vld [vmem:[%s5480_s0 + $0x70] sm:$0xff] }
 0x954   :  { %v1742_v62 = vmul.f32 %v1691_v58, %v4694_v40  ;;  %2229 = vmatpush.msrb.mxu1 %v3582_v38  ;;  %v3580_v58 = vld [vmem:[%s5480_s0 + $0x60] sm:$0xff] }
 0x955   :  { %v1695_v4 = vmul.f32 0.5, %v1694_v25  ;;  %v1663_v39 = vpop.xlane.xlu0 %1662 }
 0x956   :  { %v1749_v34 = vmul.f32 %v4776_v53, %v1742_v62  ;;  %v1673_v2 = vmul.f32 %v1663_v39, %v4018_v18  ;;  %2230 = vmatpush.msrb.mxu1 %v3581_v45 }
 0x957   :  { %v1696_v8 = vsub.f32 1.5, %v1695_v4 }
 0x958   :  { %v3801_v9 = vpop.eup %3800  ;;  %v4784_v10 = vadd.f32 %v4778_v61, %v1749_v34  ;;  %v1679_v51 = vadd.f32 1e-05, %v1673_v2  ;;  %2231 = vmatpush.msrb.mxu1 %v3580_v58 }
 0x959   :  { %v1697_v11 = vmul.f32 %v3799_v48, %v1696_v8  ;;  %v1703_v16 = vmul.f32 %v3801_v9, %v1678_v60  ;;  %vm1709_vm6 = vweird.f32 %v3801_v9  ;;  %v3570_v60 = vld [vmem:[%s5479_s27 + $0x60] sm:$0xff] }
 0x95a   :  { %3802 = vrsqrt.f32 %v1679_v51  ;;  %3524 = vmatmul.msk.f32.vlgmr.msrb.gmra.mxu3 %vm171_vm0, %v4784_v10  ;;  %3534 = vmatmul.msk.f32.vlgmr.msra.gmra.mxu0 %vm171_vm0, %v4784_v10  ;;  %vm1710_vm9 = vmor %vm1708_vm8, %vm1709_vm6  ;;  %vm1718_vm11 = vweird.f32 %v1679_v51 }
 0x95b   :  { %v1701_v40 = vsel %vm1700_vm4, %v3799_v48, %v1697_v11  ;;  %v1704_v24 = vmul.f32 %v3801_v9, %v1703_v16  ;;  %3544 = vmatmul.msk.f32.vlgmr.msra.gmra.mxu1 %vm171_vm0, %v4784_v10  ;;  %2191 = vmatpush.msrb.mxu0 %v3570_v60  ;;  %v3590_v60 = vld [vmem:[%s5456_s5 + $0x60] sm:$0xff] }
 0x95c   :  { %v1743_v20 = vmul.f32 %v1701_v40, %v4701_v50 }
 0x95d   :  { %v1705_v21 = vmul.f32 0.5, %v1704_v24  ;;  %v1666_v15 = vpop.xlane.xlu1 %1665 }
 0x95e   :  { %v1750_v29 = vmul.f32 %v4776_v53, %v1743_v20  ;;  %v1674_v63 = vmul.f32 %v1666_v15, %v4018_v18 }
 0x95f   :  { %v1706_v23 = vsub.f32 1.5, %v1705_v21 }
 0x960   :  { %v3803_v26 = vpop.eup %3802  ;;  %v4796_v57 = vadd.f32 %v4778_v61, %v1750_v29  ;;  %v1680_v28 = vadd.f32 1e-05, %v1674_v63 }
 0x961   :  { %v1707_v1 = vmul.f32 %v3801_v9, %v1706_v23  ;;  %v1713_v6 = vmul.f32 %v3803_v26, %v1679_v51  ;;  %vm1719_vm10 = vweird.f32 %v3803_v26 }
 0x962   :  { %3804 = vrsqrt.f32 %v1680_v28  ;;  %3525 = vmatmul.msk.f32.gmra.mxu3 %vm171_vm0, %v4796_v57  ;;  %3535 = vmatmul.msk.f32.gmra.mxu0 %vm171_vm0, %v4796_v57  ;;  %vm1720_vm12 = vmor %vm1718_vm11, %vm1719_vm10  ;;  %vm1728_vm14 = vweird.f32 %v1680_v28 }
 0x963   :  { %v1711_v50 = vsel %vm1710_vm9, %v3801_v9, %v1707_v1  ;;  %v1714_v33 = vmul.f32 %v3803_v26, %v1713_v6  ;;  %3545 = vmatmul.msk.f32.gmra.mxu1 %vm171_vm0, %v4796_v57 }
 0x964   :  { %v1744_v35 = vmul.f32 %v1711_v50, %v4708_v54 }
 0x965   :  { %v1715_v41 = vmul.f32 0.5, %v1714_v33  ;;  %v1669_v43 = vpop.xlane.xlu2 %1668 }
 0x966   :  { %v1751_v46 = vmul.f32 %v4776_v53, %v1744_v35  ;;  %v1675_v54 = vmul.f32 %v1669_v43, %v4018_v18 }
 0x967   :  { %v1716_v47 = vsub.f32 1.5, %v1715_v41 }
 0x968   :  { %v3805_v22 = vpop.eup %3804  ;;  %v4826_v49 = vadd.f32 %v4778_v61, %v1751_v46  ;;  %v1681_v48 = vadd.f32 1e-05, %v1675_v54  ;;  %v3593_v46 = vld [vmem:[%s5456_s5 + $0x78] sm:$0xff] }
 0x969   :  { %v1717_v52 = vmul.f32 %v3803_v26, %v1716_v47  ;;  %v1723_v55 = vmul.f32 %v3805_v22, %v1680_v28  ;;  %vm1729_vm13 = vweird.f32 %v3805_v22 }
 0x96a   :  { %3806 = vrsqrt.f32 %v1681_v48  ;;  %3526 = vmatmul.msk.f32.gmra.mxu3 %vm171_vm0, %v4826_v49  ;;  %3536 = vmatmul.msk.f32.gmra.mxu0 %vm171_vm0, %v4826_v49  ;;  %vm1730_vm15 = vmor %vm1728_vm14, %vm1729_vm13  ;;  %vm1738_vm2 = vweird.f32 %v1681_v48 }
 0x96b   :  { %v1721_v25 = vsel %vm1720_vm12, %v3803_v26, %v1717_v52  ;;  %v1724_v62 = vmul.f32 %v3805_v22, %v1723_v55  ;;  %3546 = vmatmul.msk.f32.gmra.mxu1 %vm171_vm0, %v4826_v49 }
 0x96c   :  { %v1745_v4 = vmul.f32 %v1721_v25, %v4715_v0 }
 0x96d   :  { %v1725_v39 = vmul.f32 0.5, %v1724_v62 }
 0x96e   :  { %v1752_v34 = vmul.f32 %v4776_v53, %v1745_v4 }
 0x96f   :  { %v1726_v2 = vsub.f32 1.5, %v1725_v39 }
 0x970   :  { %v3807_v8 = vpop.eup %3806  ;;  %v4843_v9 = vadd.f32 %v4778_v61, %v1752_v34 }
 0x971   :  { %v1727_v51 = vmul.f32 %v3805_v22, %v1726_v2  ;;  %v1733_v11 = vmul.f32 %v3807_v8, %v1681_v48  ;;  %vm1739_vm1 = vweird.f32 %v3807_v8  ;;  %v3591_v48 = vld [vmem:[%s5456_s5 + $0x68] sm:$0xff] }
 0x972   :  { %3527 = vmatmul.msk.f32.gmra.mxu3 %vm171_vm0, %v4843_v9  ;;  %3537 = vmatmul.msk.f32.gmra.mxu0 %vm171_vm0, %v4843_v9  ;;  %vm1740_vm3 = vmor %vm1738_vm2, %vm1739_vm1 }
 0x973   :  { %v1731_v0 = vsel %vm1730_vm15, %v3805_v22, %v1727_v51  ;;  %v1734_v16 = vmul.f32 %v3807_v8, %v1733_v11  ;;  %3547 = vmatmul.msk.f32.gmra.mxu1 %vm171_vm0, %v4843_v9  ;;  %v3592_v22 = vld [vmem:[%s5456_s5 + $0x70] sm:$0xff] }
 0x974   :  { %v1746_v40 = vmul.f32 %v1731_v0, %v4722_v59 }
 0x975   :  { %v1735_v24 = vmul.f32 0.5, %v1734_v16 }
 0x976   :  { %v1753_v20 = vmul.f32 %v4776_v53, %v1746_v40 }
 0x977   :  { %v1736_v21 = vsub.f32 1.5, %v1735_v24 }
 0x978   :  { %v4854_v15 = vadd.f32 %v4778_v61, %v1753_v20 }
 0x979   :  { %v1737_v29 = vmul.f32 %v3807_v8, %v1736_v21 }
 0x97a   :  { %3528 = vmatmul.msk.f32.gmra.mxu3 %vm171_vm0, %v4854_v15  ;;  %3538 = vmatmul.msk.f32.gmra.mxu0 %vm171_vm0, %v4854_v15 }
 0x97b   :  { %v1741_v63 = vsel %vm1740_vm3, %v3807_v8, %v1737_v29  ;;  %3548 = vmatmul.msk.f32.gmra.mxu1 %vm171_vm0, %v4854_v15 }
 0x97c   :  { %v1747_v59 = vmul.f32 %v1741_v63, %v4729_v13 }
 0x97e   :  { %v1754_v23 = vmul.f32 %v4776_v53, %v1747_v59 }
 0x980   :  { %v4865_v26 = vadd.f32 %v4778_v61, %v1754_v23 }
 0x982   :  { %3529 = vmatmul.msk.f32.gmra.mxu3 %vm171_vm0, %v4865_v26  ;;  %3539 = vmatmul.msk.f32.gmra.mxu0 %vm171_vm0, %v4865_v26 }
 0x983   :  { %3549 = vmatmul.msk.f32.gmra.mxu1 %vm171_vm0, %v4865_v26 }
 0x98a   :  { %3574 = vmatmul.msk.f32.vlgmr.msrb.gmra.mxu0 %vm171_vm0, %v4784_v10 }
 0x98b   :  { %3584 = vmatmul.msk.f32.vlgmr.msrb.gmra.mxu1 %vm171_vm0, %v4784_v10 }
 0x992   :  { %3575 = vmatmul.msk.f32.gmra.mxu0 %vm171_vm0, %v4796_v57 }
 0x993   :  { %3585 = vmatmul.msk.f32.gmra.mxu1 %vm171_vm0, %v4796_v57 }
 0x99a   :  { %3576 = vmatmul.msk.f32.gmra.mxu0 %vm171_vm0, %v4826_v49 }
 0x99b   :  { %3586 = vmatmul.msk.f32.gmra.mxu1 %vm171_vm0, %v4826_v49 }
 0x9a2   :  { %3577 = vmatmul.msk.f32.gmra.mxu0 %vm171_vm0, %v4843_v9 }
 0x9a3   :  { %3587 = vmatmul.msk.f32.gmra.mxu1 %vm171_vm0, %v4843_v9 }
 0x9aa   :  { %3578 = vmatmul.msk.f32.gmra.mxu0 %vm171_vm0, %v4854_v15 }
 0x9ab   :  { %3588 = vmatmul.msk.f32.gmra.mxu1 %vm171_vm0, %v4854_v15 }
 0x9b2   :  { %3579 = vmatmul.msk.f32.gmra.mxu0 %vm171_vm0, %v4865_v26 }
 0x9b3   :  { %3589 = vmatmul.msk.f32.gmra.mxu1 %vm171_vm0, %v4865_v26 }
 0x9d7   :  { %v1842_v13 = vpop.f32.mrf.mxu0 }
 0x9d8   :  { %v1882_v53 = vpop.f32.mrf.mxu1 }
 0x9dd   :  { %v1802_v41 = vpop.f32.mrf.mxu3 }
 0x9df   :  { %v1845_v61 = vpop.f32.mrf.mxu0 }
 0x9e0   :  { %v1885_v28 = vpop.f32.mrf.mxu1 }
 0x9e5   :  { %v1805_v37 = vpop.f32.mrf.mxu3 }
 0x9e7   :  { %v1848_v1 = vpop.f32.mrf.mxu0 }
 0x9e8   :  { %v1888_v6 = vpop.f32.mrf.mxu1 }
 0x9ed   :  { %v1808_v54 = vpop.f32.mrf.mxu3 }
 0x9ef   :  { %v1851_v50 = vpop.f32.mrf.mxu0 }
 0x9f0   :  { %v1891_v33 = vpop.f32.mrf.mxu1 }
 0x9f5   :  { %v1811_v55 = vpop.f32.mrf.mxu3 }
 0x9f7   :  { %v1854_v56 = vpop.f32.mrf.mxu0 }
 0x9f8   :  { %v1894_v14 = vpop.f32.mrf.mxu1 }
 0x9fd   :  { %v1814_v25 = vpop.f32.mrf.mxu3 }
 0x9ff   :  { %v1857_v7 = vpop.f32.mrf.mxu0 }
 0xa00   :  { %v1897_v35 = vpop.f32.mrf.mxu1  ;;  %3550 = vmatpush.xpose.msk.msrb.mxu2 %vm460_vm5, %v1857_v7 }
 0xa01   :  { %2143 = vmatpush.msra.mxu3 %v1897_v35 }
 0xa03   :  { %2144 = vmatpush.msra.mxu3 %v1894_v14 }
 0xa04   :  { %3551 = vmatpush.xpose.msk.msrb.mxu2 %vm460_vm5, %v1854_v56 }
 0xa05   :  { %2145 = vmatpush.msra.mxu3 %v1891_v33  ;;  %v1817_v62 = vpop.f32.mrf.mxu3 }
 0xa07   :  { %2146 = vmatpush.msra.mxu3 %v1888_v6 }
 0xa08   :  { %v2233_v38 = vpop.f32.mrf.mxu1  ;;  %3552 = vmatpush.xpose.msk.msrb.mxu2 %vm460_vm5, %v1851_v50 }
 0xa09   :  { %2147 = vmatpush.msra.mxu3 %v1885_v28 }
 0xa0b   :  { %2148 = vmatpush.msra.mxu3 %v1882_v53 }
 0xa0c   :  { %3553 = vmatpush.xpose.msk.msrb.mxu2 %vm460_vm5, %v1848_v1 }
 0xa10   :  { %v2236_v43 = vpop.f32.mrf.mxu1  ;;  %3554 = vmatpush.xpose.msk.msrb.mxu2 %vm460_vm5, %v1845_v61 }
 0xa14   :  { %3555 = vmatpush.xpose.msk.msrb.mxu2 %vm460_vm5, %v1842_v13 }
 0xa17   :  { %3556 = vmatmul.msk.f32.vlgmr.msrb.gmra.mxu2 %vm460_vm5, %v1802_v41 }
 0xa18   :  { %v2239_v45 = vpop.f32.mrf.mxu1  ;;  %2268 = vmatpush.msra.mxu2 %v3593_v46 }
 0xa1a   :  { %2269 = vmatpush.msra.mxu2 %v3592_v22 }
 0xa1c   :  { %2270 = vmatpush.msra.mxu2 %v3591_v48 }
 0xa1e   :  { %2271 = vmatpush.msra.mxu2 %v3590_v60 }
 0xa1f   :  { %3557 = vmatmul.msk.f32.gmra.mxu2 %vm460_vm5, %v1805_v37 }
 0xa20   :  { %v2242_v47 = vpop.f32.mrf.mxu1 }
 0xa27   :  { %3558 = vmatmul.msk.f32.gmra.mxu2 %vm460_vm5, %v1808_v54 }
 0xa28   :  { %v2245_v52 = vpop.f32.mrf.mxu1 }
 0xa2f   :  { %3559 = vmatmul.msk.f32.gmra.mxu2 %vm460_vm5, %v1811_v55 }
 0xa30   :  { %v2248_v58 = vpop.f32.mrf.mxu1 }
 0xa31   :  { %3600 = vmatpush.xpose.msk.msrb.mxu3 %vm460_vm5, %v2248_v58 }
 0xa35   :  { %3601 = vmatpush.xpose.msk.msrb.mxu3 %vm460_vm5, %v2245_v52 }
 0xa37   :  { %3560 = vmatmul.msk.f32.gmra.mxu2 %vm460_vm5, %v1814_v25 }
 0xa39   :  { %3602 = vmatpush.xpose.msk.msrb.mxu3 %vm460_vm5, %v2242_v47 }
 0xa3d   :  { %3603 = vmatpush.xpose.msk.msrb.mxu3 %vm460_vm5, %v2239_v45 }
 0xa3f   :  { %3561 = vmatmul.msk.f32.gmra.mxu2 %vm460_vm5, %v1817_v62 }
 0xa41   :  { %3604 = vmatpush.xpose.msk.msrb.mxu3 %vm460_vm5, %v2236_v43 }
 0xa45   :  { %3605 = vmatpush.xpose.msk.msrb.mxu3 %vm460_vm5, %v2233_v38 }
 0xa47   :  { %3594 = vmatmul.msk.f32.vlgmr.msra.gmra.mxu2 %vm171_vm0, %v4784_v10 }
 0xa4f   :  { %3595 = vmatmul.msk.f32.gmra.mxu2 %vm171_vm0, %v4796_v57 }
 0xa57   :  { %3596 = vmatmul.msk.f32.gmra.mxu2 %vm171_vm0, %v4826_v49 }
 0xa5f   :  { %3597 = vmatmul.msk.f32.gmra.mxu2 %vm171_vm0, %v4843_v9 }
 0xa67   :  { %3598 = vmatmul.msk.f32.gmra.mxu2 %vm171_vm0, %v4854_v15 }
 0xa6f   :  { %3599 = vmatmul.msk.f32.gmra.mxu2 %vm171_vm0, %v4865_v26 }
 0xa9a   :  { %v1953_v4 = vpop.f32.mrf.mxu2 }
 0xa9b   :  { %v1954_v39 = vadd.f32 %v1953_v4, %v4308_v3 }
 0xa9d   :  { %v1971_v10 = vsel %vm532_vm7, %v1954_v39, -inf }
 0xa9e   :  { %1972 = vmax.xlane.f32.xlu0 %v1971_v10 }
 0xaa2   :  { %v1956_v34 = vpop.f32.mrf.mxu2 }
 0xaa3   :  { %v1957_v57 = vadd.f32 %v1956_v34, %v4312_v5 }
 0xaa5   :  { %v1974_v49 = vsel %vm532_vm7, %v1957_v57, -inf }
 0xaa6   :  { %1975 = vmax.xlane.f32.xlu1 %v1974_v49 }
 0xaaa   :  { %v1959_v2 = vpop.f32.mrf.mxu2 }
 0xaab   :  { %v1960_v8 = vadd.f32 %v1959_v2, %v4316_v12 }
 0xaad   :  { %v1977_v9 = vsel %vm532_vm7, %v1960_v8, -inf }
 0xaae   :  { %1978 = vmax.xlane.f32.xlu2 %v1977_v9 }
 0xab2   :  { %v1962_v51 = vpop.f32.mrf.mxu2 }
 0xab3   :  { %v1963_v11 = vadd.f32 %v1962_v51, %v4320_v19 }
 0xab5   :  { %v1980_v0 = vsel %vm532_vm7, %v1963_v11, -inf }
 0xab6   :  { %1981 = vmax.xlane.f32.xlu0 %v1980_v0 }
 0xaba   :  { %v1965_v16 = vpop.f32.mrf.mxu2 }
 0xabb   :  { %v1966_v40 = vadd.f32 %v1965_v16, %v4324_v42 }
 0xabd   :  { %v1983_v24 = vsel %vm532_vm7, %v1966_v40, -inf }
 0xabe   :  { %1984 = vmax.xlane.f32.xlu1 %v1983_v24 }
 0xac2   :  { %v1968_v20 = vpop.f32.mrf.mxu2 }
 0xac3   :  { %v1969_v21 = vadd.f32 %v1968_v20, %v4328_v30 }
 0xac5   :  { %v1986_v15 = vsel %vm532_vm7, %v1969_v21, -inf }
 0xac6   :  { %1987 = vmax.xlane.f32.xlu2 %v1986_v15 }
 0xaca   :  { %v2273_v29 = vpop.f32.mrf.mxu2 }
 0xad2   :  { %v2276_v63 = vpop.f32.mrf.mxu2 }
 0xada   :  { %v2279_v59 = vpop.f32.mrf.mxu2 }
 0xae2   :  { %v2282_v23 = vpop.f32.mrf.mxu2 }
 0xaea   :  { %v2285_v26 = vpop.f32.mrf.mxu2 }
 0xaf2   :  { %v2288_v13 = vpop.f32.mrf.mxu2 }
 0xaf3   :  { %2534 = vmatpush.msra.mxu0 %v2288_v13 }
 0xaf5   :  { %2535 = vmatpush.msra.mxu0 %v2285_v26 }
 0xaf7   :  { %2536 = vmatpush.msra.mxu0 %v2282_v23 }
 0xaf9   :  { %2537 = vmatpush.msra.mxu0 %v2279_v59 }
 0xafb   :  { %2538 = vmatpush.msra.mxu0 %v2276_v63 }
 0xafd   :  { %2539 = vmatpush.msra.mxu0 %v2273_v29 }
 0xb11   :  { %v1973_v53 = vpop.xlane.xlu0 %1972 }
 0xb12   :  { %v1989_v61 = vsub.f32 %v1954_v39, %v1973_v53 }
 0xb14   :  { %v1995_v28 = vmul.f32 1.442695, %v1989_v61 }
 0xb16   :  { %3808 = vpow2.f32 %v1995_v28 }
 0xb19   :  { %v1976_v1 = vpop.xlane.xlu1 %1975 }
 0xb1a   :  { %v1990_v6 = vsub.f32 %v1957_v57, %v1976_v1 }
 0xb1c   :  { %v3809_v50 = vpop.eup %3808  ;;  %v1997_v33 = vmul.f32 1.442695, %v1990_v6 }
 0xb1d   :  { %v2007_v56 = vsel %vm532_vm7, %v3809_v50, 0.0 }
 0xb1e   :  { %3810 = vpow2.f32 %v1997_v33  ;;  %2008 = vadd.xlane.f32.xlu0 %v2007_v56 }
 0xb21   :  { %v1979_v14 = vpop.xlane.xlu2 %1978 }
 0xb22   :  { %v1991_v7 = vsub.f32 %v1960_v8, %v1979_v14 }
 0xb24   :  { %v4952_v35 = vpop.eup %3810  ;;  %v1999_v38 = vmul.f32 1.442695, %v1991_v7 }
 0xb25   :  { %v2010_v41 = vsel %vm532_vm7, %v4952_v35, 0.0 }
 0xb26   :  { %3812 = vpow2.f32 %v1999_v38  ;;  %2011 = vadd.xlane.f32.xlu1 %v2010_v41 }
 0xb29   :  { %v1982_v43 = vpop.xlane.xlu0 %1981 }
 0xb2a   :  { %v1992_v37 = vsub.f32 %v1963_v11, %v1982_v43 }
 0xb2c   :  { %v4956_v45 = vpop.eup %3812  ;;  %v2001_v46 = vmul.f32 1.442695, %v1992_v37 }
 0xb2d   :  { %v2013_v54 = vsel %vm532_vm7, %v4956_v45, 0.0 }
 0xb2e   :  { %3814 = vpow2.f32 %v2001_v46  ;;  %2014 = vadd.xlane.f32.xlu2 %v2013_v54 }
 0xb31   :  { %v1985_v47 = vpop.xlane.xlu1 %1984 }
 0xb32   :  { %v1993_v22 = vsub.f32 %v1966_v40, %v1985_v47 }
 0xb34   :  { %v4960_v48 = vpop.eup %3814  ;;  %v2003_v60 = vmul.f32 1.442695, %v1993_v22 }
 0xb35   :  { %v2016_v52 = vsel %vm532_vm7, %v4960_v48, 0.0 }
 0xb36   :  { %3816 = vpow2.f32 %v2003_v60  ;;  %2017 = vadd.xlane.f32.xlu0 %v2016_v52 }
 0xb39   :  { %v1988_v55 = vpop.xlane.xlu2 %1987 }
 0xb3a   :  { %v1994_v58 = vsub.f32 %v1969_v21, %v1988_v55 }
 0xb3c   :  { %v4964_v25 = vpop.eup %3816  ;;  %v2005_v62 = vmul.f32 1.442695, %v1994_v58 }
 0xb3d   :  { %v2019_v4 = vsel %vm532_vm7, %v4964_v25, 0.0 }
 0xb3e   :  { %3818 = vpow2.f32 %v2005_v62  ;;  %2020 = vadd.xlane.f32.xlu1 %v2019_v4 }
 0xb44   :  { %v4968_v39 = vpop.eup %3818 }
 0xb45   :  { %v2022_v10 = vsel %vm532_vm7, %v4968_v39, 0.0 }
 0xb46   :  { %2023 = vadd.xlane.f32.xlu2 %v2022_v10 }
 0xb91   :  { %v2009_v34 = vpop.xlane.xlu0 %2008 }
 0xb92   :  { %3820 = vrcp.f32 %v2009_v34  ;;  %v2036_v9 = vand.u32 2147483648, %v2009_v34  ;;  %v2034_v11 = vand.u32 2147483647, %v2009_v34  ;;  %vm2030_vm6 = vweird.f32 %v2009_v34 }
 0xb94   :  { %v2037_v40 = vor.u32 1.1754944e-38, %v2036_v9  ;;  %vm2035_vm9 = vcmp.eq.f32.partialorder %v2034_v11, 8.507059e+37 }
 0xb98   :  { %v3821_v57 = vpop.eup %3820 }
 0xb99   :  { %v2026_v49 = vmul.f32 %v3821_v57, %v2009_v34  ;;  %v2012_v2 = vpop.xlane.xlu1 %2011  ;;  %vm2031_vm4 = vweird.f32 %v3821_v57 }
 0xb9a   :  { %3822 = vrcp.f32 %v2012_v2  ;;  %vm2032_vm8 = vmor %vm2030_vm6, %vm2031_vm4  ;;  %v2051_v23 = vand.u32 2147483648, %v2012_v2  ;;  %v2049_v26 = vand.u32 2147483647, %v2012_v2  ;;  %vm2045_vm11 = vweird.f32 %v2012_v2 }
 0xb9b   :  { %v2027_v8 = vsub.f32 1.0, %v2026_v49 }
 0xb9c   :  { %v2052_v61 = vor.u32 1.1754944e-38, %v2051_v23  ;;  %vm2050_vm13 = vcmp.eq.f32.partialorder %v2049_v26, 8.507059e+37 }
 0xb9d   :  { %v2028_v51 = vmul.f32 %v3821_v57, %v2027_v8 }
 0xb9f   :  { %v2029_v0 = vadd.f32 %v3821_v57, %v2028_v51 }
 0xba0   :  { %v3823_v16 = vpop.eup %3822 }
 0xba1   :  { %v2033_v24 = vsel %vm2032_vm8, %v3821_v57, %v2029_v0  ;;  %v2041_v20 = vmul.f32 %v3823_v16, %v2012_v2  ;;  %v2015_v21 = vpop.xlane.xlu2 %2014  ;;  %vm2046_vm10 = vweird.f32 %v3823_v16 }
 0xba2   :  { %v2038_v15 = vsel %vm2035_vm9, %v2037_v40, %v2033_v24  ;;  %3824 = vrcp.f32 %v2015_v21  ;;  %vm2047_vm12 = vmor %vm2045_vm11, %vm2046_vm10  ;;  %v2066_v7 = vand.u32 2147483648, %v2015_v21  ;;  %v2064_v38 = vand.u32 2147483647, %v2015_v21 }
 0xba3   :  { %v2039_v29 = vmul.f32 %v3809_v50, %v2038_v15  ;;  %v2042_v63 = vsub.f32 1.0, %v2041_v20  ;;  %vm2060_vm15 = vweird.f32 %v2015_v21 }
 0xba4   :  { %v2067_v37 = vor.u32 1.1754944e-38, %v2066_v7  ;;  %vm2065_vm2 = vcmp.eq.f32.partialorder %v2064_v38, 8.507059e+37 }
 0xba5   :  { %v2043_v59 = vmul.f32 %v3823_v16, %v2042_v63  ;;  %3562 = vmatmul.msk.f32.vlgmr.msra.gmra.mxu3 %vm532_vm7, %v2039_v29 }
 0xba7   :  { %v2044_v13 = vadd.f32 %v3823_v16, %v2043_v59 }
 0xba8   :  { %v3825_v53 = vpop.eup %3824 }
 0xba9   :  { %v2056_v28 = vmul.f32 %v3825_v53, %v2015_v21  ;;  %v2018_v1 = vpop.xlane.xlu0 %2017  ;;  %v2048_v6 = vsel %vm2047_vm12, %v3823_v16, %v2044_v13  ;;  %vm2061_vm14 = vweird.f32 %v3825_v53 }
 0xbaa   :  { %3826 = vrcp.f32 %v2018_v1  ;;  %v2053_v56 = vsel %vm2050_vm13, %v2052_v61, %v2048_v6  ;;  %vm2062_vm1 = vmor %vm2060_vm15, %vm2061_vm14  ;;  %v2081_v55 = vand.u32 2147483648, %v2018_v1  ;;  %v2079_v58 = vand.u32 2147483647, %v2018_v1  ;;  %v2193_v61 = vpop.f32.mrf.mxu0 }
 0xbab   :  { %v2057_v33 = vsub.f32 1.0, %v2056_v28  ;;  %v2054_v50 = vmul.f32 %v4952_v35, %v2053_v56  ;;  %vm2075_vm4 = vweird.f32 %v2018_v1 }
 0xbac   :  { %v2082_v10 = vor.u32 1.1754944e-38, %v2081_v55  ;;  %vm2080_vm8 = vcmp.eq.f32.partialorder %v2079_v58, 8.507059e+37 }
 0xbad   :  { %v2058_v14 = vmul.f32 %v3825_v53, %v2057_v33  ;;  %3563 = vmatmul.msk.f32.gmra.mxu3 %vm532_vm7, %v2054_v50  ;;  %v3568_v50 = vld [vmem:[%s5458_s6 + $0x20] sm:$0xff] }
 0xbaf   :  { %v2059_v41 = vadd.f32 %v3825_v53, %v2058_v14 }
 0xbb0   :  { %v3827_v43 = vpop.eup %3826 }
 0xbb1   :  { %v2071_v46 = vmul.f32 %v3827_v43, %v2018_v1  ;;  %v2021_v54 = vpop.xlane.xlu1 %2020  ;;  %v2063_v47 = vsel %vm2062_vm1, %v3825_v53, %v2059_v41  ;;  %vm2076_vm3 = vweird.f32 %v3827_v43 }
 0xbb2   :  { %3828 = vrcp.f32 %v2021_v54  ;;  %v2068_v60 = vsel %vm2065_vm2, %v2067_v37, %v2063_v47  ;;  %vm2077_vm6 = vmor %vm2075_vm4, %vm2076_vm3  ;;  %v2096_v9 = vand.u32 2147483648, %v2021_v54  ;;  %v2094_v11 = vand.u32 2147483647, %v2021_v54  ;;  %v2196_v1 = vpop.f32.mrf.mxu0 }
 0xbb3   :  { %v2072_v22 = vsub.f32 1.0, %v2071_v46  ;;  %v2069_v35 = vmul.f32 %v4956_v45, %v2068_v60  ;;  %vm2090_vm10 = vweird.f32 %v2021_v54 }
 0xbb4   :  { %v2097_v40 = vor.u32 1.1754944e-38, %v2096_v9  ;;  %vm2095_vm12 = vcmp.eq.f32.partialorder %v2094_v11, 8.507059e+37 }
 0xbb5   :  { %v2073_v52 = vmul.f32 %v3827_v43, %v2072_v22  ;;  %3564 = vmatmul.msk.f32.gmra.mxu3 %vm532_vm7, %v2069_v35 }
 0xbb7   :  { %v2074_v62 = vadd.f32 %v3827_v43, %v2073_v52 }
 0xbb8   :  { %v3829_v4 = vpop.eup %3828 }
 0xbb9   :  { %v2086_v34 = vmul.f32 %v3829_v4, %v2021_v54  ;;  %v2024_v57 = vpop.xlane.xlu2 %2023  ;;  %v2078_v49 = vsel %vm2077_vm6, %v3827_v43, %v2074_v62  ;;  %vm2091_vm9 = vweird.f32 %v3829_v4 }
 0xbba   :  { %3830 = vrcp.f32 %v2024_v57  ;;  %v2083_v8 = vsel %vm2080_vm8, %v2082_v10, %v2078_v49  ;;  %vm2092_vm11 = vmor %vm2090_vm10, %vm2091_vm9  ;;  %v2111_v63 = vand.u32 2147483648, %v2024_v57  ;;  %vm2105_vm14 = vweird.f32 %v2024_v57  ;;  %v2199_v6 = vpop.f32.mrf.mxu0 }
 0xbbb   :  { %v2087_v2 = vsub.f32 1.0, %v2086_v34  ;;  %v2084_v45 = vmul.f32 %v4960_v48, %v2083_v8  ;;  %v2109_v48 = vand.u32 2147483647, %v2024_v57 }
 0xbbc   :  { %v2112_v26 = vor.u32 1.1754944e-38, %v2111_v63 }
 0xbbd   :  { %v2088_v51 = vmul.f32 %v3829_v4, %v2087_v2  ;;  %3565 = vmatmul.msk.f32.gmra.mxu3 %vm532_vm7, %v2084_v45  ;;  %vm2110_vm1 = vcmp.eq.f32.partialorder %v2109_v48, 8.507059e+37 }
 0xbbf   :  { %v2089_v0 = vadd.f32 %v3829_v4, %v2088_v51 }
 0xbc0   :  { %v3831_v16 = vpop.eup %3830 }
 0xbc1   :  { %v2101_v24 = vmul.f32 %v3831_v16, %v2024_v57  ;;  %v2093_v20 = vsel %vm2092_vm11, %v3829_v4, %v2089_v0  ;;  %vm2106_vm13 = vweird.f32 %v3831_v16 }
 0xbc2   :  { %v2098_v21 = vsel %vm2095_vm12, %v2097_v40, %v2093_v20  ;;  %vm2107_vm15 = vmor %vm2105_vm14, %vm2106_vm13  ;;  %v2202_v33 = vpop.f32.mrf.mxu0 }
 0xbc3   :  { %v2102_v15 = vsub.f32 1.0, %v2101_v24  ;;  %v2099_v29 = vmul.f32 %v4964_v25, %v2098_v21  ;;  %v3569_v25 = vld [vmem:[%s5458_s6 + $0x28] sm:$0xff] }
 0xbc4   :  { %2647 = vmatpush.msrb.mxu2 %v3569_v25 }
 0xbc5   :  { %v2103_v59 = vmul.f32 %v3831_v16, %v2102_v15  ;;  %3566 = vmatmul.msk.f32.gmra.mxu3 %vm532_vm7, %v2099_v29 }
 0xbc6   :  { %2648 = vmatpush.msrb.mxu2 %v3568_v50 }
 0xbc7   :  { %v2104_v23 = vadd.f32 %v3831_v16, %v2103_v59 }
 0xbc9   :  { %v2108_v13 = vsel %vm2107_vm15, %v3831_v16, %v2104_v23 }
 0xbca   :  { %v2113_v53 = vsel %vm2110_vm1, %v2112_v26, %v2108_v13  ;;  %v2205_v56 = vpop.f32.mrf.mxu0 }
 0xbcb   :  { %v2114_v28 = vmul.f32 %v4968_v39, %v2113_v53 }
 0xbcd   :  { %3567 = vmatmul.msk.f32.gmra.mxu3 %vm532_vm7, %v2114_v28 }
 0xbd2   :  { %v2208_v39 = vpop.f32.mrf.mxu0 }
 0xbd5   :  { %3606 = vmatmul.msk.f32.vlgmr.msrb.gmra.mxu3 %vm460_vm5, %v2193_v61 }
 0xbdd   :  { %3607 = vmatmul.msk.f32.gmra.mxu3 %vm460_vm5, %v2196_v1 }
 0xbe5   :  { %3608 = vmatmul.msk.f32.gmra.mxu3 %vm460_vm5, %v2199_v6 }
 0xbed   :  { %3609 = vmatmul.msk.f32.gmra.mxu3 %vm460_vm5, %v2202_v33 }
 0xbf5   :  { %3610 = vmatmul.msk.f32.gmra.mxu3 %vm460_vm5, %v2205_v56 }
 0xbfd   :  { %3611 = vmatmul.msk.f32.gmra.mxu3 %vm460_vm5, %v2208_v39 }
 0xc28   :  { %v2150_v14 = vpop.f32.mrf.mxu3 }
 0xc29   :  { %3626 = vmatmul.msk.f32.vlgmr.msrb.gmra.mxu2 %vm460_vm5, %v2150_v14 }
 0xc30   :  { %v2153_v7 = vpop.f32.mrf.mxu3 }
 0xc31   :  { %3627 = vmatmul.msk.f32.gmra.mxu2 %vm460_vm5, %v2153_v7 }
 0xc38   :  { %v2156_v38 = vpop.f32.mrf.mxu3 }
 0xc39   :  { %3628 = vmatmul.msk.f32.gmra.mxu2 %vm460_vm5, %v2156_v38 }
 0xc40   :  { %v2159_v41 = vpop.f32.mrf.mxu3 }
 0xc41   :  { %3629 = vmatmul.msk.f32.gmra.mxu2 %vm460_vm5, %v2159_v41 }
 0xc48   :  { %v2162_v43 = vpop.f32.mrf.mxu3 }
 0xc49   :  { %3630 = vmatmul.msk.f32.gmra.mxu2 %vm460_vm5, %v2162_v43 }
 0xc50   :  { %v2165_v37 = vpop.f32.mrf.mxu3 }
 0xc51   :  { %3631 = vmatmul.msk.f32.gmra.mxu2 %vm460_vm5, %v2165_v37 }
 0xc58   :  { %v2344_v46 = vpop.f32.mrf.mxu3 }
 0xc59   :  { %v2345_v54 = vadd.f32 %v2344_v46, %v4308_v3 }
 0xc5b   :  { %v2362_v47 = vsel %vm532_vm7, %v2345_v54, -inf }
 0xc5c   :  { %2363 = vmax.xlane.f32.xlu0 %v2362_v47 }
 0xc60   :  { %v2347_v22 = vpop.f32.mrf.mxu3 }
 0xc61   :  { %v2348_v60 = vadd.f32 %v2347_v22, %v4312_v5 }
 0xc63   :  { %v2365_v35 = vsel %vm532_vm7, %v2348_v60, -inf }
 0xc64   :  { %2366 = vmax.xlane.f32.xlu1 %v2365_v35 }
 0xc68   :  { %v2350_v52 = vpop.f32.mrf.mxu3 }
 0xc69   :  { %v2351_v55 = vadd.f32 %v2350_v52, %v4316_v12 }
 0xc6b   :  { %v2368_v58 = vsel %vm532_vm7, %v2351_v55, -inf }
 0xc6c   :  { %2369 = vmax.xlane.f32.xlu2 %v2368_v58 }
 0xc70   :  { %v2353_v62 = vpop.f32.mrf.mxu3 }
 0xc71   :  { %v2354_v4 = vadd.f32 %v2353_v62, %v4320_v19 }
 0xc73   :  { %v2371_v3 = vsel %vm532_vm7, %v2354_v4, -inf }
 0xc74   :  { %2372 = vmax.xlane.f32.xlu0 %v2371_v3 }
 0xc78   :  { %v2356_v10 = vpop.f32.mrf.mxu3 }
 0xc79   :  { %v2357_v34 = vadd.f32 %v2356_v10, %v4324_v42 }
 0xc7b   :  { %v2374_v5 = vsel %vm532_vm7, %v2357_v34, -inf }
 0xc7c   :  { %2375 = vmax.xlane.f32.xlu1 %v2374_v5 }
 0xc80   :  { %v2359_v57 = vpop.f32.mrf.mxu3 }
 0xc81   :  { %v2360_v49 = vadd.f32 %v2359_v57, %v4328_v30 }
 0xc83   :  { %v2377_v12 = vsel %vm532_vm7, %v2360_v49, -inf }
 0xc84   :  { %2378 = vmax.xlane.f32.xlu2 %v2377_v12 }
 0xccf   :  { %v2364_v2 = vpop.xlane.xlu0 %2363 }
 0xcd0   :  { %v2380_v8 = vsub.f32 %v2345_v54, %v2364_v2 }
 0xcd2   :  { %v2386_v9 = vmul.f32 1.442695, %v2380_v8 }
 0xcd4   :  { %3832 = vpow2.f32 %v2386_v9 }
 0xcd7   :  { %v2367_v19 = vpop.xlane.xlu1 %2366 }
 0xcd8   :  { %v2381_v45 = vsub.f32 %v2348_v60, %v2367_v19 }
 0xcda   :  { %v3833_v51 = vpop.eup %3832  ;;  %v2388_v11 = vmul.f32 1.442695, %v2381_v45 }
 0xcdb   :  { %v2398_v0 = vsel %vm532_vm7, %v3833_v51, 0.0 }
 0xcdc   :  { %3834 = vpow2.f32 %v2388_v11  ;;  %2399 = vadd.xlane.f32.xlu0 %v2398_v0 }
 0xcdf   :  { %v2370_v42 = vpop.xlane.xlu2 %2369 }
 0xce0   :  { %v2382_v16 = vsub.f32 %v2351_v55, %v2370_v42 }
 0xce2   :  { %v5014_v40 = vpop.eup %3834  ;;  %v2390_v30 = vmul.f32 1.442695, %v2382_v16 }
 0xce3   :  { %v2401_v24 = vsel %vm532_vm7, %v5014_v40, 0.0 }
 0xce4   :  { %3836 = vpow2.f32 %v2390_v30  ;;  %2402 = vadd.xlane.f32.xlu1 %v2401_v24 }
 0xce7   :  { %v2373_v20 = vpop.xlane.xlu0 %2372 }
 0xce8   :  { %v2383_v21 = vsub.f32 %v2354_v4, %v2373_v20 }
 0xcea   :  { %v5018_v15 = vpop.eup %3836  ;;  %v2392_v29 = vmul.f32 1.442695, %v2383_v21 }
 0xceb   :  { %v2404_v63 = vsel %vm532_vm7, %v5018_v15, 0.0 }
 0xcec   :  { %3838 = vpow2.f32 %v2392_v29  ;;  %2405 = vadd.xlane.f32.xlu2 %v2404_v63 }
 0xcef   :  { %v2376_v59 = vpop.xlane.xlu1 %2375 }
 0xcf0   :  { %v2384_v48 = vsub.f32 %v2357_v34, %v2376_v59 }
 0xcf2   :  { %v5022_v23 = vpop.eup %3838  ;;  %v2394_v26 = vmul.f32 1.442695, %v2384_v48 }
 0xcf3   :  { %v2407_v13 = vsel %vm532_vm7, %v5022_v23, 0.0 }
 0xcf4   :  { %3840 = vpow2.f32 %v2394_v26  ;;  %2408 = vadd.xlane.f32.xlu0 %v2407_v13 }
 0xcf7   :  { %v2379_v53 = vpop.xlane.xlu2 %2378 }
 0xcf8   :  { %v2385_v61 = vsub.f32 %v2360_v49, %v2379_v53 }
 0xcfa   :  { %v5026_v28 = vpop.eup %3840  ;;  %v2396_v1 = vmul.f32 1.442695, %v2385_v61 }
 0xcfb   :  { %v2410_v25 = vsel %vm532_vm7, %v5026_v28, 0.0 }
 0xcfc   :  { %3842 = vpow2.f32 %v2396_v1  ;;  %2411 = vadd.xlane.f32.xlu1 %v2410_v25 }
 0xd02   :  { %v5030_v6 = vpop.eup %3842 }
 0xd03   :  { %v2413_v33 = vsel %vm532_vm7, %v5030_v6, 0.0 }
 0xd04   :  { %2414 = vadd.xlane.f32.xlu2 %v2413_v33 }
 0xd4f   :  { %v2400_v56 = vpop.xlane.xlu0 %2399 }
 0xd50   :  { %3844 = vrcp.f32 %v2400_v56  ;;  %v2427_v38 = vand.u32 2147483648, %v2400_v56  ;;  %v2425_v43 = vand.u32 2147483647, %v2400_v56  ;;  %vm2421_vm3 = vweird.f32 %v2400_v56 }
 0xd52   :  { %v2428_v54 = vor.u32 1.1754944e-38, %v2427_v38  ;;  %vm2426_vm6 = vcmp.eq.f32.partialorder %v2425_v43, 8.507059e+37 }
 0xd56   :  { %v3845_v39 = vpop.eup %3844 }
 0xd57   :  { %v2417_v50 = vmul.f32 %v3845_v39, %v2400_v56  ;;  %v2403_v14 = vpop.xlane.xlu1 %2402  ;;  %vm2422_vm2 = vweird.f32 %v3845_v39 }
 0xd58   :  { %3846 = vrcp.f32 %v2403_v14  ;;  %vm2423_vm4 = vmor %vm2421_vm3, %vm2422_vm2  ;;  %v2442_v62 = vand.u32 2147483648, %v2403_v14  ;;  %v2440_v4 = vand.u32 2147483647, %v2403_v14  ;;  %vm2436_vm9 = vweird.f32 %v2403_v14 }
 0xd59   :  { %v2418_v7 = vsub.f32 1.0, %v2417_v50 }
 0xd5a   :  { %v2443_v34 = vor.u32 1.1754944e-38, %v2442_v62  ;;  %vm2441_vm11 = vcmp.eq.f32.partialorder %v2440_v4, 8.507059e+37 }
 0xd5b   :  { %v2419_v41 = vmul.f32 %v3845_v39, %v2418_v7 }
 0xd5d   :  { %v2420_v37 = vadd.f32 %v3845_v39, %v2419_v41 }
 0xd5e   :  { %v3847_v46 = vpop.eup %3846 }
 0xd5f   :  { %v2424_v47 = vsel %vm2423_vm4, %v3845_v39, %v2420_v37  ;;  %v2432_v22 = vmul.f32 %v3847_v46, %v2403_v14  ;;  %v2406_v60 = vpop.xlane.xlu2 %2405  ;;  %vm2437_vm8 = vweird.f32 %v3847_v46 }
 0xd60   :  { %v2429_v35 = vsel %vm2426_vm6, %v2428_v54, %v2424_v47  ;;  %3848 = vrcp.f32 %v2406_v60  ;;  %vm2438_vm10 = vmor %vm2436_vm9, %vm2437_vm8  ;;  %v2457_v19 = vand.u32 2147483648, %v2406_v60  ;;  %v2455_v45 = vand.u32 2147483647, %v2406_v60 }
 0xd61   :  { %v2430_v52 = vmul.f32 %v3833_v51, %v2429_v35  ;;  %v2433_v55 = vsub.f32 1.0, %v2432_v22  ;;  %v3619_v51 = vld [vmem:[%s5458_s6 + $0x38] sm:$0xff]  ;;  %vm2451_vm13 = vweird.f32 %v2406_v60 }
 0xd62   :  { %2594 = vmatpush.msra.mxu1 %v3619_v51  ;;  %v2458_v42 = vor.u32 1.1754944e-38, %v2457_v19  ;;  %vm2456_vm15 = vcmp.eq.f32.partialorder %v2455_v45, 8.507059e+37 }
 0xd63   :  { %v2434_v58 = vmul.f32 %v3847_v46, %v2433_v55  ;;  %3612 = vmatmul.msk.f32.vlgmr.msra.gmra.mxu0 %vm532_vm7, %v2430_v52 }
 0xd65   :  { %v2435_v3 = vadd.f32 %v3847_v46, %v2434_v58 }
 0xd66   :  { %v3849_v10 = vpop.eup %3848 }
 0xd67   :  { %v2447_v5 = vmul.f32 %v3849_v10, %v2406_v60  ;;  %v2409_v57 = vpop.xlane.xlu0 %2408  ;;  %v2439_v49 = vsel %vm2438_vm10, %v3847_v46, %v2435_v3  ;;  %vm2452_vm12 = vweird.f32 %v3849_v10 }
 0xd68   :  { %3850 = vrcp.f32 %v2409_v57  ;;  %v2444_v2 = vsel %vm2441_vm11, %v2443_v34, %v2439_v49  ;;  %vm2453_vm14 = vmor %vm2451_vm13, %vm2452_vm12  ;;  %v2472_v63 = vand.u32 2147483648, %v2409_v57  ;;  %v2470_v59 = vand.u32 2147483647, %v2409_v57 }
 0xd69   :  { %v2448_v12 = vsub.f32 1.0, %v2447_v5  ;;  %v2445_v8 = vmul.f32 %v5014_v40, %v2444_v2  ;;  %vm2466_vm2 = vweird.f32 %v2409_v57  ;;  %v2650_v5 = vpop.f32.mrf.mxu2  ;;  %v5060_v2 = vld [vmem:[%s5457_s2 + $0x8] sm:$0x3f] }
 0xd6a   :  { %v2473_v13 = vor.u32 1.1754944e-38, %v2472_v63  ;;  %vm2471_vm4 = vcmp.eq.f32.partialorder %v2470_v59, 8.507059e+37 }
 0xd6b   :  { %v2449_v9 = vmul.f32 %v3849_v10, %v2448_v12  ;;  %3613 = vmatmul.msk.f32.gmra.mxu0 %vm532_vm7, %v2445_v8  ;;  %v2674_v8 = vperm.slane %v5060_v2, 4 }
 0xd6d   :  { %v2450_v11 = vadd.f32 %v3849_v10, %v2449_v9 }
 0xd6e   :  { %v3851_v0 = vpop.eup %3850 }
 0xd6f   :  { %v2462_v16 = vmul.f32 %v3851_v0, %v2409_v57  ;;  %v2412_v30 = vpop.xlane.xlu1 %2411  ;;  %v2454_v24 = vsel %vm2453_vm14, %v3849_v10, %v2450_v11  ;;  %vm2467_vm1 = vweird.f32 %v3851_v0 }
 0xd70   :  { %3852 = vrcp.f32 %v2412_v30  ;;  %v2459_v20 = vsel %vm2456_vm15, %v2458_v42, %v2454_v24  ;;  %vm2468_vm3 = vmor %vm2466_vm2, %vm2467_vm1  ;;  %v2487_v56 = vand.u32 2147483648, %v2412_v30  ;;  %v2485_v50 = vand.u32 2147483647, %v2412_v30 }
 0xd71   :  { %v2463_v40 = vsub.f32 1.0, %v2462_v16  ;;  %v2460_v21 = vmul.f32 %v5018_v15, %v2459_v20  ;;  %vm2481_vm8 = vweird.f32 %v2412_v30  ;;  %v2653_v49 = vpop.f32.mrf.mxu2 }
 0xd72   :  { %v2488_v38 = vor.u32 1.1754944e-38, %v2487_v56  ;;  %vm2486_vm10 = vcmp.eq.f32.partialorder %v2485_v50, 8.507059e+37 }
 0xd73   :  { %v2464_v29 = vmul.f32 %v3851_v0, %v2463_v40  ;;  %3614 = vmatmul.msk.f32.gmra.mxu0 %vm532_vm7, %v2460_v21 }
 0xd75   :  { %v2465_v48 = vadd.f32 %v3851_v0, %v2464_v29 }
 0xd76   :  { %v3853_v26 = vpop.eup %3852 }
 0xd77   :  { %v2477_v53 = vmul.f32 %v3853_v26, %v2412_v30  ;;  %v2415_v61 = vpop.xlane.xlu2 %2414  ;;  %v2469_v1 = vsel %vm2468_vm3, %v3851_v0, %v2465_v48  ;;  %vm2482_vm6 = vweird.f32 %v3853_v26 }
 0xd78   :  { %3854 = vrcp.f32 %v2415_v61  ;;  %v2474_v33 = vsel %vm2471_vm4, %v2473_v13, %v2469_v1  ;;  %vm2483_vm9 = vmor %vm2481_vm8, %vm2482_vm6  ;;  %v2502_v47 = vand.u32 2147483648, %v2415_v61  ;;  %vm2496_vm12 = vweird.f32 %v2415_v61 }
 0xd79   :  { %v2478_v25 = vsub.f32 1.0, %v2477_v53  ;;  %v2475_v15 = vmul.f32 %v5022_v23, %v2474_v33  ;;  %v2500_v23 = vand.u32 2147483647, %v2415_v61  ;;  %v2656_v0 = vpop.f32.mrf.mxu2 }
 0xd7a   :  { %v2503_v35 = vor.u32 1.1754944e-38, %v2502_v47 }
 0xd7b   :  { %v2479_v39 = vmul.f32 %v3853_v26, %v2478_v25  ;;  %3615 = vmatmul.msk.f32.gmra.mxu0 %vm532_vm7, %v2475_v15  ;;  %vm2501_vm14 = vcmp.eq.f32.partialorder %v2500_v23, 8.507059e+37 }
 0xd7d   :  { %v2480_v14 = vadd.f32 %v3853_v26, %v2479_v39 }
 0xd7e   :  { %v3855_v7 = vpop.eup %3854 }
 0xd7f   :  { %v2492_v41 = vmul.f32 %v3855_v7, %v2415_v61  ;;  %v2484_v43 = vsel %vm2483_vm9, %v3853_v26, %v2480_v14  ;;  %vm2497_vm11 = vweird.f32 %v3855_v7 }
 0xd80   :  { %v2489_v37 = vsel %vm2486_vm10, %v2488_v38, %v2484_v43  ;;  %vm2498_vm13 = vmor %vm2496_vm12, %vm2497_vm11 }
 0xd81   :  { %v2493_v46 = vsub.f32 1.0, %v2492_v41  ;;  %v2490_v54 = vmul.f32 %v5026_v28, %v2489_v37  ;;  %v3618_v28 = vld [vmem:[%s5458_s6 + $0x30] sm:$0xff]  ;;  %v2659_v20 = vpop.f32.mrf.mxu2 }
 0xd82   :  { %2595 = vmatpush.msra.mxu1 %v3618_v28 }
 0xd83   :  { %v2494_v22 = vmul.f32 %v3855_v7, %v2493_v46  ;;  %3616 = vmatmul.msk.f32.gmra.mxu0 %vm532_vm7, %v2490_v54 }
 0xd85   :  { %v2495_v60 = vadd.f32 %v3855_v7, %v2494_v22 }
 0xd87   :  { %v2499_v52 = vsel %vm2498_vm13, %v3855_v7, %v2495_v60 }
 0xd88   :  { %v2504_v55 = vsel %vm2501_vm14, %v2503_v35, %v2499_v52 }
 0xd89   :  { %v2505_v58 = vmul.f32 %v5030_v6, %v2504_v55  ;;  %v2662_v26 = vpop.f32.mrf.mxu2 }
 0xd8b   :  { %3617 = vmatmul.msk.f32.gmra.mxu0 %vm532_vm7, %v2505_v58 }
 0xd91   :  { %v2665_v33 = vpop.f32.mrf.mxu2 }
 0xde0   :  { %v2541_v62 = vpop.f32.mrf.mxu0 }
 0xde1   :  { %3620 = vmatmul.msk.f32.vlgmr.msra.gmra.mxu1 %vm460_vm5, %v2541_v62 }
 0xde8   :  { %v2544_v4 = vpop.f32.mrf.mxu0 }
 0xde9   :  { %3621 = vmatmul.msk.f32.gmra.mxu1 %vm460_vm5, %v2544_v4 }
 0xdf0   :  { %v2547_v3 = vpop.f32.mrf.mxu0 }
 0xdf1   :  { %3622 = vmatmul.msk.f32.gmra.mxu1 %vm460_vm5, %v2547_v3 }
 0xdf8   :  { %v2550_v10 = vpop.f32.mrf.mxu0 }
 0xdf9   :  { %3623 = vmatmul.msk.f32.gmra.mxu1 %vm460_vm5, %v2550_v10  ;;  %v5125_v10 = vld [vmem:[%s5462_s1] sm:$0xff] }
 0xe00   :  { %v2553_v6 = vpop.f32.mrf.mxu0 }
 0xe01   :  { %3624 = vmatmul.msk.f32.gmra.mxu1 %vm460_vm5, %v2553_v6 }
 0xe08   :  { %v2556_v34 = vpop.f32.mrf.mxu0 }
 0xe09   :  { %3625 = vmatmul.msk.f32.gmra.mxu1 %vm460_vm5, %v2556_v34  ;;  %vm3058_vm5 = vcmask 64512  }
 0xe5e   :  { %v2597_v57 = vpop.f32.mrf.mxu1 }
 0xe5f   :  { %v2651_v12 = vadd.f32 %v2650_v5, %v2597_v57  ;;  %v3059_v5 = vsel %vm3058_vm5, %v5125_v10, 0.0 }
 0xe61   :  { %v2668_v9 = vadd.f32 %v2651_v12, %v4663_v32 }
 0xe63   :  { %v5064_v19 = vadd.f32 %v2674_v8, %v2668_v9 }
 0xe65   :  { %v2681_v45 = vsel %vm171_vm0, %v5064_v19, 0.0 }
 0xe66   :  { %2682 = vadd.xlane.f32.xlu0 %v2681_v45  ;;  %v2600_v51 = vpop.f32.mrf.mxu1 }
 0xe67   :  { %v2654_v11 = vadd.f32 %v2653_v49, %v2600_v51  ;;  %v3639_v51 = vld [vmem:[%s5459_s7 + $0x78] sm:$0xff] }
 0xe68   :  { %2908 = vmatpush.msrb.mxu0 %v3639_v51 }
 0xe69   :  { %v2669_v42 = vadd.f32 %v2654_v11, %v4668_v27  ;;  %v3638_v11 = vld [vmem:[%s5459_s7 + $0x70] sm:$0xff] }
 0xe6a   :  { %2873 = vmatpush.msra.mxu3 %v3638_v11 }
 0xe6b   :  { %v5069_v16 = vadd.f32 %v2674_v8, %v2669_v42  ;;  %v3636_v42 = vld [vmem:[%s5459_s7 + $0x60] sm:$0xff] }
 0xe6c   :  { %2874 = vmatpush.msra.mxu3 %v3636_v42 }
 0xe6d   :  { %v2684_v30 = vsel %vm171_vm0, %v5069_v16, 0.0 }
 0xe6e   :  { %2685 = vadd.xlane.f32.xlu1 %v2684_v30  ;;  %v2603_v24 = vpop.f32.mrf.mxu1  ;;  %v3634_v30 = vld [vmem:[%s5459_s7 + $0x50] sm:$0xff] }
 0xe6f   :  { %v2657_v40 = vadd.f32 %v2656_v0, %v2603_v24  ;;  %v3637_v0 = vld [vmem:[%s5459_s7 + $0x68] sm:$0xff]  ;;  %v3635_v24 = vld [vmem:[%s5459_s7 + $0x58] sm:$0xff]  ;;  %2875 = vmatpush.msra.mxu3 %v3634_v30 }
 0xe70   :  { %2909 = vmatpush.msrb.mxu0 %v3637_v0 }
 0xe71   :  { %v2670_v32 = vadd.f32 %v2657_v40, %v4673_v31  ;;  %v3632_v40 = vld [vmem:[%s5459_s7 + $0x40] sm:$0xff] }
 0xe72   :  { %2910 = vmatpush.msrb.mxu0 %v3635_v24  ;;  %2876 = vmatpush.msra.mxu3 %v3632_v40 }
 0xe73   :  { %v5074_v21 = vadd.f32 %v2674_v8, %v2670_v32  ;;  %v3633_v32 = vld [vmem:[%s5459_s7 + $0x48] sm:$0xff] }
 0xe74   :  { %2911 = vmatpush.msrb.mxu0 %v3633_v32 }
 0xe75   :  { %v2687_v29 = vsel %vm171_vm0, %v5074_v21, 0.0 }
 0xe76   :  { %2688 = vadd.xlane.f32.xlu2 %v2687_v29  ;;  %v2606_v63 = vpop.f32.mrf.mxu1 }
 0xe77   :  { %v2660_v59 = vadd.f32 %v2659_v20, %v2606_v63 }
 0xe79   :  { %v2671_v27 = vadd.f32 %v2660_v59, %v4678_v17  ;;  %v3898_v59 = vmov 8.0  }
 0xe7b   :  { %v5079_v48 = vadd.f32 %v2674_v8, %v2671_v27 }
 0xe7d   :  { %v2690_v13 = vsel %vm171_vm0, %v5079_v48, 0.0 }
 0xe7e   :  { %2691 = vadd.xlane.f32.xlu0 %v2690_v13  ;;  %v2609_v53 = vpop.f32.mrf.mxu1 }
 0xe7f   :  { %v2663_v31 = vadd.f32 %v2662_v26, %v2609_v53 }
 0xe81   :  { %v2672_v61 = vadd.f32 %v2663_v31, %v4683_v36 }
 0xe83   :  { %v5084_v1 = vadd.f32 %v2674_v8, %v2672_v61 }
 0xe85   :  { %v2693_v25 = vsel %vm171_vm0, %v5084_v1, 0.0 }
 0xe86   :  { %2694 = vadd.xlane.f32.xlu1 %v2693_v25  ;;  %v2612_v56 = vpop.f32.mrf.mxu1 }
 0xe87   :  { %v2666_v17 = vadd.f32 %v2665_v33, %v2612_v56 }
 0xe89   :  { %v2673_v15 = vadd.f32 %v2666_v17, %v4688_v44 }
 0xe8b   :  { %v5089_v39 = vadd.f32 %v2674_v8, %v2673_v15 }
 0xe8d   :  { %v2696_v50 = vsel %vm171_vm0, %v5089_v39, 0.0 }
 0xe8e   :  { %2697 = vadd.xlane.f32.xlu2 %v2696_v50 }
 0xed9   :  { %v2683_v14 = vpop.xlane.xlu0 %2682 }
 0xeda   :  { %v2699_v36 = vmul.f32 %v2683_v14, %v4018_v18 }
 0xedc   :  { %v5095_v7 = vsub.f32 %v5064_v19, %v2699_v36 }
 0xede   :  { %v2711_v38 = vmul.f32 %v5095_v7, %v5095_v7 }
 0xee0   :  { %v2717_v41 = vsel %vm171_vm0, %v2711_v38, 0.0 }
 0xee1   :  { %2718 = vadd.xlane.f32.xlu0 %v2717_v41  ;;  %v2686_v43 = vpop.xlane.xlu1 %2685 }
 0xee2   :  { %v2700_v44 = vmul.f32 %v2686_v43, %v4018_v18  ;;  %v5170_v43 = vperm.slane %v5060_v2, 2 }
 0xee4   :  { %v5102_v37 = vsub.f32 %v5069_v16, %v2700_v44 }
 0xee6   :  { %v2712_v46 = vmul.f32 %v5102_v37, %v5102_v37 }
 0xee8   :  { %v2720_v54 = vsel %vm171_vm0, %v2712_v46, 0.0 }
 0xee9   :  { %v2689_v47 = vpop.xlane.xlu2 %2688  ;;  %2721 = vadd.xlane.f32.xlu1 %v2720_v54  ;;  %v5173_v54 = vperm.slane %v5060_v2, 3 }
 0xeea   :  { %v2701_v22 = vmul.f32 %v2689_v47, %v4018_v18 }
 0xeec   :  { %v5109_v23 = vsub.f32 %v5074_v21, %v2701_v22 }
 0xeee   :  { %v2713_v60 = vmul.f32 %v5109_v23, %v5109_v23 }
 0xef0   :  { %v2723_v35 = vsel %vm171_vm0, %v2713_v60, 0.0 }
 0xef1   :  { %2724 = vadd.xlane.f32.xlu2 %v2723_v35  ;;  %v2692_v52 = vpop.xlane.xlu0 %2691 }
 0xef2   :  { %v2702_v55 = vmul.f32 %v2692_v52, %v4018_v18 }
 0xef4   :  { %v5116_v58 = vsub.f32 %v5079_v48, %v2702_v55 }
 0xef6   :  { %v2714_v28 = vmul.f32 %v5116_v58, %v5116_v58 }
 0xef8   :  { %v2726_v62 = vsel %vm171_vm0, %v2714_v28, 0.0 }
 0xef9   :  { %v2695_v4 = vpop.xlane.xlu1 %2694  ;;  %2727 = vadd.xlane.f32.xlu0 %v2726_v62 }
 0xefa   :  { %v2703_v3 = vmul.f32 %v2695_v4, %v4018_v18 }
 0xefc   :  { %v5128_v6 = vsub.f32 %v5084_v1, %v2703_v3 }
 0xefe   :  { %v2715_v34 = vmul.f32 %v5128_v6, %v5128_v6 }
 0xf00   :  { %v2729_v57 = vsel %vm171_vm0, %v2715_v34, 0.0 }
 0xf01   :  { %2730 = vadd.xlane.f32.xlu1 %v2729_v57  ;;  %v2698_v49 = vpop.xlane.xlu2 %2697  ;;  %3060 = vadd.xlane.f32.xlu0 %v3059_v5 }
 0xf02   :  { %v2704_v12 = vmul.f32 %v2698_v49, %v4018_v18 }
 0xf04   :  { %v5137_v8 = vsub.f32 %v5089_v39, %v2704_v12 }
 0xf06   :  { %v2716_v9 = vmul.f32 %v5137_v8, %v5137_v8 }
 0xf08   :  { %v2732_v45 = vsel %vm171_vm0, %v2716_v9, 0.0 }
 0xf09   :  { %2733 = vadd.xlane.f32.xlu2 %v2732_v45 }
 0xf54   :  { %v2719_v20 = vpop.xlane.xlu0 %2718 }
 0xf55   :  { %v2735_v29 = vmul.f32 %v2719_v20, %v4018_v18 }
 0xf57   :  { %v2741_v63 = vadd.f32 1e-05, %v2735_v29 }
 0xf59   :  { %3856 = vrsqrt.f32 %v2741_v63  ;;  %vm2753_vm15 = vweird.f32 %v2741_v63 }
 0xf5a   :  { %3858 = vrcp.f32 %v3898_v59 }
 0xf5c   :  { %v2722_v27 = vpop.xlane.xlu1 %2721 }
 0xf5d   :  { %v2736_v26 = vmul.f32 %v2722_v27, %v4018_v18 }
 0xf5f   :  { %v3857_v13 = vpop.eup %3856  ;;  %v2742_v61 = vadd.f32 1e-05, %v2736_v26  ;;  %v3668_v26 = vld [vmem:[%s5460_s9 + $0xf8] sm:$0xff] }
 0xf60   :  { %v3859_v53 = vpop.eup %3858  ;;  %v2748_v31 = vmul.f32 %v3857_v13, %v2741_v63  ;;  %vm2754_vm7 = vweird.f32 %v3857_v13  ;;  %3008 = vmatpush.msrb.mxu1 %v3668_v26 }
 0xf61   :  { %3860 = vrsqrt.f32 %v2742_v61  ;;  %v3063_v33 = vmul.f32 8.0, %v3859_v53  ;;  %vm2755_vm1 = vmor %vm2753_vm15, %vm2754_vm7  ;;  %vm3067_vm3 = vweird.f32 %v3859_v53  ;;  %vm2763_vm4 = vweird.f32 %v2742_v61 }
 0xf62   :  { %v2749_v25 = vmul.f32 %v3857_v13, %v2748_v31 }
 0xf63   :  { %v3064_v14 = vsub.f32 1.0, %v3063_v33 }
 0xf64   :  { %v2750_v56 = vmul.f32 0.5, %v2749_v25  ;;  %v2725_v17 = vpop.xlane.xlu2 %2724  ;;  %v3666_v25 = vld [vmem:[%s5460_s9 + $0xe8] sm:$0xff] }
 0xf65   :  { %v2737_v50 = vmul.f32 %v2725_v17, %v4018_v18  ;;  %v3065_v60 = vmul.f32 %v3859_v53, %v3064_v14 }
 0xf66   :  { %v2751_v15 = vsub.f32 1.5, %v2750_v56 }
 0xf67   :  { %v3861_v36 = vpop.eup %3860  ;;  %v2743_v41 = vadd.f32 1e-05, %v2737_v50  ;;  %v3066_v3 = vadd.f32 %v3859_v53, %v3065_v60 }
 0xf68   :  { %v2752_v38 = vmul.f32 %v3857_v13, %v2751_v15  ;;  %v2758_v44 = vmul.f32 %v3861_v36, %v2742_v61  ;;  %vm2764_vm2 = vweird.f32 %v3861_v36 }
 0xf69   :  { %3862 = vrsqrt.f32 %v2743_v41  ;;  %vm2765_vm6 = vmor %vm2763_vm4, %vm2764_vm2  ;;  %v5181_v9 = vsel %vm3067_vm3, %v3859_v53, %v3066_v3  ;;  %vm2773_vm9 = vweird.f32 %v2743_v41 }
 0xf6a   :  { %v2756_v46 = vsel %vm2755_vm1, %v3857_v13, %v2752_v38  ;;  %v2759_v22 = vmul.f32 %v3861_v36, %v2758_v44 }
 0xf6b   :  { %v2807_v47 = vmul.f32 %v2756_v46, %v5095_v7 }
 0xf6c   :  { %v2760_v52 = vmul.f32 0.5, %v2759_v22  ;;  %v2728_v55 = vpop.xlane.xlu0 %2727 }
 0xf6d   :  { %v2814_v35 = vmul.f32 %v5170_v43, %v2807_v47  ;;  %v2738_v28 = vmul.f32 %v2728_v55, %v4018_v18 }
 0xf6e   :  { %v2761_v4 = vsub.f32 1.5, %v2760_v52 }
 0xf6f   :  { %v2821_v62 = vadd.f32 %v5173_v54, %v2814_v35  ;;  %v3863_v34 = vpop.eup %3862  ;;  %v2744_v5 = vadd.f32 1e-05, %v2738_v28 }
 0xf70   :  { %v2762_v57 = vmul.f32 %v3861_v36, %v2761_v4  ;;  %v2768_v49 = vmul.f32 %v3863_v34, %v2743_v41  ;;  %vm2774_vm8 = vweird.f32 %v3863_v34 }
 0xf71   :  { %3641 = vmatmul.msk.f32.vlgmr.msra.gmra.mxu3 %vm171_vm0, %v2821_v62  ;;  %3647 = vmatmul.msk.f32.vlgmr.msrb.gmra.mxu0 %vm171_vm0, %v2821_v62  ;;  %3864 = vrsqrt.f32 %v2744_v5  ;;  %vm2775_vm10 = vmor %vm2773_vm9, %vm2774_vm8  ;;  %vm2783_vm12 = vweird.f32 %v2744_v5  ;;  %vm3311_vm9 = vcmask 818176  }
 0xf72   :  { %v2766_v7 = vsel %vm2765_vm6, %v3861_v36, %v2762_v57  ;;  %v2769_v12 = vmul.f32 %v3863_v34, %v2768_v49 }
 0xf73   :  { %v2808_v45 = vmul.f32 %v2766_v7, %v5102_v37 }
 0xf74   :  { %v2770_v51 = vmul.f32 0.5, %v2769_v12  ;;  %v2731_v11 = vpop.xlane.xlu1 %2730  ;;  %v3061_v0 = vpop.xlane.xlu0 %3060 }
 0xf75   :  { %v2739_v42 = vmul.f32 %v2731_v11, %v4018_v18  ;;  %v2815_v30 = vmul.f32 %v5170_v43, %v2808_v45  ;;  %v3069_v24 = vmul.f32 %v5181_v9, %v3061_v0  ;;  %v3664_v11 = vld [vmem:[%s5460_s9 + $0xd8] sm:$0xff] }
 0xf76   :  { %v2771_v40 = vsub.f32 1.5, %v2770_v51  ;;  %v3665_v51 = vld [vmem:[%s5460_s9 + $0xe0] sm:$0xff]  ;;  %v3660_v0 = vld [vmem:[%s5460_s9 + $0xb8] sm:$0xff] }
 0xf77   :  { %v3865_v32 = vpop.eup %3864  ;;  %v2745_v20 = vadd.f32 1e-05, %v2739_v42  ;;  %v2822_v29 = vadd.f32 %v5173_v54, %v2815_v30  ;;  %v5189_v63 = vsub.f32 %v5125_v10, %v3069_v24  ;;  %v3667_v10 = vld [vmem:[%s5460_s9 + $0xf0] sm:$0xff]  ;;  %v3658_v30 = vld [vmem:[%s5460_s9 + $0xa8] sm:$0xff]  ;;  %v3657_v24 = vld [vmem:[%s5460_s9 + $0xa0] sm:$0xff] }
 0xf78   :  { %v2772_v59 = vmul.f32 %v3863_v34, %v2771_v40  ;;  %v2778_v37 = vmul.f32 %v3865_v32, %v2744_v5  ;;  %3009 = vmatpush.msrb.mxu1 %v3667_v10  ;;  %vm2784_vm11 = vweird.f32 %v3865_v32  ;;  %v3659_v42 = vld [vmem:[%s5460_s9 + $0xb0] sm:$0xff]  ;;  %v3656_v40 = vld [vmem:[%s5460_s9 + $0x98] sm:$0xff] }
 0xf79   :  { %3866 = vrsqrt.f32 %v2745_v20  ;;  %3642 = vmatmul.msk.f32.gmra.mxu3 %vm171_vm0, %v2822_v29  ;;  %3648 = vmatmul.msk.f32.gmra.mxu0 %vm171_vm0, %v2822_v29  ;;  %v3071_v27 = vmul.f32 %v5189_v63, %v5189_v63  ;;  %vm2785_vm13 = vmor %vm2783_vm12, %vm2784_vm11  ;;  %vm2793_vm7 = vweird.f32 %v2745_v20  ;;  %v3640_v29 = vld [vmem:[%s5461_s8 + $0x2] sm:$0x3]  ;;  %vm3379_vm11 = vcmask 23552  }
 0xf7a   :  { %v2776_v13 = vsel %vm2775_vm10, %v3863_v34, %v2772_v59  ;;  %v2779_v53 = vmul.f32 %v3865_v32, %v2778_v37  ;;  %3010 = vmatpush.msrb.mxu1 %v3666_v25  ;;  %v3653_v59 = vld [vmem:[%s5460_s9 + $0x80] sm:$0xff]  ;;  %v5268_v37 = vperm.slane %v3640_v29, 1  ;;  %vm3351_vm10 = vcmask 408576  }
 0xf7b   :  { %v2809_v31 = vmul.f32 %v2776_v13, %v5109_v23  ;;  %v3072_v61 = vsel %vm3058_vm5, %v3071_v27, 0.0  ;;  %v3092_v27 = vld [vmem:[%s5463_s12] sm:$0xff] }
 0xf7c   :  { %v2780_v33 = vmul.f32 0.5, %v2779_v53  ;;  %v2734_v56 = vpop.xlane.xlu2 %2733  ;;  %3073 = vadd.xlane.f32.xlu1 %v3072_v61  ;;  %3011 = vmatpush.msrb.mxu1 %v3665_v51 }
 0xf7d   :  { %v2740_v17 = vmul.f32 %v2734_v56, %v4018_v18  ;;  %v2816_v15 = vmul.f32 %v5170_v43, %v2809_v31  ;;  %3115 = vmatpush.msra.mxu2 %v3092_v27 }
 0xf7e   :  { %v2781_v50 = vsub.f32 1.5, %v2780_v33  ;;  %3012 = vmatpush.msrb.mxu1 %v3664_v11 }
 0xf7f   :  { %v3867_v14 = vpop.eup %3866  ;;  %v2746_v36 = vadd.f32 1e-05, %v2740_v17  ;;  %v2823_v23 = vadd.f32 %v5173_v54, %v2816_v15 }
 0xf80   :  { %v2782_v38 = vmul.f32 %v3865_v32, %v2781_v50  ;;  %v2788_v41 = vmul.f32 %v3867_v14, %v2745_v20  ;;  %vm2794_vm14 = vweird.f32 %v3867_v14  ;;  %v3654_v20 = vld [vmem:[%s5460_s9 + $0x88] sm:$0xff] }
 0xf81   :  { %3868 = vrsqrt.f32 %v2746_v36  ;;  %3643 = vmatmul.msk.f32.gmra.mxu3 %vm171_vm0, %v2823_v23  ;;  %3649 = vmatmul.msk.f32.gmra.mxu0 %vm171_vm0, %v2823_v23  ;;  %vm2795_vm15 = vmor %vm2793_vm7, %vm2794_vm14  ;;  %vm2803_vm2 = vweird.f32 %v2746_v36 }
 0xf82   :  { %v2786_v44 = vsel %vm2785_vm13, %v3865_v32, %v2782_v38  ;;  %v2789_v18 = vmul.f32 %v3867_v14, %v2788_v41  ;;  %v3655_v32 = vld [vmem:[%s5460_s9 + $0x90] sm:$0xff] }
 0xf83   :  { %v2810_v46 = vmul.f32 %v2786_v44, %v5116_v58 }
 0xf84   :  { %v2790_v47 = vmul.f32 0.5, %v2789_v18 }
 0xf85   :  { %v2817_v22 = vmul.f32 %v5170_v43, %v2810_v46  ;;  %v5276_v46 = vperm.slane %v3640_v29, 0 }
 0xf86   :  { %v2791_v60 = vsub.f32 1.5, %v2790_v47 }
 0xf87   :  { %v3869_v35 = vpop.eup %3868  ;;  %v2824_v52 = vadd.f32 %v5173_v54, %v2817_v22 }
 0xf88   :  { %v2792_v55 = vmul.f32 %v3867_v14, %v2791_v60  ;;  %v2798_v28 = vmul.f32 %v3869_v35, %v2746_v36  ;;  %vm2804_vm1 = vweird.f32 %v3869_v35 }
 0xf89   :  { %3644 = vmatmul.msk.f32.gmra.mxu3 %vm171_vm0, %v2824_v52  ;;  %3650 = vmatmul.msk.f32.gmra.mxu0 %vm171_vm0, %v2824_v52  ;;  %vm2805_vm3 = vmor %vm2803_vm2, %vm2804_vm1 }
 0xf8a   :  { %v2796_v62 = vsel %vm2795_vm15, %v3867_v14, %v2792_v55  ;;  %v2799_v4 = vmul.f32 %v3869_v35, %v2798_v28  ;;  %v3056_v55 = vld [vmem:[%s5464_s10] sm:$0x3] }
 0xf8b   :  { %v2811_v58 = vmul.f32 %v2796_v62, %v5128_v6  ;;  %v3090_v51 = vperm.slane %v3056_v55, 1 }
 0xf8c   :  { %v2800_v3 = vmul.f32 0.5, %v2799_v4 }
 0xf8d   :  { %v2818_v34 = vmul.f32 %v5170_v43, %v2811_v58 }
 0xf8e   :  { %v2801_v5 = vsub.f32 1.5, %v2800_v3 }
 0xf8f   :  { %v2825_v57 = vadd.f32 %v5173_v54, %v2818_v34 }
 0xf90   :  { %v2802_v49 = vmul.f32 %v3869_v35, %v2801_v5 }
 0xf91   :  { %3645 = vmatmul.msk.f32.gmra.mxu3 %vm171_vm0, %v2825_v57  ;;  %3651 = vmatmul.msk.f32.gmra.mxu0 %vm171_vm0, %v2825_v57 }
 0xf92   :  { %v2806_v7 = vsel %vm2805_vm3, %v3869_v35, %v2802_v49 }
 0xf93   :  { %v2812_v12 = vmul.f32 %v2806_v7, %v5137_v8  ;;  %v3663_v8 = vld [vmem:[%s5460_s9 + $0xd0] sm:$0xff]  ;;  %v3088_v7 = vperm.slane %v3056_v55, 0 }
 0xf94   :  { %3013 = vmatpush.msrb.mxu1 %v3663_v8 }
 0xf95   :  { %v2819_v45 = vmul.f32 %v5170_v43, %v2812_v12  ;;  %v3662_v43 = vld [vmem:[%s5460_s9 + $0xc8] sm:$0xff] }
 0xf96   :  { %3014 = vmatpush.msrb.mxu1 %v3662_v43 }
 0xf97   :  { %v2826_v6 = vadd.f32 %v5173_v54, %v2819_v45  ;;  %v3661_v54 = vld [vmem:[%s5460_s9 + $0xc0] sm:$0xff] }
 0xf98   :  { %3015 = vmatpush.msrb.mxu1 %v3661_v54 }
 0xf99   :  { %3646 = vmatmul.msk.f32.gmra.mxu3 %vm171_vm0, %v2826_v6  ;;  %3652 = vmatmul.msk.f32.gmra.mxu0 %vm171_vm0, %v2826_v6 }
 0xf9a   :  { %3016 = vmatpush.msrb.mxu1 %v3660_v0 }
 0xf9c   :  { %3017 = vmatpush.msrb.mxu1 %v3659_v42 }
 0xf9e   :  { %3018 = vmatpush.msrb.mxu1 %v3658_v30 }
 0xfa0   :  { %3019 = vmatpush.msrb.mxu1 %v3657_v24 }
 0xfa2   :  { %3020 = vmatpush.msrb.mxu1 %v3656_v40 }
 0xfa4   :  { %3021 = vmatpush.msrb.mxu1 %v3655_v32 }
 0xfa6   :  { %3022 = vmatpush.msrb.mxu1 %v3654_v20 }
 0xfa8   :  { %3023 = vmatpush.msrb.mxu1 %v3653_v59 }
 0xfee   :  { %v2913_v26 = vpop.f32.mrf.mxu0 }
 0xfef   :  { %v2914_v10 = vadd.f32 %v2913_v26, %v5268_v37  ;;  %v3074_v13 = vpop.xlane.xlu1 %3073 }
 0xff0   :  { %v3075_v31 = vmul.f32 %v3074_v13, %v5181_v9 }
 0xff1   :  { %v2937_v53 = vmul.f32 0.044715, %v2914_v10  ;;  %v2931_v52 = vmul.f32 0.5, %v2914_v10 }
 0xff2   :  { %v3076_v25 = vadd.f32 1e-05, %v3075_v31 }
 0xff3   :  { %v2943_v61 = vmul.f32 %v2937_v53, %v2914_v10 }
 0xff4   :  { %3870 = vrsqrt.f32 %v3076_v25  ;;  %v2878_v15 = vpop.f32.mrf.mxu3  ;;  %vm3083_vm4 = vweird.f32 %v3076_v25 }
 0xff5   :  { %v2949_v33 = vmul.f32 %v2943_v61, %v2914_v10  ;;  %v2879_v34 = vadd.f32 %v2878_v15, %v5276_v46  ;;  %v3123_v61 = vld [vmem:[%s5465_s11 + $0x18] sm:$0xff] }
 0xff6   :  { %v2916_v17 = vpop.f32.mrf.mxu0  ;;  %3139 = vmatpush.msrb.mxu2 %v3123_v61 }
 0xff7   :  { %v2955_v56 = vadd.f32 %v2949_v33, %v2914_v10  ;;  %v2917_v50 = vadd.f32 %v2916_v17, %v5268_v37 }
 0xff9   :  { %v2961_v14 = vmul.f32 0.7978846, %v2955_v56  ;;  %v2938_v36 = vmul.f32 0.044715, %v2917_v50  ;;  %v2932_v40 = vmul.f32 0.5, %v2917_v50 }
 0xffa   :  { %v3871_v23 = vpop.eup %3870 }
 0xffb   :  { %3872 = vtanh.f32 %v2961_v14  ;;  %v2944_v38 = vmul.f32 %v2938_v36, %v2917_v50  ;;  %v3078_v41 = vmul.f32 %v3871_v23, %v3076_v25  ;;  %vm3084_vm6 = vweird.f32 %v3871_v23 }
 0xffc   :  { %v2881_v62 = vpop.f32.mrf.mxu3  ;;  %vm3085_vm8 = vmor %vm3083_vm4, %vm3084_vm6 }
 0xffd   :  { %v2950_v44 = vmul.f32 %v2944_v38, %v2917_v50  ;;  %v3079_v18 = vmul.f32 %v3871_v23, %v3078_v41  ;;  %v2882_v27 = vadd.f32 %v2881_v62, %v5276_v46 }
 0xffe   :  { %v2919_v9 = vpop.f32.mrf.mxu0 }
 0xfff   :  { %v2956_v47 = vadd.f32 %v2950_v44, %v2917_v50  ;;  %v2920_v22 = vadd.f32 %v2919_v9, %v5268_v37  ;;  %v3080_v60 = vmul.f32 0.5, %v3079_v18 }
0x1001   :  { %v3873_v35 = vpop.eup %3872  ;;  %v2962_v4 = vmul.f32 0.7978846, %v2956_v47  ;;  %v2939_v58 = vmul.f32 0.044715, %v2920_v22  ;;  %v3081_v3 = vsub.f32 1.5, %v3080_v60  ;;  %v2933_v17 = vmul.f32 0.5, %v2920_v22 }
0x1002   :  { %v2973_v28 = vadd.f32 1.0, %v3873_v35 }
0x1003   :  { %3874 = vtanh.f32 %v2962_v4  ;;  %v2945_v57 = vmul.f32 %v2939_v58, %v2920_v22  ;;  %v3082_v49 = vmul.f32 %v3871_v23, %v3081_v3 }
0x1004   :  { %v2979_v5 = vmul.f32 %v2973_v28, %v2931_v52  ;;  %v2884_v29 = vpop.f32.mrf.mxu3 }
0x1005   :  { %v3086_v45 = vsel %vm3085_vm8, %v3871_v23, %v3082_v49  ;;  %v2951_v6 = vmul.f32 %v2945_v57, %v2920_v22  ;;  %v2885_v14 = vadd.f32 %v2884_v29, %v5276_v46  ;;  %v3679_v29 = vld [vmem:[%s5465_s11 + $0x58] sm:$0xff] }
0x1006   :  { %v2985_v12 = vmul.f32 %v2979_v5, %v2879_v34  ;;  %v3087_v11 = vmul.f32 %v3086_v45, %v5189_v63  ;;  %v2922_v8 = vpop.f32.mrf.mxu0  ;;  %3197 = vmatpush.msrb.mxu3 %v3679_v29 }
0x1007   :  { %v2957_v43 = vadd.f32 %v2951_v6, %v2920_v22  ;;  %v2923_v54 = vadd.f32 %v2922_v8, %v5268_v37 }
0x1008   :  { %3024 = vmatmul.f32.vlgmr.msrb.gmra.mxu1 %v2985_v12  ;;  %v3089_v0 = vmul.f32 %v3088_v7, %v3087_v11 }
0x1009   :  { %v3875_v42 = vpop.eup %3874  ;;  %v2963_v30 = vmul.f32 0.7978846, %v2957_v43  ;;  %v2940_v24 = vmul.f32 0.044715, %v2923_v54  ;;  %v2934_v52 = vmul.f32 0.5, %v2923_v54 }
0x100a   :  { %v2974_v32 = vadd.f32 1.0, %v3875_v42  ;;  %v3091_v20 = vadd.f32 %v3090_v51, %v3089_v0  ;;  %v3122_v42 = vld [vmem:[%s5465_s11 + $0x10] sm:$0xff] }
0x100b   :  { %3876 = vtanh.f32 %v2963_v30  ;;  %v2946_v59 = vmul.f32 %v2940_v24, %v2923_v54  ;;  %3140 = vmatpush.msrb.mxu2 %v3122_v42  ;;  %v3121_v30 = vld [vmem:[%s5465_s11 + $0x8] sm:$0xff]  ;;  %v3120_v24 = vld [vmem:[%s5465_s11] sm:$0xff] }
0x100c   :  { %v2980_v26 = vmul.f32 %v2974_v32, %v2932_v40  ;;  %3669 = vmatmul.msk.f32.vlgmr.msra.gmra.mxu2 %vm3058_vm5, %v3091_v20  ;;  %v2887_v23 = vpop.f32.mrf.mxu3  ;;  %v3673_v40 = vld [vmem:[%s5465_s11 + $0x30] sm:$0xff]  ;;  %v3672_v32 = vld [vmem:[%s5465_s11 + $0x28] sm:$0xff]  ;;  %v3671_v20 = vld [vmem:[%s5465_s11 + $0x20] sm:$0xff]  ;;  %vm3315_vm5 = vcmask 1043456  }
0x100d   :  { %v2952_v63 = vmul.f32 %v2946_v59, %v2923_v54  ;;  %v2888_v28 = vadd.f32 %v2887_v23, %v5276_v46  ;;  %3141 = vmatpush.msrb.mxu2 %v3121_v30  ;;  %v3678_v59 = vld [vmem:[%s5465_s11 + $0x50] sm:$0xff] }
0x100e   :  { %v2986_v10 = vmul.f32 %v2980_v26, %v2882_v27  ;;  %v2925_v13 = vpop.f32.mrf.mxu0  ;;  %3198 = vmatpush.msrb.mxu3 %v3678_v59  ;;  %v3677_v27 = vld [vmem:[%s5465_s11 + $0x48] sm:$0xff]  ;;  %v3676_v26 = vld [vmem:[%s5465_s11 + $0x40] sm:$0xff]  ;;  %v3693_v23 = vld [vmem:[%s5465_s11 + $0xb0] sm:$0xff] }
0x100f   :  { %v2958_v53 = vadd.f32 %v2952_v63, %v2923_v54  ;;  %v2926_v31 = vadd.f32 %v2925_v13, %v5268_v37  ;;  %3142 = vmatpush.msrb.mxu2 %v3120_v24  ;;  %v3689_v63 = vld [vmem:[%s5465_s11 + $0x98] sm:$0xff] }
0x1010   :  { %3027 = vmatmul.f32.gmra.mxu1 %v2986_v10  ;;  %3199 = vmatpush.msrb.mxu3 %v3677_v27  ;;  %v3049_v10 = vperm.slane %v5060_v2, 5  ;;  %v3686_v2 = vld [vmem:[%s5465_s11 + $0x80] sm:$0xff] }
0x1011   :  { %v3877_v25 = vpop.eup %3876  ;;  %v2964_v33 = vmul.f32 0.7978846, %v2958_v53  ;;  %v2941_v56 = vmul.f32 0.044715, %v2926_v31  ;;  %v2935_v49 = vmul.f32 0.5, %v2926_v31 }
0x1012   :  { %v2975_v15 = vadd.f32 1.0, %v3877_v25  ;;  %3200 = vmatpush.msrb.mxu3 %v3676_v26  ;;  %v3684_v25 = vld [vmem:[%s5465_s11 + $0x78] sm:$0xff] }
0x1013   :  { %3878 = vtanh.f32 %v2964_v33  ;;  %v2947_v50 = vmul.f32 %v2941_v56, %v2926_v31  ;;  %v3687_v33 = vld [vmem:[%s5465_s11 + $0x88] sm:$0xff] }
0x1014   :  { %v2981_v36 = vmul.f32 %v2975_v15, %v2933_v17  ;;  %v2890_v3 = vpop.f32.mrf.mxu3  ;;  %3255 = vmatpush.msra.mxu3 %v3689_v63  ;;  %v3682_v56 = vld [vmem:[%s5465_s11 + $0x68] sm:$0xff]  ;;  %v3681_v15 = vld [vmem:[%s5465_s11 + $0x60] sm:$0xff]  ;;  %v3342_v63 = vld [vmem:[%s5469_s16 + $0x10] sm:$0xff] }
0x1015   :  { %v2953_v38 = vmul.f32 %v2947_v50, %v2926_v31  ;;  %v2891_v7 = vadd.f32 %v2890_v3, %v5276_v46  ;;  %v3300_v3 = vld [vmem:[%s5468_s14 + $0x30] sm:$0xff] }
0x1016   :  { %v2987_v41 = vmul.f32 %v2981_v36, %v2885_v14  ;;  %v2928_v44 = vpop.f32.mrf.mxu0  ;;  %v3694_v36 = vld [vmem:[%s5465_s11 + $0xb8] sm:$0xff] }
0x1017   :  { %v2959_v18 = vadd.f32 %v2953_v38, %v2926_v31  ;;  %v2929_v9 = vadd.f32 %v2928_v44, %v5268_v37  ;;  %v3688_v31 = vld [vmem:[%s5465_s11 + $0x90] sm:$0xff]  ;;  %v3692_v38 = vld [vmem:[%s5465_s11 + $0xa8] sm:$0xff]  ;;  %v3691_v44 = vld [vmem:[%s5465_s11 + $0xa0] sm:$0xff] }
0x1018   :  { %3030 = vmatmul.f32.gmra.mxu1 %v2987_v41  ;;  %3256 = vmatpush.msra.mxu3 %v3688_v31 }
0x1019   :  { %v3879_v47 = vpop.eup %3878  ;;  %v2965_v60 = vmul.f32 0.7978846, %v2959_v18  ;;  %v2942_v35 = vmul.f32 0.044715, %v2929_v9  ;;  %v2936_v11 = vmul.f32 0.5, %v2929_v9 }
0x101a   :  { %v2976_v55 = vadd.f32 1.0, %v3879_v47  ;;  %3257 = vmatpush.msra.mxu3 %v3687_v33  ;;  %v3709_v33 = vld [vmem:[%s5470_s17] ss:$0 sm:$0xff] }
0x101b   :  { %3880 = vtanh.f32 %v2965_v60  ;;  %v2948_v22 = vmul.f32 %v2942_v35, %v2929_v9 }
0x101c   :  { %v2982_v62 = vmul.f32 %v2976_v55, %v2934_v52  ;;  %v2893_v51 = vpop.f32.mrf.mxu3  ;;  %3258 = vmatpush.msra.mxu3 %v3686_v2 }
0x101d   :  { %v2954_v4 = vmul.f32 %v2948_v22, %v2929_v9  ;;  %v2894_v43 = vadd.f32 %v2893_v51, %v5276_v46  ;;  %v3674_v46 = vld [vmem:[%s5465_s11 + $0x38] sm:$0xff] }
0x101e   :  { %v2988_v58 = vmul.f32 %v2982_v62, %v2888_v28  ;;  %3168 = vmatpush.msra.mxu2 %v3674_v46  ;;  %v3306_v62 = vld [vmem:[%s5468_s14 + $0x60] sm:$0xf] }
0x101f   :  { %v2960_v34 = vadd.f32 %v2954_v4, %v2929_v9  ;;  %3696 = vmatpush.msk.msra.mxu0 %vm3315_vm5, %v3306_v62  ;;  %v3302_v4 = vld [vmem:[%s5468_s14 + $0x40] sm:$0xff] }
0x1020   :  { %3033 = vmatmul.f32.gmra.mxu1 %v2988_v58  ;;  %3169 = vmatpush.msra.mxu2 %v3673_v40  ;;  %v3301_v58 = vld [vmem:[%s5468_s14 + $0x38] sm:$0xff] }
0x1021   :  { %v3881_v5 = vpop.eup %3880  ;;  %v2966_v57 = vmul.f32 0.7978846, %v2960_v34  ;;  %v3299_v34 = vld [vmem:[%s5468_s14 + $0x28] sm:$0xff] }
0x1022   :  { %v2977_v37 = vadd.f32 1.0, %v3881_v5  ;;  %3170 = vmatpush.msra.mxu2 %v3672_v32  ;;  %v3298_v5 = vld [vmem:[%s5468_s14 + $0x20] sm:$0xff] }
0x1023   :  { %3882 = vtanh.f32 %v2966_v57  ;;  %v3297_v57 = vld [vmem:[%s5468_s14 + $0x18] sm:$0xff] }
0x1024   :  { %v2983_v12 = vmul.f32 %v2977_v37, %v2935_v49  ;;  %3171 = vmatpush.msra.mxu2 %v3671_v20  ;;  %v3296_v37 = vld [vmem:[%s5468_s14 + $0x10] sm:$0xff] }
0x1026   :  { %v2989_v45 = vmul.f32 %v2983_v12, %v2891_v7  ;;  %v3295_v7 = vld [vmem:[%s5468_s14 + $0x8] sm:$0xff]  ;;  %v3294_v12 = vld [vmem:[%s5468_s14] sm:$0xff] }
0x1028   :  { %3036 = vmatmul.f32.gmra.mxu1 %v2989_v45  ;;  %v3346_v45 = vld [vmem:[%s5469_s16 + $0x30] sm:$0x3] }
0x1029   :  { %v3883_v6 = vpop.eup %3882 }
0x102a   :  { %v2978_v8 = vadd.f32 1.0, %v3883_v6  ;;  %v3345_v6 = vld [vmem:[%s5469_s16 + $0x28] sm:$0xff] }
0x102c   :  { %v2984_v54 = vmul.f32 %v2978_v8, %v2936_v11  ;;  %v3344_v11 = vld [vmem:[%s5469_s16 + $0x20] sm:$0xff]  ;;  %v3343_v8 = vld [vmem:[%s5469_s16 + $0x18] sm:$0xff] }
0x102e   :  { %v2990_v0 = vmul.f32 %v2984_v54, %v2894_v43  ;;  %v3707_v54 = vld [vmem:[%s5466_s13] ss:$0 sm:$0xff] }
0x1030   :  { %3039 = vmatmul.f32.gmra.mxu1 %v2990_v0 }
0x1085   :  { %v3025_v13 = vpop.f32.mrf.mxu1 }
0x1086   :  { %v3043_v53 = vadd.f32 %v3025_v13, %v5064_v19  ;;  %v3683_v19 = vld [vmem:[%s5465_s11 + $0x70] sm:$0xff]  ;;  %v3340_v13 = vld [vmem:[%s5469_s16] sm:$0xff] }
0x1088   :  { %v3050_v61 = vadd.f32 %v3049_v10, %v3043_v53  ;;  %v3708_v53 = vld [vmem:[%s5467_s15] ss:$0 sm:$0xff] }
0x108a   :  { %3670 = vmatmul.msk.f32.vlgmr.msrb.gmra.mxu2 %vm171_vm0, %v3050_v61 }
0x108b   :  { %3226 = vmatpush.msrb.mxu2 %v3684_v25 }
0x108d   :  { %3227 = vmatpush.msrb.mxu2 %v3683_v19  ;;  %v3028_v17 = vpop.f32.mrf.mxu1 }
0x108e   :  { %v3044_v50 = vadd.f32 %v3028_v17, %v5069_v16 }
0x108f   :  { %3228 = vmatpush.msrb.mxu2 %v3682_v56  ;;  %v3117_v49 = vpop.f32.mrf.mxu2 }
0x1090   :  { %v3051_v14 = vadd.f32 %v3049_v10, %v3044_v50  ;;  %v3118_v42 = vadd.f32 %v3707_v54, %v3117_v49 }
0x1091   :  { %3229 = vmatpush.msrb.mxu2 %v3681_v15 }
0x1092   :  { %3675 = vmatmul.msk.f32.vlgmr.msra.gmra.mxu2 %vm171_vm0, %v3051_v14 }
0x1093   :  { %3284 = vmatpush.msra.mxu2 %v3694_v36 }
0x1095   :  { %v3031_v41 = vpop.f32.mrf.mxu1  ;;  %3285 = vmatpush.msra.mxu2 %v3693_v23 }
0x1096   :  { %v3045_v16 = vadd.f32 %v3031_v41, %v5074_v21 }
0x1097   :  { %3286 = vmatpush.msra.mxu2 %v3692_v38 }
0x1098   :  { %v3052_v18 = vadd.f32 %v3049_v10, %v3045_v16 }
0x1099   :  { %3287 = vmatpush.msra.mxu2 %v3691_v44 }
0x109a   :  { %3680 = vmatmul.msk.f32.vlgmr.msrb.gmra.mxu3 %vm171_vm0, %v3052_v18 }
0x109d   :  { %v3034_v9 = vpop.f32.mrf.mxu1 }
0x109e   :  { %v3046_v47 = vadd.f32 %v3034_v9, %v5079_v48  ;;  %v3305_v48 = vld [vmem:[%s5468_s14 + $0x58] sm:$0xff] }
0x109f   :  { %3323 = vmatpush.msra.mxu0 %v3305_v48 }
0x10a0   :  { %v3053_v60 = vadd.f32 %v3049_v10, %v3046_v47 }
0x10a2   :  { %3685 = vmatmul.msk.f32.vlgmr.msrb.gmra.mxu2 %vm171_vm0, %v3053_v60 }
0x10a5   :  { %v3037_v35 = vpop.f32.mrf.mxu1 }
0x10a6   :  { %v3047_v52 = vadd.f32 %v3037_v35, %v5084_v1  ;;  %v3304_v1 = vld [vmem:[%s5468_s14 + $0x50] sm:$0xff] }
0x10a7   :  { %3324 = vmatpush.msra.mxu0 %v3304_v1 }
0x10a8   :  { %v3054_v55 = vadd.f32 %v3049_v10, %v3047_v52 }
0x10aa   :  { %3690 = vmatmul.msk.f32.vlgmr.msra.gmra.mxu3 %vm171_vm0, %v3054_v55 }
0x10ad   :  { %v3040_v21 = vpop.f32.mrf.mxu1 }
0x10ae   :  { %v3048_v22 = vadd.f32 %v3040_v21, %v5089_v39  ;;  %v3303_v39 = vld [vmem:[%s5468_s14 + $0x48] sm:$0xff] }
0x10af   :  { %3325 = vmatpush.msra.mxu0 %v3303_v39 }
0x10b0   :  { %v3055_v28 = vadd.f32 %v3049_v10, %v3048_v22  ;;  %v3341_v10 = vld [vmem:[%s5469_s16 + $0x8] sm:$0xff] }
0x10b1   :  { %3326 = vmatpush.msra.mxu0 %v3302_v4 }
0x10b2   :  { %3695 = vmatmul.msk.f32.vlgmr.msra.gmra.mxu2 %vm171_vm0, %v3055_v28  ;;  %vm3355_vm0 = vcmask 1041408  }
0x10b3   :  { %3327 = vmatpush.msra.mxu0 %v3301_v58  ;;  %3698 = vmatpush.msk.msrb.mxu3 %vm3355_vm0, %v3346_v45 }
0x10b5   :  { %3328 = vmatpush.msra.mxu0 %v3300_v3  ;;  %3369 = vmatpush.msrb.mxu3 %v3345_v6 }
0x10b7   :  { %3329 = vmatpush.msra.mxu0 %v3299_v34  ;;  %3370 = vmatpush.msrb.mxu3 %v3344_v11 }
0x10b9   :  { %3330 = vmatpush.msra.mxu0 %v3298_v5  ;;  %3371 = vmatpush.msrb.mxu3 %v3343_v8 }
0x10bb   :  { %3331 = vmatpush.msra.mxu0 %v3297_v57  ;;  %3372 = vmatpush.msrb.mxu3 %v3342_v63 }
0x10bd   :  { %3332 = vmatpush.msra.mxu0 %v3296_v37  ;;  %3373 = vmatpush.msrb.mxu3 %v3341_v10 }
0x10bf   :  { %3333 = vmatpush.msra.mxu0 %v3295_v7  ;;  %3374 = vmatpush.msrb.mxu3 %v3340_v13 }
0x10c1   :  { %3334 = vmatpush.msra.mxu0 %v3294_v12 }
0x110d   :  { %v3144_v51 = vpop.f32.mrf.mxu2 }
0x110e   :  { %v3147_v30 = vadd.f32 %v3144_v51, %v3118_v42 }
0x1115   :  { %v3173_v43 = vpop.f32.mrf.mxu2 }
0x1116   :  { %v3176_v46 = vadd.f32 %v3173_v43, %v3147_v30 }
0x111d   :  { %v3202_v0 = vpop.f32.mrf.mxu3 }
0x111e   :  { %v3205_v40 = vadd.f32 %v3202_v0, %v3176_v46 }
0x1125   :  { %v3231_v24 = vpop.f32.mrf.mxu2 }
0x1126   :  { %v3234_v20 = vadd.f32 %v3231_v24, %v3205_v40 }
0x112d   :  { %v3260_v32 = vpop.f32.mrf.mxu3 }
0x112e   :  { %v3263_v29 = vadd.f32 %v3260_v32, %v3234_v20 }
0x1135   :  { %v3289_v59 = vpop.f32.mrf.mxu2 }
0x1136   :  { %v3292_v27 = vadd.f32 %v3289_v59, %v3263_v29 }
0x1138   :  { %v3293_v26 = vmax.f32 %v3292_v27, 0.0 }
0x113a   :  { %3697 = vmatmul.msk.f32.vlgmr.msra.gmra.mxu0 %vm3311_vm9, %v3293_v26 }
0x11b7   :  { %v3336_v31 = vpop.f32.mrf.mxu0 }
0x11b8   :  { %v3337_v61 = vadd.f32 %v3708_v53, %v3336_v31 }
0x11ba   :  { %v3339_v25 = vmax.f32 %v3337_v61, 0.0 }
0x11bc   :  { %3699 = vmatmul.msk.f32.vlgmr.msrb.gmra.mxu3 %vm3351_vm10, %v3339_v25 }
0x123f   :  { %v3376_v2 = vpop.f32.mrf.mxu3 }
0x1240   :  { %v3377_v19 = vadd.f32 %v3709_v33, %v3376_v2 }
0x1242   :  { %v3380_v56 = vsel %vm3379_vm11, %v3377_v19, -inf }
0x1243   :  { %3381 = vmax.xlane.f32.xlu2 %v3380_v56 }
0x12b6   :  { %v3382_v17 = vpop.xlane.xlu2 %3381 }
0x12b7   :  { %v3383_v15 = vsub.f32 %v3377_v19, %v3382_v17 }
0x12b9   :  { %v3384_v50 = vmul.f32 1.442695, %v3383_v15 }
0x12bb   :  { %3884 = vpow2.f32 %v3384_v50 }
0x12c1   :  { %v3885_v14 = vpop.eup %3884 }
0x12c2   :  { %v3386_v36 = vsel %vm3379_vm11, %v3885_v14, 0.0 }
0x12c3   :  { %3387 = vadd.xlane.f32.xlu0 %v3386_v36 }
0x1336   :  { %v3388_v23 = vpop.xlane.xlu0 %3387 }
0x1337   :  { %3886 = vrcp.f32 %v3388_v23  ;;  %v3400_v44 = vand.u32 2147483648, %v3388_v23  ;;  %v3398_v9 = vand.u32 2147483647, %v3388_v23  ;;  %vm3394_vm13 = vweird.f32 %v3388_v23 }
0x1339   :  { %v3401_v60 = vor.u32 1.1754944e-38, %v3400_v44  ;;  %vm3399_vm7 = vcmp.eq.f32.partialorder %v3398_v9, 8.507059e+37 }
0x133d   :  { %v3887_v38 = vpop.eup %3886 }
0x133e   :  { %v3390_v41 = vmul.f32 %v3887_v38, %v3388_v23  ;;  %vm3395_vm12 = vweird.f32 %v3887_v38 }
0x133f   :  { %vm3396_vm14 = vmor %vm3394_vm13, %vm3395_vm12 }
0x1340   :  { %v3391_v16 = vsub.f32 1.0, %v3390_v41 }
0x1342   :  { %v3392_v18 = vmul.f32 %v3887_v38, %v3391_v16 }
0x1344   :  { %v3393_v47 = vadd.f32 %v3887_v38, %v3392_v18 }
0x1346   :  { %v3397_v35 = vsel %vm3396_vm14, %v3887_v38, %v3393_v47 }
0x1347   :  { %v3402_v52 = vsel %vm3399_vm7, %v3401_v60, %v3397_v35 }
0x1348   :  { %v3403_v55 = vmul.f32 %v3885_v14, %v3402_v52 }
0x134a   :  { %3404 = vst.msk [vmem:[%s5471_s18] sm:$0xff] %vm3379_vm11, %v3403_v55 }

</bundles_post_ra>
